<compile_context>
chip_gen: v6e
topology: v6e:2x2x1
jax: 0.10.0
libtpu: 0.0.40
codegen_flags: <defaults>
</compile_context>

<pallas_src>
import functools
import math

import jax
import jax.numpy as jnp
from jax import lax
from jax.experimental import pallas as pl

# ---------------- scaled-down bert config ----------------
VOCAB = 128
HIDDEN = 128
NUM_LAYERS = 2
NUM_HEADS = 4
HEAD_DIM = HIDDEN // NUM_HEADS
INTERMEDIATE = 256
MAX_POS = 32
NUM_CLASSES = 4
LN_EPS = 1e-12
NEG_INF = -1e9


# ---------------- in-kernel helpers ----------------
def _gelu(x):
    # TODO(synk): HF bert-base-cased uses exact erf GELU; tanh approximation used here.
    c = math.sqrt(2.0 / math.pi)
    return 0.5 * x * (1.0 + jnp.tanh(c * (x + 0.044715 * x * x * x)))


def _layernorm(h, g, b):
    mean = jnp.mean(h, axis=-1, keepdims=True)
    var = jnp.mean((h - mean) ** 2, axis=-1, keepdims=True)
    return (h - mean) * lax.rsqrt(var + LN_EPS) * g + b


# ---------------- fully fused forward kernel ----------------
def _bert_kernel(emb_ref, bias_ref,
                 embg_ref, embb_ref,
                 wqkv_ref, bqkv_ref, wo_ref, bo_ref,
                 ln1g_ref, ln1b_ref, w1_ref, b1_ref, w2_ref, b2_ref,
                 ln2g_ref, ln2b_ref,
                 pw_ref, pb_ref, cw_ref, cb_ref,
                 o_ref, *, batch, seq_len):
    H, Dh, NH = HIDDEN, HEAD_DIM, NUM_HEADS
    M = batch * seq_len
    scale = 1.0 / math.sqrt(Dh)

    # embedding LayerNorm on the full (B*S, H) slab
    x = _layernorm(emb_ref[...], embg_ref[...], embb_ref[...])

    bias = bias_ref[...]                              # (B*S, B*S) block-diag additive mask

    for l in range(NUM_LAYERS):                       # static unroll over layers
        # fused QKV projection on the whole slab (M = B*S rows)
        qkv = jnp.dot(x.astype(jnp.bfloat16), wqkv_ref[l],
                      preferred_element_type=jnp.float32) + bqkv_ref[l]
        qkv = qkv.astype(jnp.bfloat16)                # (M, 3H) bf16

        wo_l = wo_ref[l]                              # (H, H) bf16, loaded once per layer
        attn = jnp.zeros((M, H), jnp.float32)
        for h in range(NH):                           # static unroll over heads
            qh = qkv[:, h * Dh:(h + 1) * Dh]
            kh = qkv[:, H + h * Dh:H + (h + 1) * Dh]
            vh = qkv[:, 2 * H + h * Dh:2 * H + (h + 1) * Dh]
            # scores over the whole slab; block-diag bias keeps sequences separate
            s = lax.dot_general(qh, kh, (((1,), (1,)), ((), ())),
                                preferred_element_type=jnp.float32)
            s = s * scale + bias
            s = s - jnp.max(s, axis=-1, keepdims=True)
            p = jnp.exp(s)
            p = p * pl.reciprocal(jnp.sum(p, axis=-1, keepdims=True), approx=True)
            ctx = jnp.dot(p.astype(jnp.bfloat16), vh,
                          preferred_element_type=jnp.float32)
            # per-head accumulation into the output projection: W_o sliced along sublanes,
            # no lane-axis context concat.
            attn += jnp.dot(ctx.astype(jnp.bfloat16), wo_l[h * Dh:(h + 1) * Dh, :],
                            preferred_element_type=jnp.float32)

        # attention output bias + residual + LN
        x1 = _layernorm(attn + bo_ref[l] + x, ln1g_ref[l], ln1b_ref[l])

        # FFN + residual + LN
        ff = jnp.dot(x1.astype(jnp.bfloat16), w1_ref[l],
                     preferred_element_type=jnp.float32) + b1_ref[l]
        ff = _gelu(ff)
        ffo = jnp.dot(ff.astype(jnp.bfloat16), w2_ref[l],
                      preferred_element_type=jnp.float32) + b2_ref[l]
        x = _layernorm(ffo + x1, ln2g_ref[l], ln2b_ref[l])

    # pooler (tanh on [CLS] row of each sequence) + classifier head
    cls = jnp.concatenate(
        [x[b * seq_len:b * seq_len + 1, :] for b in range(batch)], axis=0)   # (B, H)
    pooled = jnp.tanh(jnp.dot(cls.astype(jnp.bfloat16), pw_ref[...],
                              preferred_element_type=jnp.float32) + pb_ref[...])
    o_ref[...] = jnp.dot(pooled.astype(jnp.bfloat16), cw_ref[...],
                         preferred_element_type=jnp.float32) + cb_ref[...]


# ---------------- params ----------------
def init_params(key):
    keys = iter(jax.random.split(key, 64))

    def w(shape, s=0.02):
        return jax.random.normal(next(keys), shape, jnp.float32) * s

    params = {
        "word_emb": w((VOCAB, HIDDEN)),
        "pos_emb": w((MAX_POS, HIDDEN)),
        "type_emb": w((2, HIDDEN)),
        "emb_ln_g": jnp.ones((HIDDEN,), jnp.float32),
        "emb_ln_b": jnp.zeros((HIDDEN,), jnp.float32),
        "layers": [],
        "pooler_w": w((HIDDEN, HIDDEN)),
        "pooler_b": jnp.zeros((HIDDEN,), jnp.float32),
        "cls_w": w((HIDDEN, NUM_CLASSES)),
        "cls_b": jnp.zeros((NUM_CLASSES,), jnp.float32),
    }
    for _ in range(NUM_LAYERS):
        params["layers"].append({
            "wq": w((HIDDEN, HIDDEN)), "bq": jnp.zeros((HIDDEN,), jnp.float32),
            "wk": w((HIDDEN, HIDDEN)), "bk": jnp.zeros((HIDDEN,), jnp.float32),
            "wv": w((HIDDEN, HIDDEN)), "bv": jnp.zeros((HIDDEN,), jnp.float32),
            "wo": w((HIDDEN, HIDDEN)), "bo": jnp.zeros((HIDDEN,), jnp.float32),
            "ln1_g": jnp.ones((HIDDEN,), jnp.float32),
            "ln1_b": jnp.zeros((HIDDEN,), jnp.float32),
            "w1": w((HIDDEN, INTERMEDIATE)), "b1": jnp.zeros((INTERMEDIATE,), jnp.float32),
            "w2": w((INTERMEDIATE, HIDDEN)), "b2": jnp.zeros((HIDDEN,), jnp.float32),
            "ln2_g": jnp.ones((HIDDEN,), jnp.float32),
            "ln2_b": jnp.zeros((HIDDEN,), jnp.float32),
        })
    return params


def pack_params(params):
    """Kernel-ready layout: per-layer weights stacked on a leading L axis, QKV fused,
    matmul weights bf16, biases / LN params f32 with shape (1, N)."""
    H, I = HIDDEN, INTERMEDIATE
    L = params["layers"]

    def stack(fn, dtype=jnp.float32):
        return jnp.stack([fn(lp) for lp in L], axis=0).astype(dtype)

    return {
        "word_emb": params["word_emb"],
        "pos_emb": params["pos_emb"],
        "type_emb": params["type_emb"],
        "emb_ln_g": params["emb_ln_g"].reshape(1, H),
        "emb_ln_b": params["emb_ln_b"].reshape(1, H),
        "wqkv": stack(lambda lp: jnp.concatenate([lp["wq"], lp["wk"], lp["wv"]], axis=1),
                      jnp.bfloat16),                                   # (L, H, 3H)
        "bqkv": stack(lambda lp: jnp.concatenate([lp["bq"], lp["bk"], lp["bv"]]).reshape(1, 3 * H)),
        "wo": stack(lambda lp: lp["wo"], jnp.bfloat16),                # (L, H, H)
        "bo": stack(lambda lp: lp["bo"].reshape(1, H)),
        "ln1_g": stack(lambda lp: lp["ln1_g"].reshape(1, H)),
        "ln1_b": stack(lambda lp: lp["ln1_b"].reshape(1, H)),
        "w1": stack(lambda lp: lp["w1"], jnp.bfloat16),                # (L, H, I)
        "b1": stack(lambda lp: lp["b1"].reshape(1, I)),
        "w2": stack(lambda lp: lp["w2"], jnp.bfloat16),                # (L, I, H)
        "b2": stack(lambda lp: lp["b2"].reshape(1, H)),
        "ln2_g": stack(lambda lp: lp["ln2_g"].reshape(1, H)),
        "ln2_b": stack(lambda lp: lp["ln2_b"].reshape(1, H)),
        "pooler_w": params["pooler_w"].astype(jnp.bfloat16),
        "pooler_b": params["pooler_b"].reshape(1, H),
        "cls_w": params["cls_w"].astype(jnp.bfloat16),
        "cls_b": params["cls_b"].reshape(1, NUM_CLASSES),
    }


# ---------------- forward ----------------
def bert_forward(packed, input_ids, attention_mask):
    B, S = input_ids.shape
    # embeddings: gathers + broadcast adds are XLA glue; everything after runs in ONE kernel.
    emb = (packed["word_emb"][input_ids]
           + packed["pos_emb"][:S][None, :, :]
           + packed["type_emb"][0][None, None, :])                    # token_type_ids = 0
    emb = emb.reshape(B * S, HIDDEN)

    # block-diagonal additive attention bias over the flattened (B*S) token axis:
    # -1e9 for cross-sequence pairs or padded keys -> per-sequence softmax semantics.
    seq_ids = jnp.repeat(jnp.arange(B), S)
    same_seq = seq_ids[:, None] == seq_ids[None, :]
    key_valid = attention_mask.reshape(B * S) > 0
    bias = jnp.where(same_seq & key_valid[None, :], 0.0, NEG_INF).astype(jnp.float32)

    kernel = functools.partial(_bert_kernel, batch=B, seq_len=S)
    return pl.pallas_call(
        kernel,
        out_shape=jax.ShapeDtypeStruct((B, NUM_CLASSES), jnp.float32),
    )(emb, bias,
      packed["emb_ln_g"], packed["emb_ln_b"],
      packed["wqkv"], packed["bqkv"], packed["wo"], packed["bo"],
      packed["ln1_g"], packed["ln1_b"], packed["w1"], packed["b1"],
      packed["w2"], packed["b2"], packed["ln2_g"], packed["ln2_b"],
      packed["pooler_w"], packed["pooler_b"], packed["cls_w"], packed["cls_b"])


if __name__ == "__main__":
    key = jax.random.PRNGKey(0)
    k_param, k_ids = jax.random.split(key)

    B, S = 2, 8
    params = init_params(k_param)
    packed = pack_params(params)
    input_ids = jax.random.randint(k_ids, (B, S), 0, VOCAB, dtype=jnp.int32)
    # second sequence padded at the last two positions
    attention_mask = (jnp.arange(S)[None, :] < jnp.array([[S], [S - 2]])).astype(jnp.int32)

    fwd = jax.jit(bert_forward)
    logits = fwd(packed, input_ids, attention_mask)
    jax.block_until_ready(logits)
    assert logits.shape == (B, NUM_CLASSES)
    print("KERNEL_OK")
</pallas_src>

<mosaic_0001>
module attributes {stable_mosaic.version = 11 : i64} {
  func.func @_bert_kernel(%arg0: memref<16x128xf32, #tpu.memory_space<vmem>>, %arg1: memref<16x16xf32, #tpu.memory_space<vmem>>, %arg2: memref<1x128xf32, #tpu.memory_space<vmem>>, %arg3: memref<1x128xf32, #tpu.memory_space<vmem>>, %arg4: memref<2x128x384xbf16, #tpu.memory_space<vmem>>, %arg5: memref<2x1x384xf32, #tpu.memory_space<vmem>>, %arg6: memref<2x128x128xbf16, #tpu.memory_space<vmem>>, %arg7: memref<2x1x128xf32, #tpu.memory_space<vmem>>, %arg8: memref<2x1x128xf32, #tpu.memory_space<vmem>>, %arg9: memref<2x1x128xf32, #tpu.memory_space<vmem>>, %arg10: memref<2x128x256xbf16, #tpu.memory_space<vmem>>, %arg11: memref<2x1x256xf32, #tpu.memory_space<vmem>>, %arg12: memref<2x256x128xbf16, #tpu.memory_space<vmem>>, %arg13: memref<2x1x128xf32, #tpu.memory_space<vmem>>, %arg14: memref<2x1x128xf32, #tpu.memory_space<vmem>>, %arg15: memref<2x1x128xf32, #tpu.memory_space<vmem>>, %arg16: memref<128x128xbf16, #tpu.memory_space<vmem>>, %arg17: memref<1x128xf32, #tpu.memory_space<vmem>>, %arg18: memref<128x4xbf16, #tpu.memory_space<vmem>>, %arg19: memref<1x4xf32, #tpu.memory_space<vmem>>, %arg20: memref<2x4xf32, #tpu.memory_space<vmem>>) attributes {dimension_semantics = [], scalar_prefetch = 0 : i64, scratch_operands = 0 : i64, tpu.core_type = #tpu.core_type<tc>} {
    %c0 = arith.constant 0 : index
    %c0_0 = arith.constant 0 : index
    %0 = vector.load %arg0[%c0, %c0_0] : memref<16x128xf32, #tpu.memory_space<vmem>>, vector<16x128xf32>
    %c0_1 = arith.constant 0 : index
    %c0_2 = arith.constant 0 : index
    %1 = vector.load %arg2[%c0_1, %c0_2] : memref<1x128xf32, #tpu.memory_space<vmem>>, vector<1x128xf32>
    %c0_3 = arith.constant 0 : index
    %c0_4 = arith.constant 0 : index
    %2 = vector.load %arg3[%c0_3, %c0_4] : memref<1x128xf32, #tpu.memory_space<vmem>>, vector<1x128xf32>
    %cst = arith.constant dense<0.000000e+00> : vector<16xf32>
    %3 = vector.multi_reduction <add>, %0, %cst [1] : vector<16x128xf32> to vector<16xf32>
    %4 = vector.shape_cast %3 : vector<16xf32> to vector<16x1xf32>
    %cst_5 = arith.constant 1.280000e+02 : f32
    %5 = vector.broadcast %cst_5 : f32 to vector<16x1xf32>
    %6 = arith.divf %4, %5 : vector<16x1xf32>
    %7 = vector.broadcast %6 : vector<16x1xf32> to vector<16x128xf32>
    %8 = arith.subf %0, %7 : vector<16x128xf32>
    %9 = arith.mulf %8, %8 : vector<16x128xf32>
    %cst_6 = arith.constant dense<0.000000e+00> : vector<16xf32>
    %10 = vector.multi_reduction <add>, %9, %cst_6 [1] : vector<16x128xf32> to vector<16xf32>
    %11 = vector.shape_cast %10 : vector<16xf32> to vector<16x1xf32>
    %cst_7 = arith.constant 1.280000e+02 : f32
    %12 = vector.broadcast %cst_7 : f32 to vector<16x1xf32>
    %13 = arith.divf %11, %12 : vector<16x1xf32>
    %14 = vector.broadcast %6 : vector<16x1xf32> to vector<16x128xf32>
    %15 = arith.subf %0, %14 : vector<16x128xf32>
    %cst_8 = arith.constant 9.99999996E-13 : f32
    %16 = vector.broadcast %cst_8 : f32 to vector<16x1xf32>
    %17 = arith.addf %13, %16 : vector<16x1xf32>
    %18 = math.rsqrt %17 : vector<16x1xf32>
    %19 = vector.broadcast %18 : vector<16x1xf32> to vector<16x128xf32>
    %20 = arith.mulf %15, %19 : vector<16x128xf32>
    %21 = vector.broadcast %1 : vector<1x128xf32> to vector<16x128xf32>
    %22 = arith.mulf %20, %21 : vector<16x128xf32>
    %23 = vector.broadcast %2 : vector<1x128xf32> to vector<16x128xf32>
    %24 = arith.addf %22, %23 : vector<16x128xf32>
    %c0_9 = arith.constant 0 : index
    %c0_10 = arith.constant 0 : index
    %25 = vector.load %arg1[%c0_9, %c0_10] : memref<16x16xf32, #tpu.memory_space<vmem>>, vector<16x16xf32>
    %26 = arith.truncf %24 : vector<16x128xf32> to vector<16x128xbf16>
    %c0_11 = arith.constant 0 : index
    %c0_12 = arith.constant 0 : index
    %c0_13 = arith.constant 0 : index
    %27 = vector.load %arg4[%c0_11, %c0_12, %c0_13] : memref<2x128x384xbf16, #tpu.memory_space<vmem>>, vector<1x128x384xbf16>
    %28 = vector.shape_cast %27 : vector<1x128x384xbf16> to vector<128x384xbf16>
    %cst_14 = arith.constant dense<0.000000e+00> : vector<16x384xf32>
    %29 = tpu.matmul %26, %28, %cst_14 {dimension_numbers = #tpu.dot_dimension_numbers<[1], [0], [0], [1], [0, 0, 1, 1], [], []>} : vector<16x128xbf16>, vector<128x384xbf16>, vector<16x384xf32> -> vector<16x384xf32>
    %c0_15 = arith.constant 0 : index
    %c0_16 = arith.constant 0 : index
    %c0_17 = arith.constant 0 : index
    %30 = vector.load %arg5[%c0_15, %c0_16, %c0_17] : memref<2x1x384xf32, #tpu.memory_space<vmem>>, vector<1x1x384xf32>
    %31 = vector.shape_cast %30 : vector<1x1x384xf32> to vector<1x384xf32>
    %32 = vector.broadcast %31 : vector<1x384xf32> to vector<16x384xf32>
    %33 = arith.addf %29, %32 : vector<16x384xf32>
    %34 = arith.truncf %33 : vector<16x384xf32> to vector<16x384xbf16>
    %c0_18 = arith.constant 0 : index
    %c0_19 = arith.constant 0 : index
    %c0_20 = arith.constant 0 : index
    %35 = vector.load %arg6[%c0_18, %c0_19, %c0_20] : memref<2x128x128xbf16, #tpu.memory_space<vmem>>, vector<1x128x128xbf16>
    %36 = vector.shape_cast %35 : vector<1x128x128xbf16> to vector<128x128xbf16>
    %cst_21 = arith.constant 0.000000e+00 : f32
    %37 = vector.broadcast %cst_21 : f32 to vector<16x128xf32>
    %38 = vector.extract_strided_slice %34 {offsets = [0, 0], sizes = [16, 32], strides = [1, 1]} : vector<16x384xbf16> to vector<16x32xbf16>
    %39 = vector.extract_strided_slice %34 {offsets = [0, 128], sizes = [16, 32], strides = [1, 1]} : vector<16x384xbf16> to vector<16x32xbf16>
    %40 = vector.extract_strided_slice %34 {offsets = [0, 256], sizes = [16, 32], strides = [1, 1]} : vector<16x384xbf16> to vector<16x32xbf16>
    %cst_22 = arith.constant dense<0.000000e+00> : vector<16x16xf32>
    %41 = tpu.matmul %38, %39, %cst_22 {dimension_numbers = #tpu.dot_dimension_numbers<[1], [1], [0], [0], [0, 0, 1, 0], [], []>} : vector<16x32xbf16>, vector<16x32xbf16>, vector<16x16xf32> -> vector<16x16xf32>
    %cst_23 = arith.constant 0.176776692 : f32
    %42 = vector.broadcast %cst_23 : f32 to vector<16x16xf32>
    %43 = arith.mulf %41, %42 : vector<16x16xf32>
    %44 = arith.addf %43, %25 : vector<16x16xf32>
    %cst_24 = arith.constant dense<0xFF800000> : vector<16xf32>
    %45 = vector.multi_reduction <maximumf>, %44, %cst_24 [1] : vector<16x16xf32> to vector<16xf32>
    %46 = vector.shape_cast %45 : vector<16xf32> to vector<16x1xf32>
    %47 = vector.broadcast %46 : vector<16x1xf32> to vector<16x16xf32>
    %48 = arith.subf %44, %47 : vector<16x16xf32>
    %49 = math.exp %48 : vector<16x16xf32>
    %cst_25 = arith.constant dense<0.000000e+00> : vector<16xf32>
    %50 = vector.multi_reduction <add>, %49, %cst_25 [1] : vector<16x16xf32> to vector<16xf32>
    %51 = vector.shape_cast %50 : vector<16xf32> to vector<16x1xf32>
    %52 = tpu.reciprocal %51 {approx = true} : vector<16x1xf32> -> vector<16x1xf32>
    %53 = vector.broadcast %52 : vector<16x1xf32> to vector<16x16xf32>
    %54 = arith.mulf %49, %53 : vector<16x16xf32>
    %55 = arith.truncf %54 : vector<16x16xf32> to vector<16x16xbf16>
    %cst_26 = arith.constant dense<0.000000e+00> : vector<16x32xf32>
    %56 = tpu.matmul %55, %40, %cst_26 {dimension_numbers = #tpu.dot_dimension_numbers<[1], [0], [0], [1], [0, 0, 1, 1], [], []>} : vector<16x16xbf16>, vector<16x32xbf16>, vector<16x32xf32> -> vector<16x32xf32>
    %57 = arith.truncf %56 : vector<16x32xf32> to vector<16x32xbf16>
    %58 = vector.extract_strided_slice %36 {offsets = [0, 0], sizes = [32, 128], strides = [1, 1]} : vector<128x128xbf16> to vector<32x128xbf16>
    %cst_27 = arith.constant dense<0.000000e+00> : vector<16x128xf32>
    %59 = tpu.matmul %57, %58, %cst_27 {dimension_numbers = #tpu.dot_dimension_numbers<[1], [0], [0], [1], [0, 0, 1, 1], [], []>} : vector<16x32xbf16>, vector<32x128xbf16>, vector<16x128xf32> -> vector<16x128xf32>
    %60 = arith.addf %37, %59 : vector<16x128xf32>
    %61 = vector.extract_strided_slice %34 {offsets = [0, 32], sizes = [16, 32], strides = [1, 1]} : vector<16x384xbf16> to vector<16x32xbf16>
    %62 = vector.extract_strided_slice %34 {offsets = [0, 160], sizes = [16, 32], strides = [1, 1]} : vector<16x384xbf16> to vector<16x32xbf16>
    %63 = vector.extract_strided_slice %34 {offsets = [0, 288], sizes = [16, 32], strides = [1, 1]} : vector<16x384xbf16> to vector<16x32xbf16>
    %cst_28 = arith.constant dense<0.000000e+00> : vector<16x16xf32>
    %64 = tpu.matmul %61, %62, %cst_28 {dimension_numbers = #tpu.dot_dimension_numbers<[1], [1], [0], [0], [0, 0, 1, 0], [], []>} : vector<16x32xbf16>, vector<16x32xbf16>, vector<16x16xf32> -> vector<16x16xf32>
    %cst_29 = arith.constant 0.176776692 : f32
    %65 = vector.broadcast %cst_29 : f32 to vector<16x16xf32>
    %66 = arith.mulf %64, %65 : vector<16x16xf32>
    %67 = arith.addf %66, %25 : vector<16x16xf32>
    %cst_30 = arith.constant dense<0xFF800000> : vector<16xf32>
    %68 = vector.multi_reduction <maximumf>, %67, %cst_30 [1] : vector<16x16xf32> to vector<16xf32>
    %69 = vector.shape_cast %68 : vector<16xf32> to vector<16x1xf32>
    %70 = vector.broadcast %69 : vector<16x1xf32> to vector<16x16xf32>
    %71 = arith.subf %67, %70 : vector<16x16xf32>
    %72 = math.exp %71 : vector<16x16xf32>
    %cst_31 = arith.constant dense<0.000000e+00> : vector<16xf32>
    %73 = vector.multi_reduction <add>, %72, %cst_31 [1] : vector<16x16xf32> to vector<16xf32>
    %74 = vector.shape_cast %73 : vector<16xf32> to vector<16x1xf32>
    %75 = tpu.reciprocal %74 {approx = true} : vector<16x1xf32> -> vector<16x1xf32>
    %76 = vector.broadcast %75 : vector<16x1xf32> to vector<16x16xf32>
    %77 = arith.mulf %72, %76 : vector<16x16xf32>
    %78 = arith.truncf %77 : vector<16x16xf32> to vector<16x16xbf16>
    %cst_32 = arith.constant dense<0.000000e+00> : vector<16x32xf32>
    %79 = tpu.matmul %78, %63, %cst_32 {dimension_numbers = #tpu.dot_dimension_numbers<[1], [0], [0], [1], [0, 0, 1, 1], [], []>} : vector<16x16xbf16>, vector<16x32xbf16>, vector<16x32xf32> -> vector<16x32xf32>
    %80 = arith.truncf %79 : vector<16x32xf32> to vector<16x32xbf16>
    %81 = vector.extract_strided_slice %36 {offsets = [32, 0], sizes = [32, 128], strides = [1, 1]} : vector<128x128xbf16> to vector<32x128xbf16>
    %cst_33 = arith.constant dense<0.000000e+00> : vector<16x128xf32>
    %82 = tpu.matmul %80, %81, %cst_33 {dimension_numbers = #tpu.dot_dimension_numbers<[1], [0], [0], [1], [0, 0, 1, 1], [], []>} : vector<16x32xbf16>, vector<32x128xbf16>, vector<16x128xf32> -> vector<16x128xf32>
    %83 = arith.addf %60, %82 : vector<16x128xf32>
    %84 = vector.extract_strided_slice %34 {offsets = [0, 64], sizes = [16, 32], strides = [1, 1]} : vector<16x384xbf16> to vector<16x32xbf16>
    %85 = vector.extract_strided_slice %34 {offsets = [0, 192], sizes = [16, 32], strides = [1, 1]} : vector<16x384xbf16> to vector<16x32xbf16>
    %86 = vector.extract_strided_slice %34 {offsets = [0, 320], sizes = [16, 32], strides = [1, 1]} : vector<16x384xbf16> to vector<16x32xbf16>
    %cst_34 = arith.constant dense<0.000000e+00> : vector<16x16xf32>
    %87 = tpu.matmul %84, %85, %cst_34 {dimension_numbers = #tpu.dot_dimension_numbers<[1], [1], [0], [0], [0, 0, 1, 0], [], []>} : vector<16x32xbf16>, vector<16x32xbf16>, vector<16x16xf32> -> vector<16x16xf32>
    %cst_35 = arith.constant 0.176776692 : f32
    %88 = vector.broadcast %cst_35 : f32 to vector<16x16xf32>
    %89 = arith.mulf %87, %88 : vector<16x16xf32>
    %90 = arith.addf %89, %25 : vector<16x16xf32>
    %cst_36 = arith.constant dense<0xFF800000> : vector<16xf32>
    %91 = vector.multi_reduction <maximumf>, %90, %cst_36 [1] : vector<16x16xf32> to vector<16xf32>
    %92 = vector.shape_cast %91 : vector<16xf32> to vector<16x1xf32>
    %93 = vector.broadcast %92 : vector<16x1xf32> to vector<16x16xf32>
    %94 = arith.subf %90, %93 : vector<16x16xf32>
    %95 = math.exp %94 : vector<16x16xf32>
    %cst_37 = arith.constant dense<0.000000e+00> : vector<16xf32>
    %96 = vector.multi_reduction <add>, %95, %cst_37 [1] : vector<16x16xf32> to vector<16xf32>
    %97 = vector.shape_cast %96 : vector<16xf32> to vector<16x1xf32>
    %98 = tpu.reciprocal %97 {approx = true} : vector<16x1xf32> -> vector<16x1xf32>
    %99 = vector.broadcast %98 : vector<16x1xf32> to vector<16x16xf32>
    %100 = arith.mulf %95, %99 : vector<16x16xf32>
    %101 = arith.truncf %100 : vector<16x16xf32> to vector<16x16xbf16>
    %cst_38 = arith.constant dense<0.000000e+00> : vector<16x32xf32>
    %102 = tpu.matmul %101, %86, %cst_38 {dimension_numbers = #tpu.dot_dimension_numbers<[1], [0], [0], [1], [0, 0, 1, 1], [], []>} : vector<16x16xbf16>, vector<16x32xbf16>, vector<16x32xf32> -> vector<16x32xf32>
    %103 = arith.truncf %102 : vector<16x32xf32> to vector<16x32xbf16>
    %104 = vector.extract_strided_slice %36 {offsets = [64, 0], sizes = [32, 128], strides = [1, 1]} : vector<128x128xbf16> to vector<32x128xbf16>
    %cst_39 = arith.constant dense<0.000000e+00> : vector<16x128xf32>
    %105 = tpu.matmul %103, %104, %cst_39 {dimension_numbers = #tpu.dot_dimension_numbers<[1], [0], [0], [1], [0, 0, 1, 1], [], []>} : vector<16x32xbf16>, vector<32x128xbf16>, vector<16x128xf32> -> vector<16x128xf32>
    %106 = arith.addf %83, %105 : vector<16x128xf32>
    %107 = vector.extract_strided_slice %34 {offsets = [0, 96], sizes = [16, 32], strides = [1, 1]} : vector<16x384xbf16> to vector<16x32xbf16>
    %108 = vector.extract_strided_slice %34 {offsets = [0, 224], sizes = [16, 32], strides = [1, 1]} : vector<16x384xbf16> to vector<16x32xbf16>
    %109 = vector.extract_strided_slice %34 {offsets = [0, 352], sizes = [16, 32], strides = [1, 1]} : vector<16x384xbf16> to vector<16x32xbf16>
    %cst_40 = arith.constant dense<0.000000e+00> : vector<16x16xf32>
    %110 = tpu.matmul %107, %108, %cst_40 {dimension_numbers = #tpu.dot_dimension_numbers<[1], [1], [0], [0], [0, 0, 1, 0], [], []>} : vector<16x32xbf16>, vector<16x32xbf16>, vector<16x16xf32> -> vector<16x16xf32>
    %cst_41 = arith.constant 0.176776692 : f32
    %111 = vector.broadcast %cst_41 : f32 to vector<16x16xf32>
    %112 = arith.mulf %110, %111 : vector<16x16xf32>
    %113 = arith.addf %112, %25 : vector<16x16xf32>
    %cst_42 = arith.constant dense<0xFF800000> : vector<16xf32>
    %114 = vector.multi_reduction <maximumf>, %113, %cst_42 [1] : vector<16x16xf32> to vector<16xf32>
    %115 = vector.shape_cast %114 : vector<16xf32> to vector<16x1xf32>
    %116 = vector.broadcast %115 : vector<16x1xf32> to vector<16x16xf32>
    %117 = arith.subf %113, %116 : vector<16x16xf32>
    %118 = math.exp %117 : vector<16x16xf32>
    %cst_43 = arith.constant dense<0.000000e+00> : vector<16xf32>
    %119 = vector.multi_reduction <add>, %118, %cst_43 [1] : vector<16x16xf32> to vector<16xf32>
    %120 = vector.shape_cast %119 : vector<16xf32> to vector<16x1xf32>
    %121 = tpu.reciprocal %120 {approx = true} : vector<16x1xf32> -> vector<16x1xf32>
    %122 = vector.broadcast %121 : vector<16x1xf32> to vector<16x16xf32>
    %123 = arith.mulf %118, %122 : vector<16x16xf32>
    %124 = arith.truncf %123 : vector<16x16xf32> to vector<16x16xbf16>
    %cst_44 = arith.constant dense<0.000000e+00> : vector<16x32xf32>
    %125 = tpu.matmul %124, %109, %cst_44 {dimension_numbers = #tpu.dot_dimension_numbers<[1], [0], [0], [1], [0, 0, 1, 1], [], []>} : vector<16x16xbf16>, vector<16x32xbf16>, vector<16x32xf32> -> vector<16x32xf32>
    %126 = arith.truncf %125 : vector<16x32xf32> to vector<16x32xbf16>
    %127 = vector.extract_strided_slice %36 {offsets = [96, 0], sizes = [32, 128], strides = [1, 1]} : vector<128x128xbf16> to vector<32x128xbf16>
    %cst_45 = arith.constant dense<0.000000e+00> : vector<16x128xf32>
    %128 = tpu.matmul %126, %127, %cst_45 {dimension_numbers = #tpu.dot_dimension_numbers<[1], [0], [0], [1], [0, 0, 1, 1], [], []>} : vector<16x32xbf16>, vector<32x128xbf16>, vector<16x128xf32> -> vector<16x128xf32>
    %129 = arith.addf %106, %128 : vector<16x128xf32>
    %c0_46 = arith.constant 0 : index
    %c0_47 = arith.constant 0 : index
    %c0_48 = arith.constant 0 : index
    %130 = vector.load %arg7[%c0_46, %c0_47, %c0_48] : memref<2x1x128xf32, #tpu.memory_space<vmem>>, vector<1x1x128xf32>
    %131 = vector.shape_cast %130 : vector<1x1x128xf32> to vector<1x128xf32>
    %132 = vector.broadcast %131 : vector<1x128xf32> to vector<16x128xf32>
    %133 = arith.addf %129, %132 : vector<16x128xf32>
    %134 = arith.addf %133, %24 : vector<16x128xf32>
    %c0_49 = arith.constant 0 : index
    %c0_50 = arith.constant 0 : index
    %c0_51 = arith.constant 0 : index
    %135 = vector.load %arg8[%c0_49, %c0_50, %c0_51] : memref<2x1x128xf32, #tpu.memory_space<vmem>>, vector<1x1x128xf32>
    %136 = vector.shape_cast %135 : vector<1x1x128xf32> to vector<1x128xf32>
    %c0_52 = arith.constant 0 : index
    %c0_53 = arith.constant 0 : index
    %c0_54 = arith.constant 0 : index
    %137 = vector.load %arg9[%c0_52, %c0_53, %c0_54] : memref<2x1x128xf32, #tpu.memory_space<vmem>>, vector<1x1x128xf32>
    %138 = vector.shape_cast %137 : vector<1x1x128xf32> to vector<1x128xf32>
    %cst_55 = arith.constant dense<0.000000e+00> : vector<16xf32>
    %139 = vector.multi_reduction <add>, %134, %cst_55 [1] : vector<16x128xf32> to vector<16xf32>
    %140 = vector.shape_cast %139 : vector<16xf32> to vector<16x1xf32>
    %cst_56 = arith.constant 1.280000e+02 : f32
    %141 = vector.broadcast %cst_56 : f32 to vector<16x1xf32>
    %142 = arith.divf %140, %141 : vector<16x1xf32>
    %143 = vector.broadcast %142 : vector<16x1xf32> to vector<16x128xf32>
    %144 = arith.subf %134, %143 : vector<16x128xf32>
    %145 = arith.mulf %144, %144 : vector<16x128xf32>
    %cst_57 = arith.constant dense<0.000000e+00> : vector<16xf32>
    %146 = vector.multi_reduction <add>, %145, %cst_57 [1] : vector<16x128xf32> to vector<16xf32>
    %147 = vector.shape_cast %146 : vector<16xf32> to vector<16x1xf32>
    %cst_58 = arith.constant 1.280000e+02 : f32
    %148 = vector.broadcast %cst_58 : f32 to vector<16x1xf32>
    %149 = arith.divf %147, %148 : vector<16x1xf32>
    %150 = vector.broadcast %142 : vector<16x1xf32> to vector<16x128xf32>
    %151 = arith.subf %134, %150 : vector<16x128xf32>
    %cst_59 = arith.constant 9.99999996E-13 : f32
    %152 = vector.broadcast %cst_59 : f32 to vector<16x1xf32>
    %153 = arith.addf %149, %152 : vector<16x1xf32>
    %154 = math.rsqrt %153 : vector<16x1xf32>
    %155 = vector.broadcast %154 : vector<16x1xf32> to vector<16x128xf32>
    %156 = arith.mulf %151, %155 : vector<16x128xf32>
    %157 = vector.broadcast %136 : vector<1x128xf32> to vector<16x128xf32>
    %158 = arith.mulf %156, %157 : vector<16x128xf32>
    %159 = vector.broadcast %138 : vector<1x128xf32> to vector<16x128xf32>
    %160 = arith.addf %158, %159 : vector<16x128xf32>
    %161 = arith.truncf %160 : vector<16x128xf32> to vector<16x128xbf16>
    %c0_60 = arith.constant 0 : index
    %c0_61 = arith.constant 0 : index
    %c0_62 = arith.constant 0 : index
    %162 = vector.load %arg10[%c0_60, %c0_61, %c0_62] : memref<2x128x256xbf16, #tpu.memory_space<vmem>>, vector<1x128x256xbf16>
    %163 = vector.shape_cast %162 : vector<1x128x256xbf16> to vector<128x256xbf16>
    %cst_63 = arith.constant dense<0.000000e+00> : vector<16x256xf32>
    %164 = tpu.matmul %161, %163, %cst_63 {dimension_numbers = #tpu.dot_dimension_numbers<[1], [0], [0], [1], [0, 0, 1, 1], [], []>} : vector<16x128xbf16>, vector<128x256xbf16>, vector<16x256xf32> -> vector<16x256xf32>
    %c0_64 = arith.constant 0 : index
    %c0_65 = arith.constant 0 : index
    %c0_66 = arith.constant 0 : index
    %165 = vector.load %arg11[%c0_64, %c0_65, %c0_66] : memref<2x1x256xf32, #tpu.memory_space<vmem>>, vector<1x1x256xf32>
    %166 = vector.shape_cast %165 : vector<1x1x256xf32> to vector<1x256xf32>
    %167 = vector.broadcast %166 : vector<1x256xf32> to vector<16x256xf32>
    %168 = arith.addf %164, %167 : vector<16x256xf32>
    %cst_67 = arith.constant 5.000000e-01 : f32
    %169 = vector.broadcast %cst_67 : f32 to vector<16x256xf32>
    %170 = arith.mulf %169, %168 : vector<16x256xf32>
    %cst_68 = arith.constant 4.471500e-02 : f32
    %171 = vector.broadcast %cst_68 : f32 to vector<16x256xf32>
    %172 = arith.mulf %171, %168 : vector<16x256xf32>
    %173 = arith.mulf %172, %168 : vector<16x256xf32>
    %174 = arith.mulf %173, %168 : vector<16x256xf32>
    %175 = arith.addf %168, %174 : vector<16x256xf32>
    %cst_69 = arith.constant 0.797884583 : f32
    %176 = vector.broadcast %cst_69 : f32 to vector<16x256xf32>
    %177 = arith.mulf %176, %175 : vector<16x256xf32>
    %178 = math.tanh %177 : vector<16x256xf32>
    %cst_70 = arith.constant 1.000000e+00 : f32
    %179 = vector.broadcast %cst_70 : f32 to vector<16x256xf32>
    %180 = arith.addf %179, %178 : vector<16x256xf32>
    %181 = arith.mulf %170, %180 : vector<16x256xf32>
    %182 = arith.truncf %181 : vector<16x256xf32> to vector<16x256xbf16>
    %c0_71 = arith.constant 0 : index
    %c0_72 = arith.constant 0 : index
    %c0_73 = arith.constant 0 : index
    %183 = vector.load %arg12[%c0_71, %c0_72, %c0_73] : memref<2x256x128xbf16, #tpu.memory_space<vmem>>, vector<1x256x128xbf16>
    %184 = vector.shape_cast %183 : vector<1x256x128xbf16> to vector<256x128xbf16>
    %cst_74 = arith.constant dense<0.000000e+00> : vector<16x128xf32>
    %185 = tpu.matmul %182, %184, %cst_74 {dimension_numbers = #tpu.dot_dimension_numbers<[1], [0], [0], [1], [0, 0, 1, 1], [], []>} : vector<16x256xbf16>, vector<256x128xbf16>, vector<16x128xf32> -> vector<16x128xf32>
    %c0_75 = arith.constant 0 : index
    %c0_76 = arith.constant 0 : index
    %c0_77 = arith.constant 0 : index
    %186 = vector.load %arg13[%c0_75, %c0_76, %c0_77] : memref<2x1x128xf32, #tpu.memory_space<vmem>>, vector<1x1x128xf32>
    %187 = vector.shape_cast %186 : vector<1x1x128xf32> to vector<1x128xf32>
    %188 = vector.broadcast %187 : vector<1x128xf32> to vector<16x128xf32>
    %189 = arith.addf %185, %188 : vector<16x128xf32>
    %190 = arith.addf %189, %160 : vector<16x128xf32>
    %c0_78 = arith.constant 0 : index
    %c0_79 = arith.constant 0 : index
    %c0_80 = arith.constant 0 : index
    %191 = vector.load %arg14[%c0_78, %c0_79, %c0_80] : memref<2x1x128xf32, #tpu.memory_space<vmem>>, vector<1x1x128xf32>
    %192 = vector.shape_cast %191 : vector<1x1x128xf32> to vector<1x128xf32>
    %c0_81 = arith.constant 0 : index
    %c0_82 = arith.constant 0 : index
    %c0_83 = arith.constant 0 : index
    %193 = vector.load %arg15[%c0_81, %c0_82, %c0_83] : memref<2x1x128xf32, #tpu.memory_space<vmem>>, vector<1x1x128xf32>
    %194 = vector.shape_cast %193 : vector<1x1x128xf32> to vector<1x128xf32>
    %cst_84 = arith.constant dense<0.000000e+00> : vector<16xf32>
    %195 = vector.multi_reduction <add>, %190, %cst_84 [1] : vector<16x128xf32> to vector<16xf32>
    %196 = vector.shape_cast %195 : vector<16xf32> to vector<16x1xf32>
    %cst_85 = arith.constant 1.280000e+02 : f32
    %197 = vector.broadcast %cst_85 : f32 to vector<16x1xf32>
    %198 = arith.divf %196, %197 : vector<16x1xf32>
    %199 = vector.broadcast %198 : vector<16x1xf32> to vector<16x128xf32>
    %200 = arith.subf %190, %199 : vector<16x128xf32>
    %201 = arith.mulf %200, %200 : vector<16x128xf32>
    %cst_86 = arith.constant dense<0.000000e+00> : vector<16xf32>
    %202 = vector.multi_reduction <add>, %201, %cst_86 [1] : vector<16x128xf32> to vector<16xf32>
    %203 = vector.shape_cast %202 : vector<16xf32> to vector<16x1xf32>
    %cst_87 = arith.constant 1.280000e+02 : f32
    %204 = vector.broadcast %cst_87 : f32 to vector<16x1xf32>
    %205 = arith.divf %203, %204 : vector<16x1xf32>
    %206 = vector.broadcast %198 : vector<16x1xf32> to vector<16x128xf32>
    %207 = arith.subf %190, %206 : vector<16x128xf32>
    %cst_88 = arith.constant 9.99999996E-13 : f32
    %208 = vector.broadcast %cst_88 : f32 to vector<16x1xf32>
    %209 = arith.addf %205, %208 : vector<16x1xf32>
    %210 = math.rsqrt %209 : vector<16x1xf32>
    %211 = vector.broadcast %210 : vector<16x1xf32> to vector<16x128xf32>
    %212 = arith.mulf %207, %211 : vector<16x128xf32>
    %213 = vector.broadcast %192 : vector<1x128xf32> to vector<16x128xf32>
    %214 = arith.mulf %212, %213 : vector<16x128xf32>
    %215 = vector.broadcast %194 : vector<1x128xf32> to vector<16x128xf32>
    %216 = arith.addf %214, %215 : vector<16x128xf32>
    %217 = arith.truncf %216 : vector<16x128xf32> to vector<16x128xbf16>
    %c1 = arith.constant 1 : index
    %c0_89 = arith.constant 0 : index
    %c0_90 = arith.constant 0 : index
    %218 = vector.load %arg4[%c1, %c0_89, %c0_90] : memref<2x128x384xbf16, #tpu.memory_space<vmem>>, vector<1x128x384xbf16>
    %219 = vector.shape_cast %218 : vector<1x128x384xbf16> to vector<128x384xbf16>
    %cst_91 = arith.constant dense<0.000000e+00> : vector<16x384xf32>
    %220 = tpu.matmul %217, %219, %cst_91 {dimension_numbers = #tpu.dot_dimension_numbers<[1], [0], [0], [1], [0, 0, 1, 1], [], []>} : vector<16x128xbf16>, vector<128x384xbf16>, vector<16x384xf32> -> vector<16x384xf32>
    %c1_92 = arith.constant 1 : index
    %c0_93 = arith.constant 0 : index
    %c0_94 = arith.constant 0 : index
    %221 = vector.load %arg5[%c1_92, %c0_93, %c0_94] : memref<2x1x384xf32, #tpu.memory_space<vmem>>, vector<1x1x384xf32>
    %222 = vector.shape_cast %221 : vector<1x1x384xf32> to vector<1x384xf32>
    %223 = vector.broadcast %222 : vector<1x384xf32> to vector<16x384xf32>
    %224 = arith.addf %220, %223 : vector<16x384xf32>
    %225 = arith.truncf %224 : vector<16x384xf32> to vector<16x384xbf16>
    %c1_95 = arith.constant 1 : index
    %c0_96 = arith.constant 0 : index
    %c0_97 = arith.constant 0 : index
    %226 = vector.load %arg6[%c1_95, %c0_96, %c0_97] : memref<2x128x128xbf16, #tpu.memory_space<vmem>>, vector<1x128x128xbf16>
    %227 = vector.shape_cast %226 : vector<1x128x128xbf16> to vector<128x128xbf16>
    %cst_98 = arith.constant 0.000000e+00 : f32
    %228 = vector.broadcast %cst_98 : f32 to vector<16x128xf32>
    %229 = vector.extract_strided_slice %225 {offsets = [0, 0], sizes = [16, 32], strides = [1, 1]} : vector<16x384xbf16> to vector<16x32xbf16>
    %230 = vector.extract_strided_slice %225 {offsets = [0, 128], sizes = [16, 32], strides = [1, 1]} : vector<16x384xbf16> to vector<16x32xbf16>
    %231 = vector.extract_strided_slice %225 {offsets = [0, 256], sizes = [16, 32], strides = [1, 1]} : vector<16x384xbf16> to vector<16x32xbf16>
    %cst_99 = arith.constant dense<0.000000e+00> : vector<16x16xf32>
    %232 = tpu.matmul %229, %230, %cst_99 {dimension_numbers = #tpu.dot_dimension_numbers<[1], [1], [0], [0], [0, 0, 1, 0], [], []>} : vector<16x32xbf16>, vector<16x32xbf16>, vector<16x16xf32> -> vector<16x16xf32>
    %cst_100 = arith.constant 0.176776692 : f32
    %233 = vector.broadcast %cst_100 : f32 to vector<16x16xf32>
    %234 = arith.mulf %232, %233 : vector<16x16xf32>
    %235 = arith.addf %234, %25 : vector<16x16xf32>
    %cst_101 = arith.constant dense<0xFF800000> : vector<16xf32>
    %236 = vector.multi_reduction <maximumf>, %235, %cst_101 [1] : vector<16x16xf32> to vector<16xf32>
    %237 = vector.shape_cast %236 : vector<16xf32> to vector<16x1xf32>
    %238 = vector.broadcast %237 : vector<16x1xf32> to vector<16x16xf32>
    %239 = arith.subf %235, %238 : vector<16x16xf32>
    %240 = math.exp %239 : vector<16x16xf32>
    %cst_102 = arith.constant dense<0.000000e+00> : vector<16xf32>
    %241 = vector.multi_reduction <add>, %240, %cst_102 [1] : vector<16x16xf32> to vector<16xf32>
    %242 = vector.shape_cast %241 : vector<16xf32> to vector<16x1xf32>
    %243 = tpu.reciprocal %242 {approx = true} : vector<16x1xf32> -> vector<16x1xf32>
    %244 = vector.broadcast %243 : vector<16x1xf32> to vector<16x16xf32>
    %245 = arith.mulf %240, %244 : vector<16x16xf32>
    %246 = arith.truncf %245 : vector<16x16xf32> to vector<16x16xbf16>
    %cst_103 = arith.constant dense<0.000000e+00> : vector<16x32xf32>
    %247 = tpu.matmul %246, %231, %cst_103 {dimension_numbers = #tpu.dot_dimension_numbers<[1], [0], [0], [1], [0, 0, 1, 1], [], []>} : vector<16x16xbf16>, vector<16x32xbf16>, vector<16x32xf32> -> vector<16x32xf32>
    %248 = arith.truncf %247 : vector<16x32xf32> to vector<16x32xbf16>
    %249 = vector.extract_strided_slice %227 {offsets = [0, 0], sizes = [32, 128], strides = [1, 1]} : vector<128x128xbf16> to vector<32x128xbf16>
    %cst_104 = arith.constant dense<0.000000e+00> : vector<16x128xf32>
    %250 = tpu.matmul %248, %249, %cst_104 {dimension_numbers = #tpu.dot_dimension_numbers<[1], [0], [0], [1], [0, 0, 1, 1], [], []>} : vector<16x32xbf16>, vector<32x128xbf16>, vector<16x128xf32> -> vector<16x128xf32>
    %251 = arith.addf %228, %250 : vector<16x128xf32>
    %252 = vector.extract_strided_slice %225 {offsets = [0, 32], sizes = [16, 32], strides = [1, 1]} : vector<16x384xbf16> to vector<16x32xbf16>
    %253 = vector.extract_strided_slice %225 {offsets = [0, 160], sizes = [16, 32], strides = [1, 1]} : vector<16x384xbf16> to vector<16x32xbf16>
    %254 = vector.extract_strided_slice %225 {offsets = [0, 288], sizes = [16, 32], strides = [1, 1]} : vector<16x384xbf16> to vector<16x32xbf16>
    %cst_105 = arith.constant dense<0.000000e+00> : vector<16x16xf32>
    %255 = tpu.matmul %252, %253, %cst_105 {dimension_numbers = #tpu.dot_dimension_numbers<[1], [1], [0], [0], [0, 0, 1, 0], [], []>} : vector<16x32xbf16>, vector<16x32xbf16>, vector<16x16xf32> -> vector<16x16xf32>
    %cst_106 = arith.constant 0.176776692 : f32
    %256 = vector.broadcast %cst_106 : f32 to vector<16x16xf32>
    %257 = arith.mulf %255, %256 : vector<16x16xf32>
    %258 = arith.addf %257, %25 : vector<16x16xf32>
    %cst_107 = arith.constant dense<0xFF800000> : vector<16xf32>
    %259 = vector.multi_reduction <maximumf>, %258, %cst_107 [1] : vector<16x16xf32> to vector<16xf32>
    %260 = vector.shape_cast %259 : vector<16xf32> to vector<16x1xf32>
    %261 = vector.broadcast %260 : vector<16x1xf32> to vector<16x16xf32>
    %262 = arith.subf %258, %261 : vector<16x16xf32>
    %263 = math.exp %262 : vector<16x16xf32>
    %cst_108 = arith.constant dense<0.000000e+00> : vector<16xf32>
    %264 = vector.multi_reduction <add>, %263, %cst_108 [1] : vector<16x16xf32> to vector<16xf32>
    %265 = vector.shape_cast %264 : vector<16xf32> to vector<16x1xf32>
    %266 = tpu.reciprocal %265 {approx = true} : vector<16x1xf32> -> vector<16x1xf32>
    %267 = vector.broadcast %266 : vector<16x1xf32> to vector<16x16xf32>
    %268 = arith.mulf %263, %267 : vector<16x16xf32>
    %269 = arith.truncf %268 : vector<16x16xf32> to vector<16x16xbf16>
    %cst_109 = arith.constant dense<0.000000e+00> : vector<16x32xf32>
    %270 = tpu.matmul %269, %254, %cst_109 {dimension_numbers = #tpu.dot_dimension_numbers<[1], [0], [0], [1], [0, 0, 1, 1], [], []>} : vector<16x16xbf16>, vector<16x32xbf16>, vector<16x32xf32> -> vector<16x32xf32>
    %271 = arith.truncf %270 : vector<16x32xf32> to vector<16x32xbf16>
    %272 = vector.extract_strided_slice %227 {offsets = [32, 0], sizes = [32, 128], strides = [1, 1]} : vector<128x128xbf16> to vector<32x128xbf16>
    %cst_110 = arith.constant dense<0.000000e+00> : vector<16x128xf32>
    %273 = tpu.matmul %271, %272, %cst_110 {dimension_numbers = #tpu.dot_dimension_numbers<[1], [0], [0], [1], [0, 0, 1, 1], [], []>} : vector<16x32xbf16>, vector<32x128xbf16>, vector<16x128xf32> -> vector<16x128xf32>
    %274 = arith.addf %251, %273 : vector<16x128xf32>
    %275 = vector.extract_strided_slice %225 {offsets = [0, 64], sizes = [16, 32], strides = [1, 1]} : vector<16x384xbf16> to vector<16x32xbf16>
    %276 = vector.extract_strided_slice %225 {offsets = [0, 192], sizes = [16, 32], strides = [1, 1]} : vector<16x384xbf16> to vector<16x32xbf16>
    %277 = vector.extract_strided_slice %225 {offsets = [0, 320], sizes = [16, 32], strides = [1, 1]} : vector<16x384xbf16> to vector<16x32xbf16>
    %cst_111 = arith.constant dense<0.000000e+00> : vector<16x16xf32>
    %278 = tpu.matmul %275, %276, %cst_111 {dimension_numbers = #tpu.dot_dimension_numbers<[1], [1], [0], [0], [0, 0, 1, 0], [], []>} : vector<16x32xbf16>, vector<16x32xbf16>, vector<16x16xf32> -> vector<16x16xf32>
    %cst_112 = arith.constant 0.176776692 : f32
    %279 = vector.broadcast %cst_112 : f32 to vector<16x16xf32>
    %280 = arith.mulf %278, %279 : vector<16x16xf32>
    %281 = arith.addf %280, %25 : vector<16x16xf32>
    %cst_113 = arith.constant dense<0xFF800000> : vector<16xf32>
    %282 = vector.multi_reduction <maximumf>, %281, %cst_113 [1] : vector<16x16xf32> to vector<16xf32>
    %283 = vector.shape_cast %282 : vector<16xf32> to vector<16x1xf32>
    %284 = vector.broadcast %283 : vector<16x1xf32> to vector<16x16xf32>
    %285 = arith.subf %281, %284 : vector<16x16xf32>
    %286 = math.exp %285 : vector<16x16xf32>
    %cst_114 = arith.constant dense<0.000000e+00> : vector<16xf32>
    %287 = vector.multi_reduction <add>, %286, %cst_114 [1] : vector<16x16xf32> to vector<16xf32>
    %288 = vector.shape_cast %287 : vector<16xf32> to vector<16x1xf32>
    %289 = tpu.reciprocal %288 {approx = true} : vector<16x1xf32> -> vector<16x1xf32>
    %290 = vector.broadcast %289 : vector<16x1xf32> to vector<16x16xf32>
    %291 = arith.mulf %286, %290 : vector<16x16xf32>
    %292 = arith.truncf %291 : vector<16x16xf32> to vector<16x16xbf16>
    %cst_115 = arith.constant dense<0.000000e+00> : vector<16x32xf32>
    %293 = tpu.matmul %292, %277, %cst_115 {dimension_numbers = #tpu.dot_dimension_numbers<[1], [0], [0], [1], [0, 0, 1, 1], [], []>} : vector<16x16xbf16>, vector<16x32xbf16>, vector<16x32xf32> -> vector<16x32xf32>
    %294 = arith.truncf %293 : vector<16x32xf32> to vector<16x32xbf16>
    %295 = vector.extract_strided_slice %227 {offsets = [64, 0], sizes = [32, 128], strides = [1, 1]} : vector<128x128xbf16> to vector<32x128xbf16>
    %cst_116 = arith.constant dense<0.000000e+00> : vector<16x128xf32>
    %296 = tpu.matmul %294, %295, %cst_116 {dimension_numbers = #tpu.dot_dimension_numbers<[1], [0], [0], [1], [0, 0, 1, 1], [], []>} : vector<16x32xbf16>, vector<32x128xbf16>, vector<16x128xf32> -> vector<16x128xf32>
    %297 = arith.addf %274, %296 : vector<16x128xf32>
    %298 = vector.extract_strided_slice %225 {offsets = [0, 96], sizes = [16, 32], strides = [1, 1]} : vector<16x384xbf16> to vector<16x32xbf16>
    %299 = vector.extract_strided_slice %225 {offsets = [0, 224], sizes = [16, 32], strides = [1, 1]} : vector<16x384xbf16> to vector<16x32xbf16>
    %300 = vector.extract_strided_slice %225 {offsets = [0, 352], sizes = [16, 32], strides = [1, 1]} : vector<16x384xbf16> to vector<16x32xbf16>
    %cst_117 = arith.constant dense<0.000000e+00> : vector<16x16xf32>
    %301 = tpu.matmul %298, %299, %cst_117 {dimension_numbers = #tpu.dot_dimension_numbers<[1], [1], [0], [0], [0, 0, 1, 0], [], []>} : vector<16x32xbf16>, vector<16x32xbf16>, vector<16x16xf32> -> vector<16x16xf32>
    %cst_118 = arith.constant 0.176776692 : f32
    %302 = vector.broadcast %cst_118 : f32 to vector<16x16xf32>
    %303 = arith.mulf %301, %302 : vector<16x16xf32>
    %304 = arith.addf %303, %25 : vector<16x16xf32>
    %cst_119 = arith.constant dense<0xFF800000> : vector<16xf32>
    %305 = vector.multi_reduction <maximumf>, %304, %cst_119 [1] : vector<16x16xf32> to vector<16xf32>
    %306 = vector.shape_cast %305 : vector<16xf32> to vector<16x1xf32>
    %307 = vector.broadcast %306 : vector<16x1xf32> to vector<16x16xf32>
    %308 = arith.subf %304, %307 : vector<16x16xf32>
    %309 = math.exp %308 : vector<16x16xf32>
    %cst_120 = arith.constant dense<0.000000e+00> : vector<16xf32>
    %310 = vector.multi_reduction <add>, %309, %cst_120 [1] : vector<16x16xf32> to vector<16xf32>
    %311 = vector.shape_cast %310 : vector<16xf32> to vector<16x1xf32>
    %312 = tpu.reciprocal %311 {approx = true} : vector<16x1xf32> -> vector<16x1xf32>
    %313 = vector.broadcast %312 : vector<16x1xf32> to vector<16x16xf32>
    %314 = arith.mulf %309, %313 : vector<16x16xf32>
    %315 = arith.truncf %314 : vector<16x16xf32> to vector<16x16xbf16>
    %cst_121 = arith.constant dense<0.000000e+00> : vector<16x32xf32>
    %316 = tpu.matmul %315, %300, %cst_121 {dimension_numbers = #tpu.dot_dimension_numbers<[1], [0], [0], [1], [0, 0, 1, 1], [], []>} : vector<16x16xbf16>, vector<16x32xbf16>, vector<16x32xf32> -> vector<16x32xf32>
    %317 = arith.truncf %316 : vector<16x32xf32> to vector<16x32xbf16>
    %318 = vector.extract_strided_slice %227 {offsets = [96, 0], sizes = [32, 128], strides = [1, 1]} : vector<128x128xbf16> to vector<32x128xbf16>
    %cst_122 = arith.constant dense<0.000000e+00> : vector<16x128xf32>
    %319 = tpu.matmul %317, %318, %cst_122 {dimension_numbers = #tpu.dot_dimension_numbers<[1], [0], [0], [1], [0, 0, 1, 1], [], []>} : vector<16x32xbf16>, vector<32x128xbf16>, vector<16x128xf32> -> vector<16x128xf32>
    %320 = arith.addf %297, %319 : vector<16x128xf32>
    %c1_123 = arith.constant 1 : index
    %c0_124 = arith.constant 0 : index
    %c0_125 = arith.constant 0 : index
    %321 = vector.load %arg7[%c1_123, %c0_124, %c0_125] : memref<2x1x128xf32, #tpu.memory_space<vmem>>, vector<1x1x128xf32>
    %322 = vector.shape_cast %321 : vector<1x1x128xf32> to vector<1x128xf32>
    %323 = vector.broadcast %322 : vector<1x128xf32> to vector<16x128xf32>
    %324 = arith.addf %320, %323 : vector<16x128xf32>
    %325 = arith.addf %324, %216 : vector<16x128xf32>
    %c1_126 = arith.constant 1 : index
    %c0_127 = arith.constant 0 : index
    %c0_128 = arith.constant 0 : index
    %326 = vector.load %arg8[%c1_126, %c0_127, %c0_128] : memref<2x1x128xf32, #tpu.memory_space<vmem>>, vector<1x1x128xf32>
    %327 = vector.shape_cast %326 : vector<1x1x128xf32> to vector<1x128xf32>
    %c1_129 = arith.constant 1 : index
    %c0_130 = arith.constant 0 : index
    %c0_131 = arith.constant 0 : index
    %328 = vector.load %arg9[%c1_129, %c0_130, %c0_131] : memref<2x1x128xf32, #tpu.memory_space<vmem>>, vector<1x1x128xf32>
    %329 = vector.shape_cast %328 : vector<1x1x128xf32> to vector<1x128xf32>
    %cst_132 = arith.constant dense<0.000000e+00> : vector<16xf32>
    %330 = vector.multi_reduction <add>, %325, %cst_132 [1] : vector<16x128xf32> to vector<16xf32>
    %331 = vector.shape_cast %330 : vector<16xf32> to vector<16x1xf32>
    %cst_133 = arith.constant 1.280000e+02 : f32
    %332 = vector.broadcast %cst_133 : f32 to vector<16x1xf32>
    %333 = arith.divf %331, %332 : vector<16x1xf32>
    %334 = vector.broadcast %333 : vector<16x1xf32> to vector<16x128xf32>
    %335 = arith.subf %325, %334 : vector<16x128xf32>
    %336 = arith.mulf %335, %335 : vector<16x128xf32>
    %cst_134 = arith.constant dense<0.000000e+00> : vector<16xf32>
    %337 = vector.multi_reduction <add>, %336, %cst_134 [1] : vector<16x128xf32> to vector<16xf32>
    %338 = vector.shape_cast %337 : vector<16xf32> to vector<16x1xf32>
    %cst_135 = arith.constant 1.280000e+02 : f32
    %339 = vector.broadcast %cst_135 : f32 to vector<16x1xf32>
    %340 = arith.divf %338, %339 : vector<16x1xf32>
    %341 = vector.broadcast %333 : vector<16x1xf32> to vector<16x128xf32>
    %342 = arith.subf %325, %341 : vector<16x128xf32>
    %cst_136 = arith.constant 9.99999996E-13 : f32
    %343 = vector.broadcast %cst_136 : f32 to vector<16x1xf32>
    %344 = arith.addf %340, %343 : vector<16x1xf32>
    %345 = math.rsqrt %344 : vector<16x1xf32>
    %346 = vector.broadcast %345 : vector<16x1xf32> to vector<16x128xf32>
    %347 = arith.mulf %342, %346 : vector<16x128xf32>
    %348 = vector.broadcast %327 : vector<1x128xf32> to vector<16x128xf32>
    %349 = arith.mulf %347, %348 : vector<16x128xf32>
    %350 = vector.broadcast %329 : vector<1x128xf32> to vector<16x128xf32>
    %351 = arith.addf %349, %350 : vector<16x128xf32>
    %352 = arith.truncf %351 : vector<16x128xf32> to vector<16x128xbf16>
    %c1_137 = arith.constant 1 : index
    %c0_138 = arith.constant 0 : index
    %c0_139 = arith.constant 0 : index
    %353 = vector.load %arg10[%c1_137, %c0_138, %c0_139] : memref<2x128x256xbf16, #tpu.memory_space<vmem>>, vector<1x128x256xbf16>
    %354 = vector.shape_cast %353 : vector<1x128x256xbf16> to vector<128x256xbf16>
    %cst_140 = arith.constant dense<0.000000e+00> : vector<16x256xf32>
    %355 = tpu.matmul %352, %354, %cst_140 {dimension_numbers = #tpu.dot_dimension_numbers<[1], [0], [0], [1], [0, 0, 1, 1], [], []>} : vector<16x128xbf16>, vector<128x256xbf16>, vector<16x256xf32> -> vector<16x256xf32>
    %c1_141 = arith.constant 1 : index
    %c0_142 = arith.constant 0 : index
    %c0_143 = arith.constant 0 : index
    %356 = vector.load %arg11[%c1_141, %c0_142, %c0_143] : memref<2x1x256xf32, #tpu.memory_space<vmem>>, vector<1x1x256xf32>
    %357 = vector.shape_cast %356 : vector<1x1x256xf32> to vector<1x256xf32>
    %358 = vector.broadcast %357 : vector<1x256xf32> to vector<16x256xf32>
    %359 = arith.addf %355, %358 : vector<16x256xf32>
    %cst_144 = arith.constant 5.000000e-01 : f32
    %360 = vector.broadcast %cst_144 : f32 to vector<16x256xf32>
    %361 = arith.mulf %360, %359 : vector<16x256xf32>
    %cst_145 = arith.constant 4.471500e-02 : f32
    %362 = vector.broadcast %cst_145 : f32 to vector<16x256xf32>
    %363 = arith.mulf %362, %359 : vector<16x256xf32>
    %364 = arith.mulf %363, %359 : vector<16x256xf32>
    %365 = arith.mulf %364, %359 : vector<16x256xf32>
    %366 = arith.addf %359, %365 : vector<16x256xf32>
    %cst_146 = arith.constant 0.797884583 : f32
    %367 = vector.broadcast %cst_146 : f32 to vector<16x256xf32>
    %368 = arith.mulf %367, %366 : vector<16x256xf32>
    %369 = math.tanh %368 : vector<16x256xf32>
    %cst_147 = arith.constant 1.000000e+00 : f32
    %370 = vector.broadcast %cst_147 : f32 to vector<16x256xf32>
    %371 = arith.addf %370, %369 : vector<16x256xf32>
    %372 = arith.mulf %361, %371 : vector<16x256xf32>
    %373 = arith.truncf %372 : vector<16x256xf32> to vector<16x256xbf16>
    %c1_148 = arith.constant 1 : index
    %c0_149 = arith.constant 0 : index
    %c0_150 = arith.constant 0 : index
    %374 = vector.load %arg12[%c1_148, %c0_149, %c0_150] : memref<2x256x128xbf16, #tpu.memory_space<vmem>>, vector<1x256x128xbf16>
    %375 = vector.shape_cast %374 : vector<1x256x128xbf16> to vector<256x128xbf16>
    %cst_151 = arith.constant dense<0.000000e+00> : vector<16x128xf32>
    %376 = tpu.matmul %373, %375, %cst_151 {dimension_numbers = #tpu.dot_dimension_numbers<[1], [0], [0], [1], [0, 0, 1, 1], [], []>} : vector<16x256xbf16>, vector<256x128xbf16>, vector<16x128xf32> -> vector<16x128xf32>
    %c1_152 = arith.constant 1 : index
    %c0_153 = arith.constant 0 : index
    %c0_154 = arith.constant 0 : index
    %377 = vector.load %arg13[%c1_152, %c0_153, %c0_154] : memref<2x1x128xf32, #tpu.memory_space<vmem>>, vector<1x1x128xf32>
    %378 = vector.shape_cast %377 : vector<1x1x128xf32> to vector<1x128xf32>
    %379 = vector.broadcast %378 : vector<1x128xf32> to vector<16x128xf32>
    %380 = arith.addf %376, %379 : vector<16x128xf32>
    %381 = arith.addf %380, %351 : vector<16x128xf32>
    %c1_155 = arith.constant 1 : index
    %c0_156 = arith.constant 0 : index
    %c0_157 = arith.constant 0 : index
    %382 = vector.load %arg14[%c1_155, %c0_156, %c0_157] : memref<2x1x128xf32, #tpu.memory_space<vmem>>, vector<1x1x128xf32>
    %383 = vector.shape_cast %382 : vector<1x1x128xf32> to vector<1x128xf32>
    %c1_158 = arith.constant 1 : index
    %c0_159 = arith.constant 0 : index
    %c0_160 = arith.constant 0 : index
    %384 = vector.load %arg15[%c1_158, %c0_159, %c0_160] : memref<2x1x128xf32, #tpu.memory_space<vmem>>, vector<1x1x128xf32>
    %385 = vector.shape_cast %384 : vector<1x1x128xf32> to vector<1x128xf32>
    %cst_161 = arith.constant dense<0.000000e+00> : vector<16xf32>
    %386 = vector.multi_reduction <add>, %381, %cst_161 [1] : vector<16x128xf32> to vector<16xf32>
    %387 = vector.shape_cast %386 : vector<16xf32> to vector<16x1xf32>
    %cst_162 = arith.constant 1.280000e+02 : f32
    %388 = vector.broadcast %cst_162 : f32 to vector<16x1xf32>
    %389 = arith.divf %387, %388 : vector<16x1xf32>
    %390 = vector.broadcast %389 : vector<16x1xf32> to vector<16x128xf32>
    %391 = arith.subf %381, %390 : vector<16x128xf32>
    %392 = arith.mulf %391, %391 : vector<16x128xf32>
    %cst_163 = arith.constant dense<0.000000e+00> : vector<16xf32>
    %393 = vector.multi_reduction <add>, %392, %cst_163 [1] : vector<16x128xf32> to vector<16xf32>
    %394 = vector.shape_cast %393 : vector<16xf32> to vector<16x1xf32>
    %cst_164 = arith.constant 1.280000e+02 : f32
    %395 = vector.broadcast %cst_164 : f32 to vector<16x1xf32>
    %396 = arith.divf %394, %395 : vector<16x1xf32>
    %397 = vector.broadcast %389 : vector<16x1xf32> to vector<16x128xf32>
    %398 = arith.subf %381, %397 : vector<16x128xf32>
    %cst_165 = arith.constant 9.99999996E-13 : f32
    %399 = vector.broadcast %cst_165 : f32 to vector<16x1xf32>
    %400 = arith.addf %396, %399 : vector<16x1xf32>
    %401 = math.rsqrt %400 : vector<16x1xf32>
    %402 = vector.broadcast %401 : vector<16x1xf32> to vector<16x128xf32>
    %403 = arith.mulf %398, %402 : vector<16x128xf32>
    %404 = vector.broadcast %383 : vector<1x128xf32> to vector<16x128xf32>
    %405 = arith.mulf %403, %404 : vector<16x128xf32>
    %406 = vector.broadcast %385 : vector<1x128xf32> to vector<16x128xf32>
    %407 = arith.addf %405, %406 : vector<16x128xf32>
    %408 = vector.extract_strided_slice %407 {offsets = [0, 0], sizes = [1, 128], strides = [1, 1]} : vector<16x128xf32> to vector<1x128xf32>
    %409 = vector.extract_strided_slice %407 {offsets = [8, 0], sizes = [1, 128], strides = [1, 1]} : vector<16x128xf32> to vector<1x128xf32>
    %410 = tpu.concatenate %408, %409 in 0 : vector<1x128xf32>, vector<1x128xf32> -> vector<2x128xf32>
    %411 = arith.truncf %410 : vector<2x128xf32> to vector<2x128xbf16>
    %c0_166 = arith.constant 0 : index
    %c0_167 = arith.constant 0 : index
    %412 = vector.load %arg16[%c0_166, %c0_167] : memref<128x128xbf16, #tpu.memory_space<vmem>>, vector<128x128xbf16>
    %cst_168 = arith.constant dense<0.000000e+00> : vector<2x128xf32>
    %413 = tpu.matmul %411, %412, %cst_168 {dimension_numbers = #tpu.dot_dimension_numbers<[1], [0], [0], [1], [0, 0, 1, 1], [], []>} : vector<2x128xbf16>, vector<128x128xbf16>, vector<2x128xf32> -> vector<2x128xf32>
    %c0_169 = arith.constant 0 : index
    %c0_170 = arith.constant 0 : index
    %414 = vector.load %arg17[%c0_169, %c0_170] : memref<1x128xf32, #tpu.memory_space<vmem>>, vector<1x128xf32>
    %415 = vector.broadcast %414 : vector<1x128xf32> to vector<2x128xf32>
    %416 = arith.addf %413, %415 : vector<2x128xf32>
    %417 = math.tanh %416 : vector<2x128xf32>
    %418 = arith.truncf %417 : vector<2x128xf32> to vector<2x128xbf16>
    %c0_171 = arith.constant 0 : index
    %c0_172 = arith.constant 0 : index
    %419 = vector.load %arg18[%c0_171, %c0_172] : memref<128x4xbf16, #tpu.memory_space<vmem>>, vector<128x4xbf16>
    %cst_173 = arith.constant dense<0.000000e+00> : vector<2x4xf32>
    %420 = tpu.matmul %418, %419, %cst_173 {dimension_numbers = #tpu.dot_dimension_numbers<[1], [0], [0], [1], [0, 0, 1, 1], [], []>} : vector<2x128xbf16>, vector<128x4xbf16>, vector<2x4xf32> -> vector<2x4xf32>
    %c0_174 = arith.constant 0 : index
    %c0_175 = arith.constant 0 : index
    %421 = vector.load %arg19[%c0_174, %c0_175] : memref<1x4xf32, #tpu.memory_space<vmem>>, vector<1x4xf32>
    %422 = vector.broadcast %421 : vector<1x4xf32> to vector<2x4xf32>
    %423 = arith.addf %420, %422 : vector<2x4xf32>
    %c0_176 = arith.constant 0 : index
    %c0_177 = arith.constant 0 : index
    %424 = vector.load %arg20[%c0_176, %c0_177] : memref<2x4xf32, #tpu.memory_space<vmem>>, vector<2x4xf32>
    tpu.vector_store %arg20[%c0_176, %c0_177], %423 {strides = array<i32>} : memref<2x4xf32, #tpu.memory_space<vmem>>, vector<2x4xf32>,
    return
  }
}

</mosaic_0001>

<bundles_post_ra>
// kernel: bert_forward.1
= control target key start
LH: loop header
LB: loop body
LE: loop exit
PB: predicated region body
PF: predicated region fallthrough
CT: control target
= control target key end

     0   :  { %s5177_s0 = inlined_call_operand.vmem [shape: f32[16,128], index: 0, kind: input, shape index: {}]   ;;  %s5178_s1 = inlined_call_operand.vmem [shape: f32[16,16], index: 1, kind: input, shape index: {}]   ;;  %s5179_s2 = inlined_call_operand.vmem [shape: f32[1,128], index: 2, kind: input, shape index: {}]   ;;  %s5180_s3 = inlined_call_operand.hbm [shape: f32[1,128], index: 3, kind: input, shape index: {}]   ;;  %s5181_s4 = inlined_call_operand.hbm [shape: bf16[2,128,384], index: 4, kind: input, shape index: {}]   ;;  %s5182_s5 = inlined_call_operand.vmem [shape: f32[2,1,384], index: 5, kind: input, shape index: {}]   ;;  %s5183_s6 = inlined_call_operand.hbm [shape: bf16[2,128,128], index: 6, kind: input, shape index: {}]   ;;  %s5184_s7 = inlined_call_operand.vmem [shape: f32[2,1,128], index: 7, kind: input, shape index: {}]   ;;  %s5185_s8 = inlined_call_operand.vmem [shape: f32[2,1,128], index: 8, kind: input, shape index: {}]   ;;  %s5186_s9 = inlined_call_operand.vmem [shape: f32[2,1,128], index: 9, kind: input, shape index: {}]   ;;  %s5187_s10 = inlined_call_operand.vmem [shape: bf16[2,128,256], index: 10, kind: input, shape index: {}]   ;;  %s5188_s11 = inlined_call_operand.vmem [shape: f32[2,1,256], index: 11, kind: input, shape index: {}]   ;;  %s5189_s12 = inlined_call_operand.hbm [shape: bf16[2,256,128], index: 12, kind: input, shape index: {}]   ;;  %s5190_s13 = inlined_call_operand.vmem [shape: f32[2,1,128], index: 13, kind: input, shape index: {}]   ;;  %s5191_s14 = inlined_call_operand.vmem [shape: f32[2,1,128], index: 14, kind: input, shape index: {}]   ;;  %s5192_s15 = inlined_call_operand.hbm [shape: f32[2,1,128], index: 15, kind: input, shape index: {}]   ;;  %s5193_s16 = inlined_call_operand.vmem [shape: bf16[128,128], index: 16, kind: input, shape index: {}]   ;;  %s5194_s17 = inlined_call_operand.hbm [shape: f32[1,128], index: 17, kind: input, shape index: {}]   ;;  %s5195_s18 = inlined_call_operand.vmem [shape: bf16[128,4], index: 18, kind: input, shape index: {}]   ;;  %s5196_s19 = inlined_call_operand.hbm [shape: f32[1,4], index: 19, kind: input, shape index: {}]   ;;  %s5197_s20 = inlined_call_operand.hbm [shape: f32[2,4], index: 20, kind: output, shape index: {}]  }
   0x1   :  { %5200 = sst [smem:[#allocation20_spill]] %s5177_s0 }
   0x2   :  { %5201 = sst [smem:[#allocation21_spill]] %s5178_s1 }
   0x3   :  { %5202 = sst [smem:[#allocation22_spill]] %s5179_s2 }
   0x4   :  { %5203 = sst [smem:[#allocation23_spill]] %s5180_s3 }
   0x5   :  { %5204 = sst [smem:[#allocation24_spill]] %s5181_s4 }
   0x6   :  { %25 = vsyncpa [#allocation3], 0 }
   0x7   :  { %26 = vsyncpa [#allocation6], 0 }
   0x8   :  { %27 = vsyncpa [#allocation9], 0 }
   0x9   :  { %28 = vsyncpa [#allocation12], 0 }
   0xa   :  { %29 = vsyncpa [#allocation4], 0  ;;  %s4453_s1 = smov [#allocation5]  }
   0xb   :  { %s51_s22 = sshll.u32 %s4453_s1, 4  ;;  %s52_s22 = int_to_ptr.vmem [resolvable:$true] %s51_s22 }
   0xc   :  { %s4291_s23 = scalar_lea.vmem %s52_s22, 6144  ;;  %p4296_p1 = scmp.lt.s32.totalorder %s52_s22, %s52_s22 }
   0xd   :  { %p4292_p0 = scmp.ne.s32.totalorder %s52_s22, %s4291_s23  ;;  %p4297_p2 = scmp.lt.s32.totalorder %s4291_s23, %s4291_s23 }
   0xf   :  { %p4298_p3 = por %p4297_p2, %p4296_p1 }
  0x11   :  { %p4299_p4 = pnand %p4298_p3, %p4292_p0 }
  0x13   :  { %4302 = shalt.err (!%p4299_p4)
}
  0x14   :  { %s4454_s24 = smov 192   ;;  %s4455_s2 = smov 12  }
  0x15   :  { %s5205_s26 = sld [smem:[#allocation24_spill]]  ;;  %s4456_s27 = smov [#allocation8]  }
  0x16   :  { %s87_s28 = sshll.u32 %s4456_s27, 4  ;;  %s4457_s4 = smov [#allocation11]   ;;  %s88_s28 = int_to_ptr.vmem [resolvable:$true] %s87_s28 }
  0x17   :  { %s118_s29 = sshll.u32 %s4457_s4, 4  ;;  %s4311_s30 = scalar_lea.vmem %s88_s28, 4096  ;;  %s119_s29 = int_to_ptr.vmem [resolvable:$true] %s118_s29 }
  0x18   :  { %p4312_p5 = scmp.ne.s32.totalorder %s88_s28, %s4311_s30  ;;  %p4316_p6 = scmp.lt.s32.totalorder %s88_s28, %s88_s28 }
  0x19   :  { %p4317_p7 = scmp.lt.s32.totalorder %s4311_s30, %s4311_s30 }
  0x1b   :  { %57 = dma.hbm_to_vmem [thread:$0]  %s5205_s26, 6144, %s52_s22, [#allocation6], %s4454_s24, %s4454_s24, %s4455_s2  }
  0x1c   :  { %p4318_p8 = por %p4317_p7, %p4316_p6 }
  0x1e   :  { %p4319_p9 = pnand %p4318_p8, %p4312_p5 }
  0x20   :  { %4322 = shalt.err (!%p4319_p9)
}
  0x21   :  { %s4458_s0 = smov 64   ;;  %s4459_s21 = smov 4  }
  0x22   :  { %93 = dma.hbm_to_vmem [thread:$0]  %s5189_s12, 4096, %s88_s28, [#allocation9], %s4458_s0, %s4458_s0, %s4459_s21  }
  0x23   :  { %s4331_s22 = scalar_lea.vmem %s119_s29, 16  ;;  %s4335_s24 = scalar_lea.vmem %s119_s29, 32 }
  0x24   :  { %p4332_p10 = scmp.ne.s32.totalorder %s119_s29, %s4331_s22  ;;  %p4336_p11 = scmp.lt.s32.totalorder %s119_s29, %s119_s29 }
  0x25   :  { %p4337_p12 = scmp.lt.s32.totalorder %s4335_s24, %s4331_s22 }
  0x27   :  { %p4338_p13 = por %p4337_p12, %p4336_p11 }
  0x29   :  { %p4339_p0 = pnand %p4338_p13, %p4332_p10 }
  0x2b   :  { %4342 = shalt.err (!%p4339_p0)
}
  0x2c   :  { %121 = dma.hbm_to_vmem [thread:$0]  %s5194_s17, 16, %s119_s29, [#allocation12]  }
  0x2d   :  { %s4460_s3 = smov [#allocation2]   ;;  %s4461_s27 = smov [#allocation7]  }
  0x2e   :  { %s42_s26 = sshll.u32 %s4460_s3, 4  ;;  %s65_s4 = sshll.u32 %s4461_s27, 4  ;;  %s43_s26 = int_to_ptr.vmem [resolvable:$true] %s42_s26  ;;  %s66_s4 = int_to_ptr.vmem [resolvable:$true] %s65_s4 }
  0x2f   :  { %s4351_s30 = scalar_lea.vmem %s43_s26, 16  ;;  %s4355_s12 = scalar_lea.vmem %s43_s26, 32 }
  0x30   :  { %p4352_p1 = scmp.ne.s32.totalorder %s43_s26, %s4351_s30  ;;  %p4356_p2 = scmp.lt.s32.totalorder %s43_s26, %s43_s26 }
  0x31   :  { %p4357_p3 = scmp.lt.s32.totalorder %s4355_s12, %s4351_s30 }
  0x33   :  { %p4358_p4 = por %p4357_p3, %p4356_p2 }
  0x35   :  { %p4359_p5 = pnand %p4358_p4, %p4352_p1 }
  0x37   :  { %4362 = shalt.err (!%p4359_p5)
}
  0x38   :  { %s5206_s23 = sld [smem:[#allocation23_spill]]  ;;  %s4371_s22 = scalar_lea.vmem %s66_s4, 2048 }
  0x39   :  { %p4372_p6 = scmp.ne.s32.totalorder %s66_s4, %s4371_s22  ;;  %p4376_p7 = scmp.lt.s32.totalorder %s66_s4, %s66_s4 }
  0x3a   :  { %p4377_p8 = scmp.lt.s32.totalorder %s4371_s22, %s4371_s22 }
  0x3c   :  { %p4378_p9 = por %p4377_p8, %p4376_p7 }
  0x3e   :  { %45 = dma.hbm_to_vmem [thread:$0]  %s5206_s23, 16, %s43_s26, [#allocation3]  }
  0x3f   :  { %p4379_p10 = pnand %p4378_p9, %p4372_p6 }
  0x41   :  { %4382 = shalt.err (!%p4379_p10)
}
  0x42   :  { %71 = dma.hbm_to_vmem [thread:$0]  %s5183_s6, 2048, %s66_s4, [#allocation6], %s4458_s0, %s4458_s0, %s4459_s21  }
  0x43   :  { %s4462_s24 = smov [#allocation10]  }
  0x44   :  { %s103_s2 = sshll.u32 %s4462_s24, 4  ;;  %s104_s2 = int_to_ptr.vmem [resolvable:$true] %s103_s2 }
  0x45   :  { %s4391_s25 = scalar_lea.vmem %s104_s2, 32  ;;  %p4396_p12 = scmp.lt.s32.totalorder %s104_s2, %s104_s2 }
  0x46   :  { %p4392_p11 = scmp.ne.s32.totalorder %s104_s2, %s4391_s25  ;;  %p4397_p13 = scmp.lt.s32.totalorder %s4391_s25, %s4391_s25 }
  0x48   :  { %p4398_p0 = por %p4397_p13, %p4396_p12 }
  0x4a   :  { %p4399_p1 = pnand %p4398_p0, %p4392_p11 }
  0x4c   :  { %4402 = shalt.err (!%p4399_p1)
}
  0x4d   :  { %s4463_s3 = smov 16   ;;  %s4464_s26 = smov 1  }
  0x4e   :  { %109 = dma.hbm_to_vmem [thread:$0]  %s5192_s15, 32, %s104_s2, [#allocation9], %s4463_s3, %s4463_s3, %s4464_s26  }
  0x4f   :  { %s4465_s12 = smov [#allocation13]  }
  0x50   :  { %s130_s28 = sshll.u32 %s4465_s12, 4  ;;  %s131_s28 = int_to_ptr.vmem [resolvable:$true] %s130_s28 }
  0x51   :  { %s4411_s6 = scalar_lea.vmem %s131_s28, 16  ;;  %s4415_s21 = scalar_lea.vmem %s131_s28, 32 }
  0x52   :  { %p4412_p2 = scmp.ne.s32.totalorder %s131_s28, %s4411_s6  ;;  %p4416_p3 = scmp.lt.s32.totalorder %s131_s28, %s131_s28 }
  0x53   :  { %p4417_p4 = scmp.lt.s32.totalorder %s4415_s21, %s4411_s6 }
  0x55   :  { %p4418_p5 = por %p4417_p4, %p4416_p3 }
  0x57   :  { %p4419_p6 = pnand %p4418_p5, %p4412_p2 }
  0x59   :  { %4422 = shalt.err (!%p4419_p6)
}
  0x5a   :  { %133 = dma.hbm_to_vmem [thread:$0]  %s5196_s19, 16, %s131_s28, [#allocation12]  }
  0x5b   :  { %4443 = dma.done.wait [#allocation3], 16  }
  0x5c   :  { %4444 = vsyncadd [#allocation3], 4294967280 }
  0x5d   :  { %4445 = dma.done.wait [#allocation6], 8192  }
  0x5e   :  { %4446 = vsyncadd [#allocation6], 4294959104 }
  0x5f   :  { %4447 = dma.done.wait [#allocation9], 4128  }
  0x60   :  { %4448 = vsyncadd [#allocation9], 4294963168 }
  0x61   :  { %4449 = dma.done.wait [#allocation12], 32  }
  0x62   :  { %4450 = vsyncadd [#allocation12], 4294967264  ;;  %s5207_s22 = sld [smem:[#allocation20_spill]]  ;;  %v4003_v2 = vld [vmem:[#allocation5 + $0xac] ss:$12 sps:$4 sm:$0xff]   ;;  %v4466_v4 = vmov 0.0   ;;  %v236_v53 = vlaneseq }
  0x63   :  { %v4005_v3 = vld [vmem:[#allocation5 + $0xa8] ss:$12 sps:$4 sm:$0xff]   ;;  %3744 = vmatprep.subr.bf16.mxu1 %v4466_v4  ;;  %v4006_v5 = vld [vmem:[#allocation5 + $0xb0] ss:$12 sps:$4 sm:$0xff]   ;;  %379 = vmatprep.subr.bf16.mxu0 %v4003_v2  ;;  %v4010_v16 = vld [vmem:[#allocation5 + $0x98] ss:$12 sps:$4 sm:$0xff]  }
  0x64   :  { %380 = vmatpush1.bf16.msra.mxu0 %v4005_v3  ;;  %3745 = vmatpush3.bf16.msra.mxu1 %v4006_v5  ;;  %v4007_v14 = vld [vmem:[#allocation5 + $0x94] ss:$12 sps:$4 sm:$0xff]   ;;  %v4009_v15 = vld [vmem:[#allocation5 + $0x90] ss:$12 sps:$4 sm:$0xff]   ;;  %v4013_v18 = vld [vmem:[#allocation5 + $0x78] ss:$12 sps:$4 sm:$0xff]  }
  0x65   :  { %3746 = vmatprep.subr.bf16.mxu1 %v4466_v4  ;;  %381 = vmatprep.subr.bf16.mxu0 %v4007_v14  ;;  %v4011_v17 = vld [vmem:[#allocation5 + $0x7c] ss:$12 sps:$4 sm:$0xff]   ;;  %v4014_v19 = vld [vmem:[#allocation5 + $0x80] ss:$12 sps:$4 sm:$0xff]   ;;  %v4015_v20 = vld [vmem:[#allocation5 + $0x64] ss:$12 sps:$4 sm:$0xff]  }
  0x66   :  { %v4017_v21 = vld [vmem:[#allocation5 + $0x60] ss:$12 sps:$4 sm:$0xff]   ;;  %v4018_v22 = vld [vmem:[#allocation5 + $0x68] ss:$12 sps:$4 sm:$0xff]   ;;  %v4022_v25 = vld [vmem:[#allocation5 + $0x50] ss:$12 sps:$4 sm:$0xff]  }
  0x67   :  { %v4019_v23 = vld [vmem:[#allocation5 + $0x4c] ss:$12 sps:$4 sm:$0xff]   ;;  %v4021_v24 = vld [vmem:[#allocation5 + $0x48] ss:$12 sps:$4 sm:$0xff]   ;;  %v4467_v27 = vmov 0   ;;  %vm4468_vm0 = vmmov 0  }
  0x68   :  { %v156_v0 = vld [vmem:[%s5207_s22] sm:$0xff]  ;;  %v157_v1 = vld [vmem:[%s5207_s22 + $0x8] sm:$0xff]  ;;  %382 = vmatpush1.bf16.msra.mxu0 %v4009_v15  ;;  %3747 = vmatpush3.bf16.msra.mxu1 %v4010_v16  ;;  %s5208_s2 = sld [smem:[#allocation22_spill]]  ;;  %v4646_v54 = vshrl.u32 %v236_v53, 7  ;;  %vm482_vm1 = vcmask 261120   ;;  %s4469_s26 = smov 96  }
  0x69   :  { %160 = vadd.xlane.f32.xlu0 %v156_v0  ;;  %3748 = vmatprep.subr.bf16.mxu1 %v4466_v4  ;;  %v4023_v26 = vld [vmem:[#allocation5 + $0x34] ss:$12 sps:$4 sm:$0xff]   ;;  %v4025_v28 = vld [vmem:[#allocation5 + $0x30] ss:$12 sps:$4 sm:$0xff]   ;;  %v4026_v29 = vld [vmem:[#allocation5 + $0x38] ss:$12 sps:$4 sm:$0xff]  }
  0x6a   :  { %383 = vmatprep.subr.bf16.mxu0 %v4011_v17  ;;  %411 = vmatprep.mubr.bf16.mxu0 %v4467_v27  ;;  %v4027_v30 = vld [vmem:[#allocation5 + $0x1c] ss:$12 sps:$4 sm:$0xff]   ;;  %v4029_v31 = vld [vmem:[#allocation5 + $0x18] ss:$12 sps:$4 sm:$0xff]   ;;  %v4030_v32 = vld [vmem:[#allocation5 + $0x20] ss:$12 sps:$4 sm:$0xff]  }
  0x6b   :  { %3760 = vmatprep.mubr.msk.bf16.mxu1 %vm4468_vm0, %v4466_v4  ;;  %v4031_v33 = vld [vmem:[#allocation5 + $0x4] ss:$12 sps:$4 sm:$0xff]   ;;  %v4033_v34 = vld [vmem:[#allocation5] ss:$12 sps:$4 sm:$0xff]   ;;  %v4034_v35 = vld [vmem:[#allocation5 + $0x8] ss:$12 sps:$4 sm:$0xff]  }
  0x6c   :  { %384 = vmatpush1.bf16.msra.mxu0 %v4013_v18  ;;  %3749 = vmatpush3.bf16.msra.mxu1 %v4014_v19  ;;  %v3402_v48 = vld [vmem:[#allocation2] ss:$0 sm:$0xff]  ;;  %v4649_v55 = vsub.s32 0, %v4646_v54  ;;  %v246_v56 = vsub.s32 2, %v4646_v54  ;;  %v4656_v58 = vsub.s32 1, %v4646_v54  ;;  %s5209_s12 = sld [smem:[#allocation21_spill]] }
  0x6d   :  { %162 = vadd.xlane.f32.xlu0 %v157_v1  ;;  %3750 = vmatprep.subr.bf16.mxu1 %v4466_v4  ;;  %v234_v57 = vld [vmem:[%s5182_s5] sm:$0x7]  ;;  %vm534_vm2 = vcmask 130048   ;;  %s4470_s21 = smov 32   ;;  %vm3154_vm3 = vcmask 1040384   ;;  %s4471_s6 = smov [#allocation14]  }
  0x6e   :  { %385 = vmatprep.subr.bf16.mxu0 %v4015_v20  ;;  %v3401_v44 = vld [vmem:[%s5208_s2] ss:$0 sm:$0xff]  ;;  %v239_v61 = vrot.slane %v234_v57, %v4649_v55  ;;  %v247_v62 = vrot.slane %v234_v57, %v246_v56  ;;  %s3389_s4 = sshll.u32 %s4471_s6, 4  ;;  %vm3381_vm4 = vcmask 25600   ;;  %s3390_s4 = int_to_ptr.vmem [resolvable:$true] %s3389_s4 }
  0x6f   :  { %p4428_p8 = scmp.lt.s32.totalorder %s3390_s4, %s3390_s4 }
  0x70   :  { %386 = vmatpush1.bf16.msra.mxu0 %v4017_v21  ;;  %3751 = vmatpush3.bf16.msra.mxu1 %v4018_v22 }
  0x71   :  { %387 = vmatprep.subr.bf16.mxu0 %v4019_v23  ;;  %3752 = vmatprep.subr.bf16.mxu1 %v4466_v4 }
  0x72   :  { %v4689_v21 = vld [vmem:[%s5209_s12] sm:$0xff] }
  0x74   :  { %388 = vmatpush1.bf16.msra.mxu0 %v4021_v24  ;;  %3753 = vmatpush3.bf16.msra.mxu1 %v4022_v25 }
  0x75   :  { %389 = vmatprep.subr.bf16.mxu0 %v4023_v26  ;;  %3754 = vmatprep.subr.bf16.mxu1 %v4466_v4  ;;  %v4695_v26 = vld [vmem:[%s5209_s12 + $0x8] sm:$0xff] }
  0x78   :  { %390 = vmatpush1.bf16.msra.mxu0 %v4025_v28  ;;  %3755 = vmatpush3.bf16.msra.mxu1 %v4026_v29 }
  0x79   :  { %391 = vmatprep.subr.bf16.mxu0 %v4027_v30  ;;  %3756 = vmatprep.subr.bf16.mxu1 %v4466_v4 }
  0x7c   :  { %392 = vmatpush1.bf16.msra.mxu0 %v4029_v31  ;;  %3757 = vmatpush3.bf16.msra.mxu1 %v4030_v32 }
  0x7d   :  { %393 = vmatprep.subr.bf16.mxu0 %v4031_v33  ;;  %3758 = vmatprep.subr.bf16.mxu1 %v4466_v4 }
  0x80   :  { %394 = vmatpush1.bf16.msra.mxu0 %v4033_v34  ;;  %3759 = vmatpush3.bf16.msra.mxu1 %v4034_v35 }
  0x81   :  { %3770 = vmatprep.subr.bf16.mxu1 %v4466_v4  ;;  %3764 = vmatprep.subr.bf16.mxu0 %v4466_v4 }
  0xf2   :  { %v161_v6 = vpop.xlane.xlu0 %160 }
  0xf3   :  { %v165_v7 = vmul.f32 0.0078125, %v161_v6 }
  0xf5   :  { %v4612_v8 = vsub.f32 %v156_v0, %v165_v7 }
  0xf6   :  { %v163_v9 = vpop.xlane.xlu0 %162 }
  0xf7   :  { %v166_v10 = vmul.f32 0.0078125, %v163_v9  ;;  %v169_v11 = vmul.f32 %v4612_v8, %v4612_v8 }
  0xf9   :  { %v4616_v12 = vsub.f32 %v157_v1, %v166_v10  ;;  %171 = vadd.xlane.f32.xlu1 %v169_v11  ;;  %v243_v1 = vrot.slane %v234_v57, %v4656_v58 }
  0xfb   :  { %v170_v13 = vmul.f32 %v4616_v12, %v4616_v12 }
  0xfd   :  { %173 = vadd.xlane.f32.xlu1 %v170_v13 }
 0x182   :  { %v172_v36 = vpop.xlane.xlu1 %171 }
 0x183   :  { %v175_v37 = vmul.f32 0.0078125, %v172_v36 }
 0x185   :  { %v177_v38 = vadd.f32 1e-12, %v175_v37 }
 0x186   :  { %v174_v39 = vpop.xlane.xlu1 %173 }
 0x187   :  { %4179 = vrsqrt.f32 %v177_v38  ;;  %v176_v40 = vmul.f32 0.0078125, %v174_v39 }
 0x189   :  { %v178_v41 = vadd.f32 1e-12, %v176_v40 }
 0x18b   :  { %4181 = vrsqrt.f32 %v178_v41 }
 0x194   :  { %v4180_v42 = vpop.eup %4179 }
 0x195   :  { %v181_v43 = vmul.f32 %v4180_v42, %v4612_v8 }
 0x197   :  { %v189_v47 = vmul.f32 %v3401_v44, %v181_v43 }
 0x198   :  { %v4182_v45 = vpop.eup %4181 }
 0x199   :  { %v182_v46 = vmul.f32 %v4182_v45, %v4616_v12  ;;  %v4636_v50 = vadd.f32 %v3402_v48, %v189_v47 }
 0x19b   :  { %v190_v49 = vmul.f32 %v3401_v44, %v182_v46 }
 0x19d   :  { %v4638_v51 = vadd.f32 %v3402_v48, %v190_v49 }
 0x19f   :  { %v201_v52 = vpack.c.bf16 %v4638_v51, %v4636_v50 }
 0x1a1   :  { %412 = vmatmul.mubr.bf16.vlgmr.msra.gmra.mxu0 %v201_v52  ;;  %3761 = vmatmul.mubr.bf16.vlgmr.msra.gmra.mxu1 %v201_v52 }
 0x1a2   :  { %3766 = vmatprep.mubr.msk.bf16.mxu0 %vm4468_vm0, %v4466_v4  ;;  %3772 = vmatprep.mubr.msk.bf16.mxu1 %vm4468_vm0, %v4466_v4 }
 0x261   :  { %v413_v59 = vpop.f32.mrf.mxu0  ;;  %v456_v60 = vpop.f32.mrf.mxu1 }
 0x262   :  { %v414_v5 = vadd.f32 %v413_v59, %v239_v61  ;;  %v457_v6 = vadd.f32 %v456_v60, %v247_v62 }
 0x263   :  { %v415_v63 = vpop.f32.mrf.mxu0  ;;  %v3762_v0 = vpop.f32.mrf.mxu1 }
 0x264   :  { %v416_v11 = vadd.f32 %v415_v63, %v243_v1 }
 0x265   :  { %v417_v2 = vpop.f32.mrf.mxu0  ;;  %v459_v3 = vpop.f32.mrf.mxu1 }
 0x266   :  { %v418_v7 = vadd.f32 %v417_v2, %v239_v61  ;;  %v460_v8 = vadd.f32 %v459_v3, %v247_v62 }
 0x267   :  { %v419_v9 = vpop.f32.mrf.mxu0  ;;  %v3763_v10 = vpop.f32.mrf.mxu1 }
 0x268   :  { %v4662_v12 = vpack.c.bf16 %v418_v7, %v414_v5  ;;  %v4664_v13 = vpack.c.bf16 %v460_v8, %v457_v6  ;;  %v420_v14 = vadd.f32 %v419_v9, %v243_v1 }
 0x26a   :  { %v4666_v15 = vpack.c.bf16 %v420_v14, %v416_v11  ;;  %3771 = vmatpush3.bf16.msra.mxu1 %v4664_v13  ;;  %604 = vrot.lane.b32.xlu1 %v4662_v12, %s4469_s26 }
 0x26b   :  { %3782 = vmatprep.subr.bf16.mxu1 %v4466_v4 }
 0x26c   :  { %607 = vrot.lane.b32.xlu0 %v4666_v15, %s4469_s26  ;;  %v487_v16 = vsel %vm482_vm1, %v4666_v15, 0 }
 0x26d   :  { %3765 = vmatpush3.bf16.xpose.msra.mxu0 %v487_v16  ;;  %v4037_v16 = vld [vmem:[#allocation7 + $0x18] sm:$0xff]  }
 0x26e   :  { %3776 = vmatprep.subr.bf16.mxu0 %v4466_v4 }
 0x274   :  { %3767 = vmatmul.mubr.msk.bf16.vlgmr.msra.gmra.mxu0 %vm482_vm1, %v4662_v12 }
 0x275   :  { %3778 = vmatprep.mubr.msk.bf16.mxu0 %vm4468_vm0, %v4466_v4 }
 0x2dc   :  { %v605_v19 = vpop.permute.xlu1 %604 }
 0x2de   :  { %v608_v17 = vpop.permute.xlu0 %607 }
 0x2df   :  { %v613_v18 = vsel %vm482_vm1, %v608_v17, 0 }
 0x2e0   :  { %3777 = vmatpush3.bf16.xpose.msra.mxu0 %v613_v18 }
 0x2e1   :  { %3788 = vmatprep.subr.bf16.mxu0 %v4466_v4 }
 0x2e7   :  { %3779 = vmatmul.mubr.msk.bf16.vlgmr.msra.gmra.mxu0 %vm482_vm1, %v605_v19 }
 0x2e8   :  { %3792 = vmatprep.mubr.msk.bf16.mxu0 %vm4468_vm0, %v4466_v4  ;;  %3789 = vmatpush3.bf16.msra.mxu0 %v4037_v16 }
 0x2e9   :  { %3790 = vmatprep.subr.bf16.mxu0 %v4466_v4 }
 0x334   :  { %v523_v20 = vpop.f32.mrf.mxu0 }
 0x335   :  { %v530_v22 = vmul.f32 0.17677669, %v523_v20 }
 0x336   :  { %v3768_v23 = vpop.f32.mrf.mxu0 }
 0x337   :  { %v532_v24 = vadd.f32 %v530_v22, %v4689_v21 }
 0x338   :  { %v526_v25 = vpop.f32.mrf.mxu0 }
 0x339   :  { %v531_v28 = vmul.f32 0.17677669, %v526_v25  ;;  %v535_v29 = vsel %vm534_vm2, %v532_v24, -inf  ;;  %v4035_v25 = vld [vmem:[#allocation7 + $0x8] sm:$0xff]  }
 0x33a   :  { %536 = vmax.xlane.f32.xlu1 %v535_v29  ;;  %v3769_v30 = vpop.f32.mrf.mxu0  ;;  %v4036_v29 = vld [vmem:[#allocation7] sm:$0xff]  }
 0x33b   :  { %v533_v31 = vadd.f32 %v531_v28, %v4695_v26  ;;  %v4038_v30 = vld [vmem:[#allocation7 + $0x10] sm:$0xff]  }
 0x33c   :  { %3791 = vmatpush3.bf16.msra.mxu0 %v4038_v30  ;;  %v4039_v30 = vld [vmem:[#allocation7 + $0x28] sm:$0xff]  }
 0x33d   :  { %v538_v32 = vsel %vm534_vm2, %v533_v31, -inf  ;;  %3804 = vmatprep.subr.bf16.mxu0 %v4466_v4 }
 0x33e   :  { %539 = vmax.xlane.f32.xlu0 %v538_v32 }
 0x3a7   :  { %v649_v33 = vpop.f32.mrf.mxu0 }
 0x3a8   :  { %v656_v34 = vmul.f32 0.17677669, %v649_v33 }
 0x3a9   :  { %v3780_v35 = vpop.f32.mrf.mxu0 }
 0x3aa   :  { %v658_v36 = vadd.f32 %v656_v34, %v4689_v21 }
 0x3ab   :  { %v652_v37 = vpop.f32.mrf.mxu0 }
 0x3ac   :  { %v657_v38 = vmul.f32 0.17677669, %v652_v37  ;;  %v660_v39 = vsel %vm534_vm2, %v658_v36, -inf }
 0x3ad   :  { %661 = vmax.xlane.f32.xlu0 %v660_v39  ;;  %v3781_v40 = vpop.f32.mrf.mxu0 }
 0x3ae   :  { %v659_v41 = vadd.f32 %v657_v38, %v4695_v26 }
 0x3b0   :  { %v663_v42 = vsel %vm534_vm2, %v659_v41, -inf }
 0x3b1   :  { %664 = vmax.xlane.f32.xlu1 %v663_v42 }
 0x3c3   :  { %v537_v43 = vpop.xlane.xlu1 %536 }
 0x3c4   :  { %v541_v44 = vsub.f32 %v532_v24, %v537_v43 }
 0x3c6   :  { %v543_v45 = vmul.f32 1.442695, %v541_v44 }
 0x3c7   :  { %v540_v46 = vpop.xlane.xlu0 %539 }
 0x3c8   :  { %4183 = vpow2.f32 %v543_v45  ;;  %v542_v47 = vsub.f32 %v533_v31, %v540_v46 }
 0x3ca   :  { %v545_v48 = vmul.f32 1.442695, %v542_v47 }
 0x3cc   :  { %4185 = vpow2.f32 %v545_v48 }
 0x3d5   :  { %v4184_v49 = vpop.eup %4183 }
 0x3d6   :  { %v547_v52 = vsel %vm534_vm2, %v4184_v49, 0.0 }
 0x3d7   :  { %548 = vadd.xlane.f32.xlu0 %v547_v52 }
 0x3d9   :  { %v4186_v53 = vpop.eup %4185 }
 0x3da   :  { %v550_v57 = vsel %vm534_vm2, %v4186_v53, 0.0 }
 0x3db   :  { %551 = vadd.xlane.f32.xlu1 %v550_v57 }
 0x436   :  { %v662_v59 = vpop.xlane.xlu0 %661 }
 0x437   :  { %v666_v60 = vsub.f32 %v658_v36, %v662_v59 }
 0x439   :  { %v668_v61 = vmul.f32 1.442695, %v666_v60 }
 0x43a   :  { %v665_v62 = vpop.xlane.xlu1 %664 }
 0x43b   :  { %4187 = vpow2.f32 %v668_v61  ;;  %v667_v63 = vsub.f32 %v659_v41, %v665_v62 }
 0x43d   :  { %v670_v0 = vmul.f32 1.442695, %v667_v63 }
 0x43f   :  { %4189 = vpow2.f32 %v670_v0 }
 0x448   :  { %v4188_v1 = vpop.eup %4187 }
 0x449   :  { %v672_v2 = vsel %vm534_vm2, %v4188_v1, 0.0 }
 0x44a   :  { %673 = vadd.xlane.f32.xlu0 %v672_v2 }
 0x44c   :  { %v4190_v3 = vpop.eup %4189 }
 0x44d   :  { %v675_v5 = vsel %vm534_vm2, %v4190_v3, 0.0 }
 0x44e   :  { %676 = vadd.xlane.f32.xlu1 %v675_v5 }
 0x45f   :  { %846 = vrot.lane.b32.xlu1 %v4666_v15, %s4458_s0 }
 0x460   :  { %684 = vrot.lane.b32.xlu0 %v4664_v13, %s4469_s26  ;;  %v549_v6 = vpop.xlane.xlu0 %548 }
 0x461   :  { %4191 = vrcp.f32 %v549_v6 }
 0x463   :  { %844 = vrot.lane.b32.xlu1 %v4662_v12, %s4458_s0 }
 0x464   :  { %v552_v7 = vpop.xlane.xlu1 %551 }
 0x465   :  { %4193 = vrcp.f32 %v552_v7 }
 0x46e   :  { %v4192_v8 = vpop.eup %4191 }
 0x46f   :  { %v555_v10 = vmul.f32 %v4192_v8, %v4184_v49 }
 0x472   :  { %v4194_v9 = vpop.eup %4193 }
 0x473   :  { %v556_v11 = vmul.f32 %v4194_v9, %v4186_v53 }
 0x475   :  { %v557_v14 = vpack.c.bf16 %v556_v11, %v555_v10 }
 0x477   :  { %3773 = vmatmul.mubr.msk.bf16.vlgmr.msra.gmra.mxu1 %vm534_vm2, %v557_v14 }
 0x478   :  { %3784 = vmatprep.mubr.msk.bf16.mxu1 %vm4468_vm0, %v4466_v4 }
 0x4d3   :  { %v674_v17 = vpop.xlane.xlu0 %673 }
 0x4d4   :  { %4195 = vrcp.f32 %v674_v17 }
 0x4d7   :  { %v685_v18 = vpop.permute.xlu0 %684  ;;  %v677_v19 = vpop.xlane.xlu1 %676 }
 0x4d8   :  { %4197 = vrcp.f32 %v677_v19  ;;  %3783 = vmatpush3.bf16.msra.mxu1 %v685_v18 }
 0x4d9   :  { %3796 = vmatprep.subr.bf16.mxu1 %v4466_v4 }
 0x4db   :  { %v847_v38 = vpop.permute.xlu1 %846 }
 0x4dc   :  { %v852_v42 = vsel %vm482_vm1, %v847_v38, 0 }
 0x4df   :  { %v845_v43 = vpop.permute.xlu1 %844 }
 0x4e1   :  { %v4196_v20 = vpop.eup %4195 }
 0x4e2   :  { %v680_v23 = vmul.f32 %v4196_v20, %v4188_v1 }
 0x4e5   :  { %v4198_v22 = vpop.eup %4197 }
 0x4e6   :  { %v681_v24 = vmul.f32 %v4198_v22, %v4190_v3 }
 0x4e8   :  { %v682_v28 = vpack.c.bf16 %v681_v24, %v680_v23 }
 0x4ea   :  { %3785 = vmatmul.mubr.msk.bf16.vlgmr.msra.gmra.mxu1 %vm534_vm2, %v682_v28 }
 0x4eb   :  { %3797 = vmatpush3.bf16.msra.mxu1 %v4035_v25  ;;  %3800 = vmatprep.mubr.msk.bf16.mxu1 %vm4468_vm0, %v4466_v4 }
 0x4ec   :  { %3798 = vmatprep.subr.bf16.mxu1 %v4466_v4 }
 0x4ef   :  { %3799 = vmatpush3.bf16.msra.mxu1 %v4036_v29 }
 0x4f0   :  { %3810 = vmatprep.subr.bf16.mxu1 %v4466_v4 }
 0x537   :  { %v595_v31 = vpop.f32.mrf.mxu1 }
 0x539   :  { %v3774_v32 = vpop.f32.mrf.mxu1 }
 0x53b   :  { %v598_v33 = vpop.f32.mrf.mxu1 }
 0x53c   :  { %v602_v34 = vpack.c.bf16 %v598_v33, %v595_v31  ;;  %v4040_v31 = vld [vmem:[#allocation7 + $0x20] sm:$0xff]  }
 0x53d   :  { %v3775_v35 = vpop.f32.mrf.mxu1 }
 0x53e   :  { %3801 = vmatmul.mubr.msk.bf16.vlgmr.msra.gmra.mxu1 %vm482_vm1, %v602_v34 }
 0x53f   :  { %3812 = vmatprep.mubr.msk.bf16.mxu1 %vm4468_vm0, %v4466_v4 }
 0x5aa   :  { %v724_v36 = vpop.f32.mrf.mxu1 }
 0x5ac   :  { %v3786_v37 = vpop.f32.mrf.mxu1 }
 0x5ae   :  { %v727_v39 = vpop.f32.mrf.mxu1 }
 0x5af   :  { %v731_v40 = vpack.c.bf16 %v727_v39, %v724_v36 }
 0x5b0   :  { %v3787_v41 = vpop.f32.mrf.mxu1 }
 0x5b1   :  { %3793 = vmatmul.mubr.msk.bf16.vlgmr.msra.gmra.mxu0 %vm482_vm1, %v731_v40 }
 0x5b2   :  { %3805 = vmatpush3.bf16.xpose.msra.mxu0 %v852_v42  ;;  %3806 = vmatprep.mubr.msk.bf16.mxu0 %vm4468_vm0, %v4466_v4 }
 0x5b3   :  { %3816 = vmatprep.subr.bf16.mxu0 %v4466_v4 }
 0x5b9   :  { %3807 = vmatmul.mubr.msk.bf16.vlgmr.msra.gmra.mxu0 %vm482_vm1, %v845_v43 }
 0x5ba   :  { %3820 = vmatprep.mubr.msk.bf16.mxu0 %vm4468_vm0, %v4466_v4  ;;  %3817 = vmatpush3.bf16.msra.mxu0 %v4039_v30 }
 0x5bb   :  { %3818 = vmatprep.subr.bf16.mxu0 %v4466_v4 }
 0x5be   :  { %3819 = vmatpush3.bf16.msra.mxu0 %v4040_v31 }
 0x5bf   :  { %3830 = vmatprep.subr.bf16.mxu0 %v4466_v4 }
 0x5fe   :  { %v4736_v44 = vpop.f32.mrf.mxu1 }
 0x600   :  { %v3802_v45 = vpop.f32.mrf.mxu1 }
 0x602   :  { %v4738_v46 = vpop.f32.mrf.mxu1 }
 0x604   :  { %v3803_v47 = vpop.f32.mrf.mxu1 }
 0x671   :  { %v4740_v48 = vpop.f32.mrf.mxu0 }
 0x673   :  { %v3794_v49 = vpop.f32.mrf.mxu0 }
 0x675   :  { %v4742_v52 = vpop.f32.mrf.mxu0 }
 0x677   :  { %v3795_v53 = vpop.f32.mrf.mxu0 }
 0x679   :  { %v888_v57 = vpop.f32.mrf.mxu0 }
 0x67a   :  { %v895_v59 = vmul.f32 0.17677669, %v888_v57 }
 0x67b   :  { %v3808_v60 = vpop.f32.mrf.mxu0 }
 0x67c   :  { %v897_v61 = vadd.f32 %v895_v59, %v4689_v21 }
 0x67d   :  { %v891_v62 = vpop.f32.mrf.mxu0 }
 0x67e   :  { %v896_v63 = vmul.f32 0.17677669, %v891_v62  ;;  %v899_v0 = vsel %vm534_vm2, %v897_v61, -inf }
 0x67f   :  { %900 = vmax.xlane.f32.xlu1 %v899_v0  ;;  %v3809_v1 = vpop.f32.mrf.mxu0 }
 0x680   :  { %v898_v2 = vadd.f32 %v896_v63, %v4695_v26 }
 0x682   :  { %v902_v3 = vsel %vm534_vm2, %v898_v2, -inf }
 0x683   :  { %903 = vmax.xlane.f32.xlu0 %v902_v3 }
 0x690   :  { %922 = vrot.lane.b32.xlu1 %v4664_v13, %s4458_s0 }
 0x694   :  { %1028 = vrot.lane.b32.xlu1 %v4662_v12, %s4470_s21 }
 0x708   :  { %v901_v5 = vpop.xlane.xlu1 %900 }
 0x709   :  { %v905_v6 = vsub.f32 %v897_v61, %v901_v5 }
 0x70b   :  { %v907_v7 = vmul.f32 1.442695, %v905_v6  ;;  %v841_v6 = vadd.f32 %v4738_v46, %v4742_v52  ;;  %v4042_v46 = vld [vmem:[#allocation7 + $0x30] sm:$0xff]  }
 0x70c   :  { %v923_v8 = vpop.permute.xlu1 %922  ;;  %v904_v9 = vpop.xlane.xlu0 %903 }
 0x70d   :  { %4199 = vpow2.f32 %v907_v7  ;;  %v906_v10 = vsub.f32 %v898_v2, %v904_v9  ;;  %3811 = vmatpush3.bf16.msra.mxu1 %v923_v8 }
 0x70e   :  { %3824 = vmatprep.subr.bf16.mxu1 %v4466_v4 }
 0x70f   :  { %v909_v11 = vmul.f32 1.442695, %v906_v10 }
 0x711   :  { %4201 = vpow2.f32 %v909_v11 }
 0x71a   :  { %v4200_v14 = vpop.eup %4199 }
 0x71b   :  { %v911_v16 = vsel %vm534_vm2, %v4200_v14, 0.0 }
 0x71c   :  { %912 = vadd.xlane.f32.xlu0 %v911_v16 }
 0x71e   :  { %v4202_v17 = vpop.eup %4201 }
 0x71f   :  { %v914_v18 = vsel %vm534_vm2, %v4202_v17, 0.0 }
 0x720   :  { %915 = vadd.xlane.f32.xlu0 %v914_v18 }
 0x736   :  { %1030 = vrot.lane.b32.xlu0 %v4666_v15, %s4470_s21  ;;  %v1029_v15 = vpop.permute.xlu1 %1028 }
 0x7a5   :  { %v913_v12 = vpop.xlane.xlu0 %912 }
 0x7a6   :  { %4203 = vrcp.f32 %v913_v12 }
 0x7a9   :  { %v916_v19 = vpop.xlane.xlu0 %915 }
 0x7aa   :  { %4205 = vrcp.f32 %v916_v19 }
 0x7ad   :  { %v1031_v25 = vpop.permute.xlu0 %1030 }
 0x7ae   :  { %v1036_v29 = vsel %vm482_vm1, %v1031_v25, 0 }
 0x7b3   :  { %v4204_v20 = vpop.eup %4203 }
 0x7b4   :  { %v919_v23 = vmul.f32 %v4204_v20, %v4200_v14 }
 0x7b7   :  { %v4206_v22 = vpop.eup %4205 }
 0x7b8   :  { %v920_v24 = vmul.f32 %v4206_v22, %v4202_v17 }
 0x7ba   :  { %v921_v28 = vpack.c.bf16 %v920_v24, %v919_v23  ;;  %v3447_v24 = vld [vmem:[%s5184_s7] ss:$0 sm:$0xff] }
 0x7bc   :  { %3813 = vmatmul.mubr.msk.bf16.vlgmr.msra.gmra.mxu1 %vm534_vm2, %v921_v28 }
 0x7bd   :  { %3825 = vmatpush3.bf16.xpose.msra.mxu1 %v1036_v29  ;;  %3826 = vmatprep.mubr.msk.bf16.mxu1 %vm4468_vm0, %v4466_v4 }
 0x7be   :  { %3836 = vmatprep.subr.bf16.mxu1 %v4466_v4 }
 0x7c4   :  { %3827 = vmatmul.mubr.msk.bf16.vlgmr.msra.gmra.mxu1 %vm482_vm1, %v1029_v15 }
 0x7c5   :  { %3840 = vmatprep.mubr.msk.bf16.mxu1 %vm4468_vm0, %v4466_v4 }
 0x87c   :  { %v962_v32 = vpop.f32.mrf.mxu1 }
 0x87e   :  { %v3814_v33 = vpop.f32.mrf.mxu1 }
 0x880   :  { %v965_v34 = vpop.f32.mrf.mxu1 }
 0x881   :  { %v969_v35 = vpack.c.bf16 %v965_v34, %v962_v32 }
 0x882   :  { %v3815_v36 = vpop.f32.mrf.mxu1 }
 0x883   :  { %3821 = vmatmul.mubr.msk.bf16.vlgmr.msra.gmra.mxu0 %vm482_vm1, %v969_v35  ;;  %v4043_v35 = vld [vmem:[%s5187_s10 + $0x70] ss:$8 sps:$4 sm:$0xff]   ;;  %v4045_v36 = vld [vmem:[%s5187_s10 + $0x74] ss:$8 sps:$4 sm:$0xff]  }
 0x884   :  { %v1072_v37 = vpop.f32.mrf.mxu1  ;;  %3832 = vmatprep.mubr.msk.bf16.mxu0 %vm4468_vm0, %v4466_v4 }
 0x885   :  { %v1079_v38 = vmul.f32 0.17677669, %v1072_v37 }
 0x886   :  { %v3828_v39 = vpop.f32.mrf.mxu1 }
 0x887   :  { %v1081_v40 = vadd.f32 %v1079_v38, %v4689_v21 }
 0x888   :  { %v1075_v41 = vpop.f32.mrf.mxu1 }
 0x889   :  { %v1080_v42 = vmul.f32 0.17677669, %v1075_v41  ;;  %v1083_v43 = vsel %vm534_vm2, %v1081_v40, -inf }
 0x88a   :  { %1084 = vmax.xlane.f32.xlu1 %v1083_v43  ;;  %v3829_v45 = vpop.f32.mrf.mxu1  ;;  %v4048_v43 = vld [vmem:[%s5187_s10 + $0x64] ss:$8 sps:$4 sm:$0xff]  }
 0x88b   :  { %v1082_v47 = vadd.f32 %v1080_v42, %v4695_v26  ;;  %v838_v26 = vadd.f32 %v4736_v44, %v4740_v48  ;;  %v4041_v48 = vld [vmem:[#allocation7 + $0x38] sm:$0xff]  }
 0x88c   :  { %3837 = vmatpush3.bf16.msra.mxu1 %v4041_v48  ;;  %v4046_v45 = vld [vmem:[%s5187_s10 + $0x60] ss:$8 sps:$4 sm:$0xff]  }
 0x88d   :  { %v1086_v49 = vsel %vm534_vm2, %v1082_v47, -inf  ;;  %3838 = vmatprep.subr.bf16.mxu1 %v4466_v4 }
 0x88e   :  { %1087 = vmax.xlane.f32.xlu0 %v1086_v49  ;;  %v4049_v49 = vld [vmem:[%s5187_s10 + $0x50] ss:$8 sps:$4 sm:$0xff]  }
 0x890   :  { %3839 = vmatpush3.bf16.msra.mxu1 %v4042_v46  ;;  %v4067_v46 = vld [vmem:[#allocation8 + $0x78] sm:$0xff]  }
 0x891   :  { %3645 = vmatprep.subr.bf16.mxu1 %v4067_v46 }
 0x913   :  { %v1085_v53 = vpop.xlane.xlu1 %1084 }
 0x914   :  { %v1089_v57 = vsub.f32 %v1081_v40, %v1085_v53  ;;  %v4052_v53 = vld [vmem:[%s5187_s10 + $0x40] ss:$8 sps:$4 sm:$0xff]  }
 0x916   :  { %v1091_v59 = vmul.f32 1.442695, %v1089_v57  ;;  %v4054_v57 = vld [vmem:[%s5187_s10 + $0x44] ss:$8 sps:$4 sm:$0xff]  }
 0x917   :  { %v1088_v60 = vpop.xlane.xlu0 %1087 }
 0x918   :  { %4207 = vpow2.f32 %v1091_v59  ;;  %v1090_v61 = vsub.f32 %v1082_v47, %v1088_v60  ;;  %v4051_v47 = vld [vmem:[%s5187_s10 + $0x54] ss:$8 sps:$4 sm:$0xff]   ;;  %v4055_v60 = vld [vmem:[%s5187_s10 + $0x30] ss:$8 sps:$4 sm:$0xff]  }
 0x919   :  { %v4057_v59 = vld [vmem:[%s5187_s10 + $0x34] ss:$8 sps:$4 sm:$0xff]  }
 0x91a   :  { %v1093_v62 = vmul.f32 1.442695, %v1090_v61  ;;  %v4060_v61 = vld [vmem:[%s5187_s10 + $0x24] ss:$8 sps:$4 sm:$0xff]  }
 0x91c   :  { %4209 = vpow2.f32 %v1093_v62  ;;  %v4058_v62 = vld [vmem:[%s5187_s10 + $0x20] ss:$8 sps:$4 sm:$0xff]  }
 0x925   :  { %v4208_v21 = vpop.eup %4207 }
 0x926   :  { %v1095_v63 = vsel %vm534_vm2, %v4208_v21, 0.0 }
 0x927   :  { %1096 = vadd.xlane.f32.xlu0 %v1095_v63  ;;  %v4061_v63 = vld [vmem:[%s5187_s10 + $0x10] ss:$8 sps:$4 sm:$0xff]  }
 0x929   :  { %v4210_v0 = vpop.eup %4209 }
 0x92a   :  { %v1098_v1 = vsel %vm534_vm2, %v4210_v0, 0.0 }
 0x92b   :  { %1099 = vadd.xlane.f32.xlu1 %v1098_v1  ;;  %v4064_v1 = vld [vmem:[%s5187_s10] ss:$8 sps:$4 sm:$0xff]  }
 0x93d   :  { %1106 = vrot.lane.b32.xlu0 %v4664_v13, %s4470_s21 }
 0x943   :  { %v1019_v2 = vpop.f32.mrf.mxu0 }
 0x944   :  { %v1026_v3 = vadd.f32 %v1019_v2, %v838_v26 }
 0x945   :  { %v3822_v5 = vpop.f32.mrf.mxu0 }
 0x947   :  { %v1022_v7 = vpop.f32.mrf.mxu0 }
 0x948   :  { %v1027_v8 = vadd.f32 %v1022_v7, %v841_v6 }
 0x949   :  { %v3823_v9 = vpop.f32.mrf.mxu0 }
 0x9b0   :  { %v1097_v10 = vpop.xlane.xlu0 %1096 }
 0x9b1   :  { %4211 = vrcp.f32 %v1097_v10  ;;  %v3448_v10 = vld [vmem:[%s5185_s8] ss:$0 sm:$0xff] }
 0x9b4   :  { %v1100_v11 = vpop.xlane.xlu1 %1099  ;;  %v1107_v14 = vpop.permute.xlu0 %1106 }
 0x9b5   :  { %4213 = vrcp.f32 %v1100_v11  ;;  %3831 = vmatpush3.bf16.msra.mxu0 %v1107_v14 }
 0x9b6   :  { %1372 = vmatprep.subr.bf16.mxu0 %v4045_v36 }
 0x9be   :  { %v4212_v16 = vpop.eup %4211 }
 0x9bf   :  { %v1103_v17 = vmul.f32 %v4212_v16, %v4208_v21  ;;  %v4063_v21 = vld [vmem:[%s5187_s10 + $0x14] ss:$8 sps:$4 sm:$0xff]  }
 0x9c2   :  { %v4214_v13 = vpop.eup %4213 }
 0x9c3   :  { %v1104_v18 = vmul.f32 %v4214_v13, %v4210_v0  ;;  %v4066_v0 = vld [vmem:[%s5187_s10 + $0x4] ss:$8 sps:$4 sm:$0xff]   ;;  %v3449_v13 = vld [vmem:[%s5186_s9] ss:$0 sm:$0xff] }
 0x9c5   :  { %v1105_v44 = vpack.c.bf16 %v1104_v18, %v1103_v17 }
 0x9c7   :  { %3833 = vmatmul.mubr.msk.bf16.vlgmr.msra.gmra.mxu0 %vm534_vm2, %v1105_v44 }
 0x9c8   :  { %1404 = vmatprep.mubr.bf16.mxu0 %v4467_v27  ;;  %1373 = vmatpush1.bf16.msra.mxu0 %v4043_v35 }
 0x9c9   :  { %1374 = vmatprep.subr.bf16.mxu0 %v4048_v43 }
 0x9cc   :  { %1375 = vmatpush1.bf16.msra.mxu0 %v4046_v45 }
 0x9cd   :  { %1376 = vmatprep.subr.bf16.mxu0 %v4051_v47 }
 0x9d0   :  { %1377 = vmatpush1.bf16.msra.mxu0 %v4049_v49 }
 0x9d1   :  { %1378 = vmatprep.subr.bf16.mxu0 %v4054_v57 }
 0x9d4   :  { %1379 = vmatpush1.bf16.msra.mxu0 %v4052_v53 }
 0x9d5   :  { %1380 = vmatprep.subr.bf16.mxu0 %v4057_v59 }
 0x9d8   :  { %1381 = vmatpush1.bf16.msra.mxu0 %v4055_v60 }
 0x9d9   :  { %1382 = vmatprep.subr.bf16.mxu0 %v4060_v61 }
 0x9dc   :  { %1383 = vmatpush1.bf16.msra.mxu0 %v4058_v62 }
 0x9dd   :  { %1384 = vmatprep.subr.bf16.mxu0 %v4063_v21 }
 0x9e0   :  { %1385 = vmatpush1.bf16.msra.mxu0 %v4061_v63 }
 0x9e1   :  { %1386 = vmatprep.subr.bf16.mxu0 %v4066_v0 }
 0x9e4   :  { %1387 = vmatpush1.bf16.msra.mxu0 %v4064_v1 }
 0xa87   :  { %v1146_v52 = vpop.f32.mrf.mxu0 }
 0xa89   :  { %v3834_v12 = vpop.f32.mrf.mxu0 }
 0xa8a   :  { %v4069_v12 = vld [vmem:[#allocation8 + $0x70] sm:$0xff]  }
 0xa8b   :  { %v1149_v19 = vpop.f32.mrf.mxu0 }
 0xa8c   :  { %v1153_v20 = vpack.c.bf16 %v1149_v19, %v1146_v52  ;;  %v4068_v52 = vld [vmem:[#allocation8 + $0x38] sm:$0xff]   ;;  %v4070_v19 = vld [vmem:[#allocation8 + $0x30] sm:$0xff]  }
 0xa8d   :  { %v3835_v22 = vpop.f32.mrf.mxu0 }
 0xa8e   :  { %3841 = vmatmul.mubr.msk.bf16.vlgmr.msra.gmra.mxu1 %vm482_vm1, %v1153_v20  ;;  %v4071_v20 = vld [vmem:[#allocation8 + $0x68] sm:$0xff]  }
 0xa8f   :  { %3646 = vmatpush3.bf16.msra.mxu1 %v4068_v52  ;;  %v4072_v22 = vld [vmem:[#allocation8 + $0x28] sm:$0xff]  }
 0xa90   :  { %3647 = vmatprep.subr.bf16.mxu1 %v4069_v12 }
 0xa93   :  { %3648 = vmatpush3.bf16.msra.mxu1 %v4070_v19 }
 0xa94   :  { %3649 = vmatprep.subr.bf16.mxu1 %v4071_v20 }
 0xa97   :  { %3650 = vmatpush3.bf16.msra.mxu1 %v4072_v22 }
 0xb4e   :  { %v1203_v23 = vpop.f32.mrf.mxu1 }
 0xb4f   :  { %v1210_v25 = vadd.f32 %v1203_v23, %v1026_v3  ;;  %v4073_v23 = vld [vmem:[#allocation8 + $0x60] sm:$0xff]  }
 0xb50   :  { %v3842_v28 = vpop.f32.mrf.mxu1  ;;  %3651 = vmatprep.subr.bf16.mxu1 %v4073_v23 }
 0xb51   :  { %v1219_v29 = vadd.f32 %v3447_v24, %v1210_v25  ;;  %v4075_v25 = vld [vmem:[#allocation8 + $0x58] sm:$0xff]  }
 0xb52   :  { %v1206_v15 = vpop.f32.mrf.mxu1  ;;  %v4076_v28 = vld [vmem:[#allocation8 + $0x18] sm:$0xff]  }
 0xb53   :  { %v1211_v30 = vadd.f32 %v1206_v15, %v1027_v8  ;;  %v1221_v31 = vadd.f32 %v1219_v29, %v4636_v50  ;;  %v4077_v29 = vld [vmem:[#allocation8 + $0x50] sm:$0xff]  }
 0xb54   :  { %v3843_v32 = vpop.f32.mrf.mxu1  ;;  %v4078_v15 = vld [vmem:[#allocation8 + $0x10] sm:$0xff]  }
 0xb55   :  { %v1220_v33 = vadd.f32 %v3447_v24, %v1211_v30  ;;  %1225 = vadd.xlane.f32.xlu1 %v1221_v31  ;;  %v4074_v24 = vld [vmem:[#allocation8 + $0x20] sm:$0xff]   ;;  %v4079_v30 = vld [vmem:[#allocation8 + $0x48] sm:$0xff]  }
 0xb56   :  { %3652 = vmatpush3.bf16.msra.mxu1 %v4074_v24  ;;  %v4081_v32 = vld [vmem:[#allocation8 + $0x40] sm:$0xff]  }
 0xb57   :  { %v1222_v34 = vadd.f32 %v1220_v33, %v4638_v51  ;;  %3653 = vmatprep.subr.bf16.mxu1 %v4075_v25  ;;  %v4082_v33 = vld [vmem:[#allocation8] sm:$0xff]  }
 0xb59   :  { %1227 = vadd.xlane.f32.xlu1 %v1222_v34 }
 0xb5a   :  { %3654 = vmatpush3.bf16.msra.mxu1 %v4076_v28 }
 0xb5b   :  { %3655 = vmatprep.subr.bf16.mxu1 %v4077_v29  ;;  %v3466_v29 = vld [vmem:[%s5190_s13] ss:$0 sm:$0xff] }
 0xb5e   :  { %3656 = vmatpush3.bf16.msra.mxu1 %v4078_v15 }
 0xb5f   :  { %3657 = vmatprep.subr.bf16.mxu1 %v4079_v30 }
 0xbde   :  { %v1226_v37 = vpop.xlane.xlu1 %1225 }
 0xbdf   :  { %v1229_v38 = vmul.f32 0.0078125, %v1226_v37 }
 0xbe1   :  { %v1231_v39 = vsub.f32 %v1221_v31, %v1229_v38  ;;  %v4080_v31 = vld [vmem:[#allocation8 + $0x8] sm:$0xff]  }
 0xbe2   :  { %v1228_v50 = vpop.xlane.xlu1 %1227  ;;  %3658 = vmatpush3.bf16.msra.mxu1 %v4080_v31 }
 0xbe3   :  { %v1230_v40 = vmul.f32 0.0078125, %v1228_v50  ;;  %v1233_v41 = vmul.f32 %v1231_v39, %v1231_v39  ;;  %3659 = vmatprep.subr.bf16.mxu1 %v4081_v32 }
 0xbe5   :  { %v1232_v42 = vsub.f32 %v1222_v34, %v1230_v40  ;;  %1235 = vadd.xlane.f32.xlu1 %v1233_v41  ;;  %v1280_v34 = vld [vmem:[%s5188_s11] sm:$0x3] }
 0xbe6   :  { %3660 = vmatpush3.bf16.msra.mxu1 %v4082_v33  ;;  %v1285_v35 = vrot.slane %v1280_v34, %v4649_v55  ;;  %v1289_v36 = vrot.slane %v1280_v34, %v4656_v58 }
 0xbe7   :  { %v1234_v51 = vmul.f32 %v1232_v42, %v1232_v42  ;;  %3844 = vmatprep.subr.bf16.mxu1 %v4466_v4 }
 0xbe9   :  { %1237 = vadd.xlane.f32.xlu1 %v1234_v51 }
 0xc6e   :  { %v1236_v26 = vpop.xlane.xlu1 %1235 }
 0xc6f   :  { %v1239_v2 = vmul.f32 0.0078125, %v1236_v26 }
 0xc71   :  { %v1241_v3 = vadd.f32 1e-12, %v1239_v2 }
 0xc72   :  { %v1238_v5 = vpop.xlane.xlu1 %1237 }
 0xc73   :  { %4215 = vrsqrt.f32 %v1241_v3  ;;  %v1240_v6 = vmul.f32 0.0078125, %v1238_v5 }
 0xc75   :  { %v1242_v7 = vadd.f32 1e-12, %v1240_v6 }
 0xc77   :  { %4217 = vrsqrt.f32 %v1242_v7 }
 0xc80   :  { %v4216_v8 = vpop.eup %4215 }
 0xc81   :  { %v1245_v9 = vmul.f32 %v4216_v8, %v1231_v39 }
 0xc83   :  { %v1253_v16 = vmul.f32 %v3448_v10, %v1245_v9 }
 0xc84   :  { %v4218_v11 = vpop.eup %4217 }
 0xc85   :  { %v1246_v14 = vmul.f32 %v4218_v11, %v1232_v42  ;;  %v4845_v18 = vadd.f32 %v3449_v13, %v1253_v16 }
 0xc87   :  { %v1254_v17 = vmul.f32 %v3448_v10, %v1246_v14 }
 0xc89   :  { %v4847_v44 = vadd.f32 %v3449_v13, %v1254_v17 }
 0xc8b   :  { %v1263_v48 = vpack.c.bf16 %v4847_v44, %v4845_v18 }
 0xc8d   :  { %1405 = vmatmul.mubr.bf16.vlgmr.msra.gmra.mxu0 %v1263_v48 }
 0xc8e   :  { %1883 = vmatprep.mubr.bf16.mxu0 %v4467_v27 }
 0xd4d   :  { %v1406_v37 = vpop.f32.mrf.mxu0 }
 0xd4e   :  { %v1407_v38 = vadd.f32 %v1406_v37, %v1285_v35 }
 0xd4f   :  { %v1408_v39 = vpop.f32.mrf.mxu0 }
 0xd50   :  { %v1419_v50 = vmul.f32 0.044715, %v1407_v38  ;;  %v1409_v40 = vadd.f32 %v1408_v39, %v1289_v36  ;;  %v1415_v12 = vmul.f32 0.5, %v1407_v38  ;;  %v4085_v39 = vld [vmem:[#allocation5 + $0x16c] ss:$12 sps:$4 sm:$0xff]  }
 0xd51   :  { %v1410_v41 = vpop.f32.mrf.mxu0  ;;  %1851 = vmatprep.subr.bf16.mxu0 %v4085_v39 }
 0xd52   :  { %v1423_v42 = vmul.f32 %v1419_v50, %v1407_v38  ;;  %v1420_v51 = vmul.f32 0.044715, %v1409_v40  ;;  %v1411_v43 = vadd.f32 %v1410_v41, %v1285_v35  ;;  %v1416_v48 = vmul.f32 0.5, %v1409_v40  ;;  %v4086_v50 = vld [vmem:[#allocation5 + $0x170] ss:$12 sps:$4 sm:$0xff]  }
 0xd53   :  { %v1412_v45 = vpop.f32.mrf.mxu0 }
 0xd54   :  { %v1427_v47 = vmul.f32 %v1423_v42, %v1407_v38  ;;  %v1424_v49 = vmul.f32 %v1420_v51, %v1409_v40  ;;  %v1421_v53 = vmul.f32 0.044715, %v1411_v43  ;;  %v1413_v57 = vadd.f32 %v1412_v45, %v1289_v36 }
 0xd55   :  { %v1417_v13 = vmul.f32 0.5, %v1411_v43 }
 0xd56   :  { %v1431_v59 = vadd.f32 %v1427_v47, %v1407_v38  ;;  %v1428_v60 = vmul.f32 %v1424_v49, %v1409_v40  ;;  %v1425_v61 = vmul.f32 %v1421_v53, %v1411_v43  ;;  %v1422_v62 = vmul.f32 0.044715, %v1413_v57  ;;  %v4083_v38 = vld [vmem:[#allocation5 + $0x168] ss:$12 sps:$4 sm:$0xff]   ;;  %v4087_v49 = vld [vmem:[#allocation5 + $0x150] ss:$12 sps:$4 sm:$0xff]  }
 0xd57   :  { %v1418_v46 = vmul.f32 0.5, %v1413_v57  ;;  %1852 = vmatpush1.bf16.msra.mxu0 %v4083_v38  ;;  %v4089_v47 = vld [vmem:[#allocation5 + $0x154] ss:$12 sps:$4 sm:$0xff]   ;;  %v4090_v53 = vld [vmem:[#allocation5 + $0x158] ss:$12 sps:$4 sm:$0xff]  }
 0xd58   :  { %v1429_v21 = vmul.f32 %v1425_v61, %v1411_v43  ;;  %v1426_v63 = vmul.f32 %v1422_v62, %v1413_v57  ;;  %v1432_v0 = vadd.f32 %v1428_v60, %v1409_v40  ;;  %v1435_v1 = vmul.f32 0.7978846, %v1431_v59  ;;  %1853 = vmatprep.subr.bf16.mxu0 %v4089_v47  ;;  %v4091_v59 = vld [vmem:[#allocation5 + $0x138] ss:$12 sps:$4 sm:$0xff]   ;;  %v4094_v60 = vld [vmem:[#allocation5 + $0x140] ss:$12 sps:$4 sm:$0xff]  }
 0xd59   :  { %v4095_v61 = vld [vmem:[#allocation5 + $0x120] ss:$12 sps:$4 sm:$0xff]   ;;  %v4097_v62 = vld [vmem:[#allocation5 + $0x124] ss:$12 sps:$4 sm:$0xff]  }
 0xd5a   :  { %v1433_v26 = vadd.f32 %v1429_v21, %v1411_v43  ;;  %v1430_v2 = vmul.f32 %v1426_v63, %v1413_v57  ;;  %v1436_v3 = vmul.f32 0.7978846, %v1432_v0  ;;  %v4098_v21 = vld [vmem:[#allocation5 + $0x128] ss:$12 sps:$4 sm:$0xff]   ;;  %v4101_v63 = vld [vmem:[#allocation5 + $0x10c] ss:$12 sps:$4 sm:$0xff]  }
 0xd5b   :  { %1854 = vmatpush1.bf16.msra.mxu0 %v4087_v49  ;;  %v4099_v0 = vld [vmem:[#allocation5 + $0x108] ss:$12 sps:$4 sm:$0xff]  }
 0xd5c   :  { %v1437_v5 = vmul.f32 0.7978846, %v1433_v26  ;;  %v1434_v6 = vadd.f32 %v1430_v2, %v1413_v57  ;;  %4219 = vtanh.f32 %v1436_v3  ;;  %v4093_v57 = vld [vmem:[#allocation5 + $0x13c] ss:$12 sps:$4 sm:$0xff]   ;;  %v4105_v26 = vld [vmem:[#allocation5 + $0xf4] ss:$12 sps:$4 sm:$0xff]  }
 0xd5d   :  { %4221 = vtanh.f32 %v1435_v1  ;;  %1855 = vmatprep.subr.bf16.mxu0 %v4093_v57  ;;  %v4102_v1 = vld [vmem:[#allocation5 + $0x110] ss:$12 sps:$4 sm:$0xff]   ;;  %v4106_v3 = vld [vmem:[#allocation5 + $0xf8] ss:$12 sps:$4 sm:$0xff]  }
 0xd5e   :  { %4223 = vtanh.f32 %v1437_v5  ;;  %v1438_v7 = vmul.f32 0.7978846, %v1434_v6  ;;  %v4103_v2 = vld [vmem:[#allocation5 + $0xf0] ss:$12 sps:$4 sm:$0xff]   ;;  %v4107_v6 = vld [vmem:[#allocation5 + $0xd8] ss:$12 sps:$4 sm:$0xff]  }
 0xd5f   :  { %1856 = vmatpush1.bf16.msra.mxu0 %v4091_v59  ;;  %v4109_v5 = vld [vmem:[#allocation5 + $0xdc] ss:$12 sps:$4 sm:$0xff]  }
 0xd60   :  { %4225 = vtanh.f32 %v1438_v7  ;;  %1857 = vmatprep.subr.bf16.mxu0 %v4097_v62  ;;  %v4110_v7 = vld [vmem:[#allocation5 + $0xe0] ss:$12 sps:$4 sm:$0xff]  }
 0xd63   :  { %1858 = vmatpush1.bf16.msra.mxu0 %v4095_v61  ;;  %v4931_v61 = vld [vmem:[%s5209_s12] sm:$0xff] }
 0xd64   :  { %1859 = vmatprep.subr.bf16.mxu0 %v4101_v63 }
 0xd67   :  { %1860 = vmatpush1.bf16.msra.mxu0 %v4099_v0 }
 0xd68   :  { %1861 = vmatprep.subr.bf16.mxu0 %v4105_v26  ;;  %v4938_v26 = vld [vmem:[%s5209_s12 + $0x8] sm:$0xff] }
 0xd69   :  { %v4220_v8 = vpop.eup %4219 }
 0xd6a   :  { %v4222_v9 = vpop.eup %4221  ;;  %v1444_v11 = vadd.f32 1.0, %v4220_v8  ;;  %v4113_v8 = vld [vmem:[#allocation5 + $0xc4] ss:$12 sps:$4 sm:$0xff]  }
 0xd6b   :  { %v4224_v10 = vpop.eup %4223  ;;  %v1443_v17 = vadd.f32 1.0, %v4222_v9  ;;  %1862 = vmatpush1.bf16.msra.mxu0 %v4103_v2  ;;  %v4111_v9 = vld [vmem:[#allocation5 + $0xc0] ss:$12 sps:$4 sm:$0xff]  }
 0xd6c   :  { %v1445_v14 = vadd.f32 1.0, %v4224_v10  ;;  %v1448_v20 = vmul.f32 %v1444_v11, %v1416_v48  ;;  %1863 = vmatprep.subr.bf16.mxu0 %v4109_v5  ;;  %v4114_v10 = vld [vmem:[#allocation5 + $0xc8] ss:$12 sps:$4 sm:$0xff]  }
 0xd6d   :  { %v4226_v16 = vpop.eup %4225  ;;  %v1447_v23 = vmul.f32 %v1443_v17, %v1415_v12  ;;  %v3483_v12 = vld [vmem:[%s5191_s14] ss:$0 sm:$0xff] }
 0xd6e   :  { %v1446_v52 = vadd.f32 1.0, %v4226_v16  ;;  %v1449_v19 = vmul.f32 %v1445_v14, %v1417_v13 }
 0xd6f   :  { %1864 = vmatpush1.bf16.msra.mxu0 %v4107_v6 }
 0xd70   :  { %v1450_v22 = vmul.f32 %v1446_v52, %v1418_v46  ;;  %v1451_v25 = vpack.c.bf16 %v1449_v19, %v1447_v23  ;;  %1865 = vmatprep.subr.bf16.mxu0 %v4113_v8  ;;  %v3484_v23 = vld [vmem:[#allocation10] ss:$0 sm:$0xff] }
 0xd72   :  { %v1452_v24 = vpack.c.bf16 %v1450_v22, %v1448_v20 }
 0xd73   :  { %1866 = vmatpush1.bf16.msra.mxu0 %v4111_v9 }
 0xd74   :  { %1620 = vmatprep.mubr.bf16.mxu1 %v1452_v24  ;;  %3864 = vmatprep.subr.bf16.mxu0 %v4466_v4 }
 0xd75   :  { %1621 = vmatmul.mubr.bf16.vlgmr.msra.gmra.mxu1 %v1451_v25 }
 0xd76   :  { %3860 = vmatprep.mubr.msk.bf16.mxu1 %vm4468_vm0, %v4466_v4  ;;  %3845 = vmatpush3.bf16.msra.mxu1 %v4086_v50 }
 0xd77   :  { %3846 = vmatprep.subr.bf16.mxu1 %v4466_v4 }
 0xd7a   :  { %3847 = vmatpush3.bf16.msra.mxu1 %v4090_v53 }
 0xd7b   :  { %3848 = vmatprep.subr.bf16.mxu1 %v4466_v4 }
 0xd7e   :  { %3849 = vmatpush3.bf16.msra.mxu1 %v4094_v60 }
 0xd7f   :  { %3850 = vmatprep.subr.bf16.mxu1 %v4466_v4 }
 0xd82   :  { %3851 = vmatpush3.bf16.msra.mxu1 %v4098_v21 }
 0xd83   :  { %3852 = vmatprep.subr.bf16.mxu1 %v4466_v4 }
 0xd86   :  { %3853 = vmatpush3.bf16.msra.mxu1 %v4102_v1 }
 0xd87   :  { %3854 = vmatprep.subr.bf16.mxu1 %v4466_v4 }
 0xd8a   :  { %3855 = vmatpush3.bf16.msra.mxu1 %v4106_v3 }
 0xd8b   :  { %3856 = vmatprep.subr.bf16.mxu1 %v4466_v4 }
 0xd8e   :  { %3857 = vmatpush3.bf16.msra.mxu1 %v4110_v7 }
 0xd8f   :  { %3858 = vmatprep.subr.bf16.mxu1 %v4466_v4 }
 0xd92   :  { %3859 = vmatpush3.bf16.msra.mxu1 %v4114_v10 }
 0xd93   :  { %3870 = vmatprep.subr.bf16.mxu1 %v4466_v4 }
 0xe35   :  { %v3661_v28 = vpop.f32.mrf.mxu1 }
 0xe37   :  { %v3662_v15 = vpop.f32.mrf.mxu1 }
 0xe38   :  { %v3663_v30 = vadd.f32 %v3662_v15, %v3661_v28  ;;  %v3485_v15 = vld [vmem:[%s5182_s5 + $0x3] sm:$0x7] }
 0xe39   :  { %v3664_v31 = vpop.f32.mrf.mxu1 }
 0xe3a   :  { %v1623_v32 = vadd.f32 %v3663_v30, %v3466_v29 }
 0xe3b   :  { %v3665_v33 = vpop.f32.mrf.mxu1 }
 0xe3c   :  { %v3666_v34 = vadd.f32 %v3665_v33, %v3664_v31  ;;  %v1629_v35 = vadd.f32 %v1623_v32, %v4845_v18  ;;  %v1719_v32 = vrot.slane %v3485_v15, %v246_v56 }
 0xe3e   :  { %v1626_v36 = vadd.f32 %v3666_v34, %v3466_v29  ;;  %1633 = vadd.xlane.f32.xlu1 %v1629_v35 }
 0xe40   :  { %v1630_v37 = vadd.f32 %v1626_v36, %v4847_v44 }
 0xe42   :  { %1635 = vadd.xlane.f32.xlu1 %v1630_v37 }
 0xec7   :  { %v1634_v40 = vpop.xlane.xlu1 %1633 }
 0xec8   :  { %v1637_v41 = vmul.f32 0.0078125, %v1634_v40 }
 0xeca   :  { %v4866_v42 = vsub.f32 %v1629_v35, %v1637_v41  ;;  %v1715_v35 = vrot.slane %v3485_v15, %v4656_v58  ;;  %v1711_v41 = vrot.slane %v3485_v15, %v4649_v55 }
 0xecb   :  { %v1636_v51 = vpop.xlane.xlu1 %1635 }
 0xecc   :  { %v1638_v43 = vmul.f32 0.0078125, %v1636_v51  ;;  %v1641_v18 = vmul.f32 %v4866_v42, %v4866_v42 }
 0xece   :  { %v4870_v45 = vsub.f32 %v1630_v37, %v1638_v43  ;;  %1643 = vadd.xlane.f32.xlu0 %v1641_v18 }
 0xed0   :  { %v1642_v44 = vmul.f32 %v4870_v45, %v4870_v45 }
 0xed2   :  { %1645 = vadd.xlane.f32.xlu1 %v1642_v44 }
 0xf57   :  { %v1644_v11 = vpop.xlane.xlu0 %1643 }
 0xf58   :  { %v1647_v14 = vmul.f32 0.0078125, %v1644_v11 }
 0xf5a   :  { %v1649_v16 = vadd.f32 1e-12, %v1647_v14 }
 0xf5b   :  { %v1646_v13 = vpop.xlane.xlu1 %1645 }
 0xf5c   :  { %4227 = vrsqrt.f32 %v1649_v16  ;;  %v1648_v17 = vmul.f32 0.0078125, %v1646_v13 }
 0xf5e   :  { %v1650_v48 = vadd.f32 1e-12, %v1648_v17 }
 0xf60   :  { %4229 = vrsqrt.f32 %v1650_v48 }
 0xf69   :  { %v4228_v46 = vpop.eup %4227 }
 0xf6a   :  { %v1653_v52 = vmul.f32 %v4228_v46, %v4866_v42 }
 0xf6c   :  { %v1661_v22 = vmul.f32 %v3483_v12, %v1653_v52 }
 0xf6d   :  { %v4230_v19 = vpop.eup %4229 }
 0xf6e   :  { %v1654_v20 = vmul.f32 %v4230_v19, %v4870_v45  ;;  %v4887_v25 = vadd.f32 %v3484_v23, %v1661_v22 }
 0xf70   :  { %v1662_v24 = vmul.f32 %v3483_v12, %v1654_v20 }
 0xf72   :  { %v4889_v28 = vadd.f32 %v3484_v23, %v1662_v24 }
 0xf74   :  { %v1671_v29 = vpack.c.bf16 %v4889_v28, %v4887_v25 }
 0xf76   :  { %1884 = vmatmul.mubr.bf16.vlgmr.msra.gmra.mxu0 %v1671_v29  ;;  %3861 = vmatmul.mubr.bf16.vlgmr.msra.gmra.mxu1 %v1671_v29 }
 0xf77   :  { %3866 = vmatprep.mubr.msk.bf16.mxu0 %vm4468_vm0, %v4466_v4  ;;  %3872 = vmatprep.mubr.msk.bf16.mxu1 %vm4468_vm0, %v4466_v4 }
0x1036   :  { %v1885_v30 = vpop.f32.mrf.mxu0  ;;  %v1928_v31 = vpop.f32.mrf.mxu1 }
0x1037   :  { %v1929_v38 = vadd.f32 %v1928_v31, %v1719_v32  ;;  %v1886_v54 = vadd.f32 %v1885_v30, %v1711_v41 }
0x1038   :  { %v1887_v33 = vpop.f32.mrf.mxu0  ;;  %v3862_v34 = vpop.f32.mrf.mxu1 }
0x1039   :  { %v1888_v42 = vadd.f32 %v1887_v33, %v1715_v35 }
0x103a   :  { %v1889_v36 = vpop.f32.mrf.mxu0  ;;  %v1931_v37 = vpop.f32.mrf.mxu1 }
0x103b   :  { %v1932_v39 = vadd.f32 %v1931_v37, %v1719_v32  ;;  %v1890_v18 = vadd.f32 %v1889_v36, %v1711_v41 }
0x103c   :  { %v1891_v50 = vpop.f32.mrf.mxu0  ;;  %v3863_v40 = vpop.f32.mrf.mxu1 }
0x103d   :  { %v4904_v51 = vpack.c.bf16 %v1932_v39, %v1929_v38  ;;  %v1892_v43 = vadd.f32 %v1891_v50, %v1715_v35  ;;  %v4914_v44 = vpack.c.bf16 %v1890_v18, %v1886_v54  ;;  %v4117_v18 = vld [vmem:[#allocation7 + $0x58] sm:$0xff]  }
0x103f   :  { %v4906_v45 = vpack.c.bf16 %v1892_v43, %v1888_v42  ;;  %3871 = vmatpush3.bf16.msra.mxu1 %v4904_v51 }
0x1040   :  { %3882 = vmatprep.subr.bf16.mxu1 %v4466_v4 }
0x1041   :  { %2078 = vrot.lane.b32.xlu1 %v4906_v45, %s4469_s26  ;;  %v1959_v56 = vsel %vm482_vm1, %v4906_v45, 0 }
0x1042   :  { %3865 = vmatpush3.bf16.xpose.msra.mxu0 %v1959_v56 }
0x1043   :  { %3876 = vmatprep.subr.bf16.mxu0 %v4466_v4 }
0x1045   :  { %2075 = vrot.lane.b32.xlu1 %v4914_v44, %s4469_s26 }
0x1049   :  { %3867 = vmatmul.mubr.msk.bf16.vlgmr.msra.gmra.mxu0 %vm482_vm1, %v4914_v44 }
0x104a   :  { %3878 = vmatprep.mubr.msk.bf16.mxu0 %vm4468_vm0, %v4466_v4 }
0x10b3   :  { %v2079_v47 = vpop.permute.xlu1 %2078 }
0x10b4   :  { %v2084_v49 = vsel %vm482_vm1, %v2079_v47, 0 }
0x10b5   :  { %3877 = vmatpush3.bf16.xpose.msra.mxu0 %v2084_v49 }
0x10b6   :  { %3888 = vmatprep.subr.bf16.mxu0 %v4466_v4 }
0x10b7   :  { %v2076_v53 = vpop.permute.xlu1 %2075 }
0x10bc   :  { %3879 = vmatmul.mubr.msk.bf16.vlgmr.msra.gmra.mxu0 %vm482_vm1, %v2076_v53 }
0x10bd   :  { %3892 = vmatprep.mubr.msk.bf16.mxu0 %vm4468_vm0, %v4466_v4  ;;  %3889 = vmatpush3.bf16.msra.mxu0 %v4117_v18 }
0x10be   :  { %3890 = vmatprep.subr.bf16.mxu0 %v4466_v4 }
0x1109   :  { %v1995_v57 = vpop.f32.mrf.mxu0 }
0x110a   :  { %v2002_v59 = vmul.f32 0.17677669, %v1995_v57 }
0x110b   :  { %v3868_v60 = vpop.f32.mrf.mxu0 }
0x110c   :  { %v2004_v62 = vadd.f32 %v4931_v61, %v2002_v59  ;;  %v4115_v60 = vld [vmem:[#allocation7 + $0x48] sm:$0xff]  }
0x110d   :  { %v1998_v21 = vpop.f32.mrf.mxu0 }
0x110e   :  { %v2003_v63 = vmul.f32 0.17677669, %v1998_v21  ;;  %v2006_v0 = vsel %vm534_vm2, %v2004_v62, -inf  ;;  %v4116_v21 = vld [vmem:[#allocation7 + $0x40] sm:$0xff]  }
0x110f   :  { %2007 = vmax.xlane.f32.xlu1 %v2006_v0  ;;  %v3869_v1 = vpop.f32.mrf.mxu0 }
0x1110   :  { %v2005_v2 = vadd.f32 %v4938_v26, %v2003_v63  ;;  %v4118_v63 = vld [vmem:[#allocation7 + $0x50] sm:$0xff]  }
0x1111   :  { %3891 = vmatpush3.bf16.msra.mxu0 %v4118_v63 }
0x1112   :  { %v2009_v3 = vsel %vm534_vm2, %v2005_v2, -inf  ;;  %3904 = vmatprep.subr.bf16.mxu0 %v4466_v4 }
0x1113   :  { %2010 = vmax.xlane.f32.xlu0 %v2009_v3 }
0x1120   :  { %2317 = vrot.lane.b32.xlu1 %v4906_v45, %s4458_s0 }
0x1124   :  { %2315 = vrot.lane.b32.xlu1 %v4914_v44, %s4458_s0 }
0x117c   :  { %v2120_v5 = vpop.f32.mrf.mxu0 }
0x117d   :  { %v2127_v6 = vmul.f32 0.17677669, %v2120_v5 }
0x117e   :  { %v3880_v7 = vpop.f32.mrf.mxu0 }
0x117f   :  { %v2129_v8 = vadd.f32 %v4931_v61, %v2127_v6 }
0x1180   :  { %v2123_v9 = vpop.f32.mrf.mxu0 }
0x1181   :  { %v2128_v10 = vmul.f32 0.17677669, %v2123_v9  ;;  %v2131_v11 = vsel %vm534_vm2, %v2129_v8, -inf }
0x1182   :  { %2132 = vmax.xlane.f32.xlu0 %v2131_v11  ;;  %v3881_v14 = vpop.f32.mrf.mxu0 }
0x1183   :  { %v2130_v16 = vadd.f32 %v4938_v26, %v2128_v10 }
0x1185   :  { %v2134_v13 = vsel %vm534_vm2, %v2130_v16, -inf }
0x1186   :  { %2135 = vmax.xlane.f32.xlu0 %v2134_v13 }
0x1198   :  { %v2008_v17 = vpop.xlane.xlu1 %2007 }
0x1199   :  { %v2012_v48 = vsub.f32 %v2004_v62, %v2008_v17 }
0x119b   :  { %v2014_v46 = vmul.f32 1.442695, %v2012_v48 }
0x119c   :  { %v2011_v52 = vpop.xlane.xlu0 %2010 }
0x119d   :  { %4231 = vpow2.f32 %v2014_v46  ;;  %v2013_v12 = vsub.f32 %v2005_v2, %v2011_v52 }
0x119f   :  { %v2016_v19 = vmul.f32 1.442695, %v2013_v12 }
0x11a1   :  { %4233 = vpow2.f32 %v2016_v19 }
0x11aa   :  { %v4232_v20 = vpop.eup %4231 }
0x11ab   :  { %v2018_v22 = vsel %vm534_vm2, %v4232_v20, 0.0 }
0x11ac   :  { %2019 = vadd.xlane.f32.xlu0 %v2018_v22 }
0x11ae   :  { %v4234_v23 = vpop.eup %4233 }
0x11af   :  { %v2021_v24 = vsel %vm534_vm2, %v4234_v23, 0.0 }
0x11b0   :  { %2022 = vadd.xlane.f32.xlu0 %v2021_v24 }
0x120b   :  { %v2133_v29 = vpop.xlane.xlu0 %2132 }
0x120c   :  { %v2137_v15 = vsub.f32 %v2129_v8, %v2133_v29  ;;  %v2318_v8 = vpop.permute.xlu1 %2317 }
0x120d   :  { %v2323_v14 = vsel %vm482_vm1, %v2318_v8, 0 }
0x120e   :  { %v2139_v30 = vmul.f32 1.442695, %v2137_v15 }
0x120f   :  { %v2136_v31 = vpop.xlane.xlu0 %2135 }
0x1210   :  { %4235 = vpow2.f32 %v2139_v30  ;;  %v2138_v32 = vsub.f32 %v2130_v16, %v2136_v31  ;;  %v2316_v16 = vpop.permute.xlu1 %2315 }
0x1212   :  { %v2141_v33 = vmul.f32 1.442695, %v2138_v32 }
0x1214   :  { %4237 = vpow2.f32 %v2141_v33 }
0x121d   :  { %v4236_v34 = vpop.eup %4235 }
0x121e   :  { %v2143_v35 = vsel %vm534_vm2, %v4236_v34, 0.0 }
0x121f   :  { %2144 = vadd.xlane.f32.xlu0 %v2143_v35 }
0x1221   :  { %v4238_v36 = vpop.eup %4237 }
0x1222   :  { %v2146_v37 = vsel %vm534_vm2, %v4238_v36, 0.0 }
0x1223   :  { %2147 = vadd.xlane.f32.xlu0 %v2146_v37 }
0x1235   :  { %v2020_v38 = vpop.xlane.xlu0 %2019 }
0x1236   :  { %4239 = vrcp.f32 %v2020_v38 }
0x1239   :  { %2155 = vrot.lane.b32.xlu0 %v4904_v51, %s4469_s26  ;;  %v2023_v39 = vpop.xlane.xlu0 %2022 }
0x123a   :  { %4241 = vrcp.f32 %v2023_v39 }
0x1243   :  { %v4240_v50 = vpop.eup %4239 }
0x1244   :  { %v2026_v41 = vmul.f32 %v4240_v50, %v4232_v20 }
0x1247   :  { %v4242_v40 = vpop.eup %4241 }
0x1248   :  { %v2027_v42 = vmul.f32 %v4242_v40, %v4234_v23 }
0x124a   :  { %v2028_v43 = vpack.c.bf16 %v2027_v42, %v2026_v41 }
0x124c   :  { %3873 = vmatmul.mubr.msk.bf16.vlgmr.msra.gmra.mxu1 %vm534_vm2, %v2028_v43 }
0x124d   :  { %3884 = vmatprep.mubr.msk.bf16.mxu1 %vm4468_vm0, %v4466_v4 }
0x12a8   :  { %v2145_v54 = vpop.xlane.xlu0 %2144 }
0x12a9   :  { %4243 = vrcp.f32 %v2145_v54 }
0x12ac   :  { %v2148_v56 = vpop.xlane.xlu0 %2147 }
0x12ad   :  { %4245 = vrcp.f32 %v2148_v56 }
0x12b0   :  { %v2156_v47 = vpop.permute.xlu0 %2155 }
0x12b1   :  { %3883 = vmatpush3.bf16.msra.mxu1 %v2156_v47 }
0x12b2   :  { %3896 = vmatprep.subr.bf16.mxu1 %v4466_v4 }
0x12b6   :  { %v4244_v49 = vpop.eup %4243 }
0x12b7   :  { %v2151_v57 = vmul.f32 %v4244_v49, %v4236_v34 }
0x12ba   :  { %v4246_v53 = vpop.eup %4245 }
0x12bb   :  { %v2152_v59 = vmul.f32 %v4246_v53, %v4238_v36 }
0x12bd   :  { %v2153_v62 = vpack.c.bf16 %v2152_v59, %v2151_v57 }
0x12bf   :  { %3885 = vmatmul.mubr.msk.bf16.vlgmr.msra.gmra.mxu1 %vm534_vm2, %v2153_v62  ;;  %v4119_v62 = vld [vmem:[#allocation7 + $0x68] sm:$0xff]  }
0x12c0   :  { %3897 = vmatpush3.bf16.msra.mxu1 %v4115_v60  ;;  %3900 = vmatprep.mubr.msk.bf16.mxu1 %vm4468_vm0, %v4466_v4 }
0x12c1   :  { %3898 = vmatprep.subr.bf16.mxu1 %v4466_v4 }
0x12c4   :  { %3899 = vmatpush3.bf16.msra.mxu1 %v4116_v21  ;;  %v4120_v21 = vld [vmem:[#allocation7 + $0x60] sm:$0xff]  }
0x12c5   :  { %3910 = vmatprep.subr.bf16.mxu1 %v4466_v4 }
0x130c   :  { %v2066_v0 = vpop.f32.mrf.mxu1 }
0x130e   :  { %v3874_v1 = vpop.f32.mrf.mxu1 }
0x1310   :  { %v2069_v2 = vpop.f32.mrf.mxu1 }
0x1311   :  { %v2073_v3 = vpack.c.bf16 %v2069_v2, %v2066_v0 }
0x1312   :  { %v3875_v5 = vpop.f32.mrf.mxu1 }
0x1313   :  { %3901 = vmatmul.mubr.msk.bf16.vlgmr.msra.gmra.mxu1 %vm482_vm1, %v2073_v3 }
0x1314   :  { %3912 = vmatprep.mubr.msk.bf16.mxu1 %vm4468_vm0, %v4466_v4 }
0x137f   :  { %v2195_v6 = vpop.f32.mrf.mxu1 }
0x1381   :  { %v3886_v7 = vpop.f32.mrf.mxu1 }
0x1383   :  { %v2198_v9 = vpop.f32.mrf.mxu1 }
0x1384   :  { %v2202_v10 = vpack.c.bf16 %v2198_v9, %v2195_v6 }
0x1385   :  { %v3887_v11 = vpop.f32.mrf.mxu1 }
0x1386   :  { %3893 = vmatmul.mubr.msk.bf16.vlgmr.msra.gmra.mxu0 %vm482_vm1, %v2202_v10 }
0x1387   :  { %3905 = vmatpush3.bf16.xpose.msra.mxu0 %v2323_v14  ;;  %3906 = vmatprep.mubr.msk.bf16.mxu0 %vm4468_vm0, %v4466_v4 }
0x1388   :  { %3916 = vmatprep.subr.bf16.mxu0 %v4466_v4 }
0x138e   :  { %3907 = vmatmul.mubr.msk.bf16.vlgmr.msra.gmra.mxu0 %vm482_vm1, %v2316_v16 }
0x138f   :  { %3920 = vmatprep.mubr.msk.bf16.mxu0 %vm4468_vm0, %v4466_v4  ;;  %3917 = vmatpush3.bf16.msra.mxu0 %v4119_v62 }
0x1390   :  { %3918 = vmatprep.subr.bf16.mxu0 %v4466_v4 }
0x1393   :  { %3919 = vmatpush3.bf16.msra.mxu0 %v4120_v21 }
0x1394   :  { %3930 = vmatprep.subr.bf16.mxu0 %v4466_v4 }
0x13d3   :  { %v4978_v13 = vpop.f32.mrf.mxu1 }
0x13d5   :  { %v3902_v17 = vpop.f32.mrf.mxu1 }
0x13d7   :  { %v4980_v48 = vpop.f32.mrf.mxu1 }
0x13d9   :  { %v3903_v46 = vpop.f32.mrf.mxu1 }
0x1446   :  { %v4982_v52 = vpop.f32.mrf.mxu0 }
0x1448   :  { %v3894_v12 = vpop.f32.mrf.mxu0 }
0x144a   :  { %v4984_v19 = vpop.f32.mrf.mxu0 }
0x144c   :  { %v3895_v20 = vpop.f32.mrf.mxu0 }
0x144e   :  { %v2359_v22 = vpop.f32.mrf.mxu0 }
0x144f   :  { %v2366_v23 = vmul.f32 0.17677669, %v2359_v22 }
0x1450   :  { %v3908_v24 = vpop.f32.mrf.mxu0 }
0x1451   :  { %v2368_v29 = vadd.f32 %v4931_v61, %v2366_v23 }
0x1452   :  { %v2362_v15 = vpop.f32.mrf.mxu0 }
0x1453   :  { %v2367_v30 = vmul.f32 0.17677669, %v2362_v15  ;;  %v2370_v31 = vsel %vm534_vm2, %v2368_v29, -inf }
0x1454   :  { %2371 = vmax.xlane.f32.xlu0 %v2370_v31  ;;  %v3909_v32 = vpop.f32.mrf.mxu0 }
0x1455   :  { %v2369_v33 = vadd.f32 %v4938_v26, %v2367_v30 }
0x1457   :  { %v2373_v34 = vsel %vm534_vm2, %v2369_v33, -inf }
0x1458   :  { %2374 = vmax.xlane.f32.xlu1 %v2373_v34  ;;  %v2312_v34 = vadd.f32 %v4980_v48, %v4984_v19  ;;  %v4122_v48 = vld [vmem:[#allocation7 + $0x70] sm:$0xff]  }
0x1469   :  { %2501 = vrot.lane.b32.xlu1 %v4906_v45, %s4470_s21 }
0x146d   :  { %2499 = vrot.lane.b32.xlu1 %v4914_v44, %s4470_s21 }
0x14dd   :  { %v2372_v35 = vpop.xlane.xlu0 %2371 }
0x14de   :  { %v2376_v36 = vsub.f32 %v2368_v29, %v2372_v35 }
0x14e0   :  { %v2378_v37 = vmul.f32 1.442695, %v2376_v36 }
0x14e1   :  { %v2375_v38 = vpop.xlane.xlu1 %2374 }
0x14e2   :  { %4247 = vpow2.f32 %v2378_v37  ;;  %v2377_v39 = vsub.f32 %v2369_v33, %v2375_v38 }
0x14e4   :  { %v2380_v50 = vmul.f32 1.442695, %v2377_v39 }
0x14e5   :  { %v2502_v53 = vpop.permute.xlu1 %2501 }
0x14e6   :  { %4249 = vpow2.f32 %v2380_v50  ;;  %v2507_v59 = vsel %vm482_vm1, %v2502_v53, 0 }
0x14e9   :  { %v2500_v60 = vpop.permute.xlu1 %2499 }
0x14ef   :  { %v4248_v40 = vpop.eup %4247 }
0x14f0   :  { %v2382_v41 = vsel %vm534_vm2, %v4248_v40, 0.0 }
0x14f1   :  { %2383 = vadd.xlane.f32.xlu0 %v2382_v41 }
0x14f3   :  { %v4250_v42 = vpop.eup %4249 }
0x14f4   :  { %v2385_v43 = vsel %vm534_vm2, %v4250_v42, 0.0 }
0x14f5   :  { %2386 = vadd.xlane.f32.xlu0 %v2385_v43 }
0x150b   :  { %2393 = vrot.lane.b32.xlu0 %v4904_v51, %s4458_s0 }
0x157a   :  { %v2384_v45 = vpop.xlane.xlu0 %2383 }
0x157b   :  { %4251 = vrcp.f32 %v2384_v45 }
0x157e   :  { %v2387_v44 = vpop.xlane.xlu0 %2386 }
0x157f   :  { %4253 = vrcp.f32 %v2387_v44 }
0x1582   :  { %v2394_v18 = vpop.permute.xlu0 %2393 }
0x1583   :  { %3911 = vmatpush3.bf16.msra.mxu1 %v2394_v18 }
0x1584   :  { %3924 = vmatprep.subr.bf16.mxu1 %v4466_v4 }
0x1588   :  { %v4252_v54 = vpop.eup %4251 }
0x1589   :  { %v2390_v47 = vmul.f32 %v4252_v54, %v4248_v40 }
0x158c   :  { %v4254_v56 = vpop.eup %4253 }
0x158d   :  { %v2391_v49 = vmul.f32 %v4254_v56, %v4250_v42  ;;  %v3531_v56 = vld [vmem:[%s5184_s7 + $0x1] ss:$0 sm:$0xff] }
0x158f   :  { %v2392_v57 = vpack.c.bf16 %v2391_v49, %v2390_v47 }
0x1591   :  { %3913 = vmatmul.mubr.msk.bf16.vlgmr.msra.gmra.mxu1 %vm534_vm2, %v2392_v57 }
0x1592   :  { %3925 = vmatpush3.bf16.xpose.msra.mxu1 %v2507_v59  ;;  %3926 = vmatprep.mubr.msk.bf16.mxu1 %vm4468_vm0, %v4466_v4 }
0x1593   :  { %3936 = vmatprep.subr.bf16.mxu1 %v4466_v4 }
0x1599   :  { %3927 = vmatmul.mubr.msk.bf16.vlgmr.msra.gmra.mxu1 %vm482_vm1, %v2500_v60 }
0x159a   :  { %3940 = vmatprep.mubr.msk.bf16.mxu1 %vm4468_vm0, %v4466_v4 }
0x1651   :  { %v2433_v63 = vpop.f32.mrf.mxu1 }
0x1653   :  { %v3914_v0 = vpop.f32.mrf.mxu1 }
0x1654   :  { %v4125_v0 = vld [vmem:[%s5187_s10 + $0xf4] ss:$8 sps:$4 sm:$0xff]  }
0x1655   :  { %v2436_v1 = vpop.f32.mrf.mxu1 }
0x1656   :  { %v2440_v2 = vpack.c.bf16 %v2436_v1, %v2433_v63  ;;  %v4123_v63 = vld [vmem:[%s5187_s10 + $0xf0] ss:$8 sps:$4 sm:$0xff]  }
0x1657   :  { %v3915_v3 = vpop.f32.mrf.mxu1 }
0x1658   :  { %3921 = vmatmul.mubr.msk.bf16.vlgmr.msra.gmra.mxu0 %vm482_vm1, %v2440_v2 }
0x1659   :  { %v2543_v5 = vpop.f32.mrf.mxu1  ;;  %3932 = vmatprep.mubr.msk.bf16.mxu0 %vm4468_vm0, %v4466_v4 }
0x165a   :  { %v2550_v6 = vmul.f32 0.17677669, %v2543_v5 }
0x165b   :  { %v3928_v7 = vpop.f32.mrf.mxu1 }
0x165c   :  { %v2552_v8 = vadd.f32 %v4931_v61, %v2550_v6 }
0x165d   :  { %v2546_v9 = vpop.f32.mrf.mxu1 }
0x165e   :  { %v2551_v10 = vmul.f32 0.17677669, %v2546_v9  ;;  %v2554_v11 = vsel %vm534_vm2, %v2552_v8, -inf  ;;  %v4126_v9 = vld [vmem:[%s5187_s10 + $0xe0] ss:$8 sps:$4 sm:$0xff]  }
0x165f   :  { %2555 = vmax.xlane.f32.xlu1 %v2554_v11  ;;  %v3929_v14 = vpop.f32.mrf.mxu1  ;;  %v4129_v11 = vld [vmem:[%s5187_s10 + $0xd0] ss:$8 sps:$4 sm:$0xff]  }
0x1660   :  { %v2553_v16 = vadd.f32 %v4938_v26, %v2551_v10  ;;  %v4131_v10 = vld [vmem:[%s5187_s10 + $0xd4] ss:$8 sps:$4 sm:$0xff]   ;;  %v4132_v14 = vld [vmem:[%s5187_s10 + $0xc0] ss:$8 sps:$4 sm:$0xff]  }
0x1662   :  { %v2557_v17 = vsel %vm534_vm2, %v2553_v16, -inf }
0x1663   :  { %2558 = vmax.xlane.f32.xlu0 %v2557_v17  ;;  %v4137_v17 = vld [vmem:[%s5187_s10 + $0xb4] ss:$8 sps:$4 sm:$0xff]  }
0x1670   :  { %2577 = vrot.lane.b32.xlu1 %v4904_v51, %s4470_s21  ;;  %v2309_v51 = vadd.f32 %v4978_v13, %v4982_v52  ;;  %v4121_v13 = vld [vmem:[#allocation7 + $0x78] sm:$0xff]  }
0x1671   :  { %3937 = vmatpush3.bf16.msra.mxu1 %v4121_v13  ;;  %v4149_v13 = vld [vmem:[#allocation8 + $0xf0] sm:$0xff]  }
0x1672   :  { %3938 = vmatprep.subr.bf16.mxu1 %v4466_v4 }
0x1675   :  { %3939 = vmatpush3.bf16.msra.mxu1 %v4122_v48  ;;  %v4150_v48 = vld [vmem:[#allocation8 + $0xb0] sm:$0xff]  }
0x16e8   :  { %v2556_v46 = vpop.xlane.xlu1 %2555 }
0x16e9   :  { %v2560_v12 = vsub.f32 %v2552_v8, %v2556_v46  ;;  %v4128_v8 = vld [vmem:[%s5187_s10 + $0xe4] ss:$8 sps:$4 sm:$0xff]   ;;  %v4135_v46 = vld [vmem:[%s5187_s10 + $0xb0] ss:$8 sps:$4 sm:$0xff]  }
0x16eb   :  { %v2562_v20 = vmul.f32 1.442695, %v2560_v12  ;;  %v4140_v12 = vld [vmem:[%s5187_s10 + $0xa4] ss:$8 sps:$4 sm:$0xff]  }
0x16ec   :  { %v2578_v22 = vpop.permute.xlu1 %2577  ;;  %v2559_v23 = vpop.xlane.xlu0 %2558 }
0x16ed   :  { %4255 = vpow2.f32 %v2562_v20  ;;  %v2561_v61 = vsub.f32 %v2553_v16, %v2559_v23  ;;  %3931 = vmatpush3.bf16.msra.mxu0 %v2578_v22  ;;  %v4134_v16 = vld [vmem:[%s5187_s10 + $0xc4] ss:$8 sps:$4 sm:$0xff]   ;;  %v4138_v20 = vld [vmem:[%s5187_s10 + $0xa0] ss:$8 sps:$4 sm:$0xff]   ;;  %v4143_v22 = vld [vmem:[%s5187_s10 + $0x94] ss:$8 sps:$4 sm:$0xff]  }
0x16ee   :  { %2848 = vmatprep.subr.bf16.mxu0 %v4125_v0  ;;  %v4141_v23 = vld [vmem:[%s5187_s10 + $0x90] ss:$8 sps:$4 sm:$0xff]  }
0x16ef   :  { %v2564_v24 = vmul.f32 1.442695, %v2561_v61  ;;  %v4146_v61 = vld [vmem:[%s5187_s10 + $0x84] ss:$8 sps:$4 sm:$0xff]  }
0x16f1   :  { %4257 = vpow2.f32 %v2564_v24  ;;  %v4144_v24 = vld [vmem:[%s5187_s10 + $0x80] ss:$8 sps:$4 sm:$0xff]  }
0x16fa   :  { %v4256_v29 = vpop.eup %4255 }
0x16fb   :  { %v2566_v15 = vsel %vm534_vm2, %v4256_v29, 0.0 }
0x16fc   :  { %2567 = vadd.xlane.f32.xlu0 %v2566_v15 }
0x16fe   :  { %v4258_v26 = vpop.eup %4257 }
0x16ff   :  { %v2569_v30 = vsel %vm534_vm2, %v4258_v26, 0.0 }
0x1700   :  { %2570 = vadd.xlane.f32.xlu0 %v2569_v30 }
0x1718   :  { %v2490_v31 = vpop.f32.mrf.mxu0 }
0x1719   :  { %v2497_v32 = vadd.f32 %v2490_v31, %v2309_v51 }
0x171a   :  { %v3922_v33 = vpop.f32.mrf.mxu0 }
0x171c   :  { %v2493_v35 = vpop.f32.mrf.mxu0 }
0x171d   :  { %v2498_v36 = vadd.f32 %v2493_v35, %v2312_v34  ;;  %v3534_v34 = vld [vmem:[%s5185_s8 + $0x1] ss:$0 sm:$0xff] }
0x171e   :  { %v3923_v37 = vpop.f32.mrf.mxu0 }
0x1785   :  { %v2568_v38 = vpop.xlane.xlu0 %2567 }
0x1786   :  { %4259 = vrcp.f32 %v2568_v38  ;;  %v3535_v38 = vld [vmem:[%s5186_s9 + $0x1] ss:$0 sm:$0xff] }
0x1789   :  { %v2571_v39 = vpop.xlane.xlu0 %2570 }
0x178a   :  { %4261 = vrcp.f32 %v2571_v39 }
0x1793   :  { %v4260_v50 = vpop.eup %4259 }
0x1794   :  { %v2574_v41 = vmul.f32 %v4260_v50, %v4256_v29 }
0x1797   :  { %v4262_v40 = vpop.eup %4261 }
0x1798   :  { %v2575_v42 = vmul.f32 %v4262_v40, %v4258_v26 }
0x179a   :  { %v2576_v43 = vpack.c.bf16 %v2575_v42, %v2574_v41  ;;  %v4147_v42 = vld [vmem:[#allocation8 + $0xf8] sm:$0xff]  }
0x179b   :  { %3704 = vmatprep.subr.bf16.mxu1 %v4147_v42 }
0x179c   :  { %3933 = vmatmul.mubr.msk.bf16.vlgmr.msra.gmra.mxu0 %vm534_vm2, %v2576_v43  ;;  %v4148_v43 = vld [vmem:[#allocation8 + $0xb8] sm:$0xff]  }
0x179d   :  { %2880 = vmatprep.mubr.bf16.mxu0 %v4467_v27  ;;  %2849 = vmatpush1.bf16.msra.mxu0 %v4123_v63 }
0x179e   :  { %2850 = vmatprep.subr.bf16.mxu0 %v4128_v8 }
0x17a1   :  { %2851 = vmatpush1.bf16.msra.mxu0 %v4126_v9 }
0x17a2   :  { %2852 = vmatprep.subr.bf16.mxu0 %v4131_v10 }
0x17a5   :  { %2853 = vmatpush1.bf16.msra.mxu0 %v4129_v11 }
0x17a6   :  { %2854 = vmatprep.subr.bf16.mxu0 %v4134_v16 }
0x17a9   :  { %2855 = vmatpush1.bf16.msra.mxu0 %v4132_v14 }
0x17aa   :  { %2856 = vmatprep.subr.bf16.mxu0 %v4137_v17 }
0x17ad   :  { %2857 = vmatpush1.bf16.msra.mxu0 %v4135_v46 }
0x17ae   :  { %2858 = vmatprep.subr.bf16.mxu0 %v4140_v12 }
0x17b1   :  { %2859 = vmatpush1.bf16.msra.mxu0 %v4138_v20 }
0x17b2   :  { %2860 = vmatprep.subr.bf16.mxu0 %v4143_v22 }
0x17b5   :  { %2861 = vmatpush1.bf16.msra.mxu0 %v4141_v23 }
0x17b6   :  { %2862 = vmatprep.subr.bf16.mxu0 %v4146_v61 }
0x17b9   :  { %2863 = vmatpush1.bf16.msra.mxu0 %v4144_v24 }
0x17ba   :  { %3944 = vmatprep.subr.bf16.mxu0 %v4466_v4 }
0x185c   :  { %v2617_v52 = vpop.f32.mrf.mxu0 }
0x185e   :  { %v3934_v19 = vpop.f32.mrf.mxu0 }
0x185f   :  { %v4152_v19 = vld [vmem:[#allocation8 + $0xa8] sm:$0xff]  }
0x1860   :  { %v2620_v45 = vpop.f32.mrf.mxu0 }
0x1861   :  { %v2624_v44 = vpack.c.bf16 %v2620_v45, %v2617_v52  ;;  %v4151_v52 = vld [vmem:[#allocation8 + $0xe8] sm:$0xff]   ;;  %v4153_v45 = vld [vmem:[#allocation8 + $0xe0] sm:$0xff]  }
0x1862   :  { %v3935_v18 = vpop.f32.mrf.mxu0 }
0x1863   :  { %3941 = vmatmul.mubr.msk.bf16.vlgmr.msra.gmra.mxu1 %vm482_vm1, %v2624_v44  ;;  %v4154_v44 = vld [vmem:[#allocation8 + $0xa0] sm:$0xff]   ;;  %v4155_v18 = vld [vmem:[#allocation8 + $0xd8] sm:$0xff]  }
0x1864   :  { %3705 = vmatpush3.bf16.msra.mxu1 %v4148_v43 }
0x1865   :  { %3706 = vmatprep.subr.bf16.mxu1 %v4149_v13 }
0x1868   :  { %3707 = vmatpush3.bf16.msra.mxu1 %v4150_v48 }
0x1869   :  { %3708 = vmatprep.subr.bf16.mxu1 %v4151_v52 }
0x186c   :  { %3709 = vmatpush3.bf16.msra.mxu1 %v4152_v19  ;;  %v3570_v19 = vld [vmem:[%s5190_s13 + $0x1] ss:$0 sm:$0xff] }
0x186d   :  { %3710 = vmatprep.subr.bf16.mxu1 %v4153_v45 }
0x1870   :  { %3711 = vmatpush3.bf16.msra.mxu1 %v4154_v44 }
0x1871   :  { %3712 = vmatprep.subr.bf16.mxu1 %v4155_v18 }
0x1923   :  { %v2674_v54 = vpop.f32.mrf.mxu1 }
0x1924   :  { %v2681_v47 = vadd.f32 %v2674_v54, %v2497_v32  ;;  %v4156_v54 = vld [vmem:[#allocation8 + $0x98] sm:$0xff]  }
0x1925   :  { %v3942_v27 = vpop.f32.mrf.mxu1  ;;  %3713 = vmatpush3.bf16.msra.mxu1 %v4156_v54 }
0x1926   :  { %v2691_v49 = vadd.f32 %v3531_v56, %v2681_v47  ;;  %v4158_v47 = vld [vmem:[#allocation8 + $0x90] sm:$0xff]   ;;  %v4159_v27 = vld [vmem:[#allocation8 + $0xc8] sm:$0xff]  }
0x1927   :  { %v2677_v53 = vpop.f32.mrf.mxu1 }
0x1928   :  { %v2682_v57 = vadd.f32 %v2677_v53, %v2498_v36  ;;  %v2693_v59 = vadd.f32 %v2691_v49, %v4887_v25  ;;  %v4160_v49 = vld [vmem:[#allocation8 + $0x88] sm:$0xff]   ;;  %v4161_v53 = vld [vmem:[#allocation8 + $0xc0] sm:$0xff]  }
0x1929   :  { %v3943_v60 = vpop.f32.mrf.mxu1 }
0x192a   :  { %v2692_v62 = vadd.f32 %v3531_v56, %v2682_v57  ;;  %2699 = vadd.xlane.f32.xlu0 %v2693_v59  ;;  %v4157_v56 = vld [vmem:[#allocation8 + $0xd0] sm:$0xff]   ;;  %v4162_v57 = vld [vmem:[#allocation8 + $0x80] sm:$0xff]  }
0x192b   :  { %3714 = vmatprep.subr.bf16.mxu1 %v4157_v56 }
0x192c   :  { %v2694_v21 = vadd.f32 %v2692_v62, %v4889_v28  ;;  %3715 = vmatpush3.bf16.msra.mxu1 %v4158_v47 }
0x192d   :  { %3716 = vmatprep.subr.bf16.mxu1 %v4159_v27 }
0x192e   :  { %2701 = vadd.xlane.f32.xlu0 %v2694_v21 }
0x1930   :  { %3717 = vmatpush3.bf16.msra.mxu1 %v4160_v49 }
0x1931   :  { %3718 = vmatprep.subr.bf16.mxu1 %v4161_v53 }
0x1934   :  { %3719 = vmatpush3.bf16.msra.mxu1 %v4162_v57 }
0x1935   :  { %3964 = vmatprep.subr.bf16.mxu1 %v4466_v4 }
0x19b3   :  { %v2700_v1 = vpop.xlane.xlu0 %2699 }
0x19b4   :  { %v2703_v2 = vmul.f32 0.0078125, %v2700_v1 }
0x19b6   :  { %v2705_v3 = vsub.f32 %v2693_v59, %v2703_v2  ;;  %v3552_v59 = vld [vmem:[%s5188_s11 + $0x2] sm:$0x3] }
0x19b7   :  { %v2702_v25 = vpop.xlane.xlu0 %2701  ;;  %v2761_v60 = vrot.slane %v3552_v59, %v4649_v55  ;;  %v2765_v62 = vrot.slane %v3552_v59, %v4656_v58 }
0x19b8   :  { %v2704_v5 = vmul.f32 0.0078125, %v2702_v25  ;;  %v2707_v6 = vmul.f32 %v2705_v3, %v2705_v3 }
0x19ba   :  { %v2706_v7 = vsub.f32 %v2694_v21, %v2704_v5  ;;  %2709 = vadd.xlane.f32.xlu0 %v2707_v6 }
0x19bc   :  { %v2708_v28 = vmul.f32 %v2706_v7, %v2706_v7 }
0x19be   :  { %2711 = vadd.xlane.f32.xlu0 %v2708_v28 }
0x1a43   :  { %v2710_v29 = vpop.xlane.xlu0 %2709 }
0x1a44   :  { %v2713_v15 = vmul.f32 0.0078125, %v2710_v29 }
0x1a46   :  { %v2715_v26 = vadd.f32 1e-12, %v2713_v15 }
0x1a47   :  { %v2712_v30 = vpop.xlane.xlu0 %2711 }
0x1a48   :  { %4263 = vrsqrt.f32 %v2715_v26  ;;  %v2714_v51 = vmul.f32 0.0078125, %v2712_v30 }
0x1a4a   :  { %v2716_v31 = vadd.f32 1e-12, %v2714_v51 }
0x1a4c   :  { %4265 = vrsqrt.f32 %v2716_v31 }
0x1a55   :  { %v4264_v32 = vpop.eup %4263 }
0x1a56   :  { %v2719_v33 = vmul.f32 %v4264_v32, %v2705_v3 }
0x1a58   :  { %v2727_v37 = vmul.f32 %v3534_v34, %v2719_v33 }
0x1a59   :  { %v4266_v35 = vpop.eup %4265 }
0x1a5a   :  { %v2720_v36 = vmul.f32 %v4266_v35, %v2706_v7  ;;  %v5088_v50 = vadd.f32 %v3535_v38, %v2727_v37 }
0x1a5c   :  { %v2728_v39 = vmul.f32 %v3534_v34, %v2720_v36 }
0x1a5e   :  { %v5090_v40 = vadd.f32 %v3535_v38, %v2728_v39 }
0x1a60   :  { %v2737_v41 = vpack.c.bf16 %v5090_v40, %v5088_v50 }
0x1a62   :  { %2881 = vmatmul.mubr.bf16.vlgmr.msra.gmra.mxu0 %v2737_v41 }
0x1a63   :  { %3960 = vmatprep.mubr.msk.bf16.mxu0 %vm4468_vm0, %v4466_v4 }
0x1b22   :  { %v2882_v21 = vpop.f32.mrf.mxu0 }
0x1b23   :  { %v2883_v63 = vadd.f32 %v2882_v21, %v2761_v60 }
0x1b24   :  { %v2884_v0 = vpop.f32.mrf.mxu0 }
0x1b25   :  { %v2895_v1 = vmul.f32 0.044715, %v2883_v63  ;;  %v2885_v2 = vadd.f32 %v2884_v0, %v2765_v62  ;;  %v2891_v38 = vmul.f32 0.5, %v2883_v63 }
0x1b26   :  { %v2886_v3 = vpop.f32.mrf.mxu0 }
0x1b27   :  { %v2899_v25 = vmul.f32 %v2895_v1, %v2883_v63  ;;  %v2896_v5 = vmul.f32 0.044715, %v2885_v2  ;;  %v2887_v6 = vadd.f32 %v2886_v3, %v2761_v60  ;;  %v2892_v35 = vmul.f32 0.5, %v2885_v2  ;;  %v4166_v3 = vld [vmem:[%s5193_s16 + $0x20] sm:$0xff]  }
0x1b28   :  { %v2888_v7 = vpop.f32.mrf.mxu0 }
0x1b29   :  { %v2903_v28 = vmul.f32 %v2899_v25, %v2883_v63  ;;  %v2900_v8 = vmul.f32 %v2896_v5, %v2885_v2  ;;  %v2897_v9 = vmul.f32 0.044715, %v2887_v6  ;;  %v2889_v10 = vadd.f32 %v2888_v7, %v2765_v62  ;;  %v4167_v25 = vld [vmem:[%s5193_s16 + $0x18] sm:$0xff]   ;;  %v4168_v5 = vld [vmem:[%s5193_s16 + $0x10] sm:$0xff]   ;;  %v4170_v7 = vld [vmem:[%s5193_s16] sm:$0xff]  }
0x1b2a   :  { %v2893_v33 = vmul.f32 0.5, %v2887_v6 }
0x1b2b   :  { %v2907_v11 = vadd.f32 %v2903_v28, %v2883_v63  ;;  %v2904_v14 = vmul.f32 %v2900_v8, %v2885_v2  ;;  %v2901_v16 = vmul.f32 %v2897_v9, %v2887_v6  ;;  %v2898_v55 = vmul.f32 0.044715, %v2889_v10  ;;  %v4171_v28 = vld [vmem:[%s5195_s18 + $0x38] sm:$0xff]   ;;  %v4172_v8 = vld [vmem:[%s5195_s18 + $0x30] sm:$0xff]   ;;  %v4173_v9 = vld [vmem:[%s5195_s18 + $0x28] sm:$0xff]  }
0x1b2c   :  { %v2894_v36 = vmul.f32 0.5, %v2889_v10 }
0x1b2d   :  { %v2905_v17 = vmul.f32 %v2901_v16, %v2887_v6  ;;  %v2902_v58 = vmul.f32 %v2898_v55, %v2889_v10  ;;  %v2908_v46 = vadd.f32 %v2904_v14, %v2885_v2  ;;  %v2911_v12 = vmul.f32 0.7978846, %v2907_v11  ;;  %v4163_v2 = vld [vmem:[%s5193_s16 + $0x38] sm:$0xff]  }
0x1b2e   :  { %3945 = vmatpush3.bf16.msra.mxu0 %v4163_v2 }
0x1b2f   :  { %v2909_v20 = vadd.f32 %v2905_v17, %v2887_v6  ;;  %v2906_v22 = vmul.f32 %v2902_v58, %v2889_v10  ;;  %v2912_v23 = vmul.f32 0.7978846, %v2908_v46  ;;  %3946 = vmatprep.subr.bf16.mxu0 %v4466_v4  ;;  %v4169_v6 = vld [vmem:[%s5193_s16 + $0x8] sm:$0xff]   ;;  %v3588_v46 = vld [vmem:[%s5191_s14 + $0x1] ss:$0 sm:$0xff] }
0x1b31   :  { %v2913_v61 = vmul.f32 0.7978846, %v2909_v20  ;;  %v2910_v24 = vadd.f32 %v2906_v22, %v2889_v10  ;;  %4267 = vtanh.f32 %v2912_v23  ;;  %v3589_v20 = vld [vmem:[#allocation10 + $0x1] ss:$0 sm:$0xff] }
0x1b32   :  { %4269 = vtanh.f32 %v2911_v12 }
0x1b33   :  { %4271 = vtanh.f32 %v2913_v61  ;;  %v2914_v29 = vmul.f32 0.7978846, %v2910_v24 }
0x1b35   :  { %4273 = vtanh.f32 %v2914_v29 }
0x1b3e   :  { %v4268_v15 = vpop.eup %4267 }
0x1b3f   :  { %v4270_v26 = vpop.eup %4269  ;;  %v2920_v51 = vadd.f32 1.0, %v4268_v15 }
0x1b40   :  { %v4272_v30 = vpop.eup %4271  ;;  %v2919_v34 = vadd.f32 1.0, %v4270_v26 }
0x1b41   :  { %v2921_v31 = vadd.f32 1.0, %v4272_v30  ;;  %v2924_v41 = vmul.f32 %v2920_v51, %v2892_v35  ;;  %v4178_v35 = vld [vmem:[%s5195_s18] sm:$0xff]  }
0x1b42   :  { %v4274_v32 = vpop.eup %4273  ;;  %v2923_v43 = vmul.f32 %v2919_v34, %v2891_v38  ;;  %v4177_v34 = vld [vmem:[%s5195_s18 + $0x8] sm:$0xff]  }
0x1b43   :  { %v2922_v37 = vadd.f32 1.0, %v4274_v32  ;;  %v2925_v39 = vmul.f32 %v2921_v31, %v2893_v33  ;;  %v4174_v31 = vld [vmem:[%s5195_s18 + $0x20] sm:$0xff]   ;;  %v4175_v32 = vld [vmem:[%s5195_s18 + $0x18] sm:$0xff]   ;;  %v4176_v33 = vld [vmem:[%s5195_s18 + $0x10] sm:$0xff]   ;;  %s4423_s18 = scalar_lea.vmem %s3390_s4, 32 }
0x1b44   :  { %p4424_p7 = scmp.ne.s32.totalorder %s3390_s4, %s4423_s18  ;;  %p4429_p9 = scmp.lt.s32.totalorder %s4423_s18, %s4423_s18 }
0x1b45   :  { %v2926_v42 = vmul.f32 %v2922_v37, %v2894_v36  ;;  %v2927_v48 = vpack.c.bf16 %v2925_v39, %v2923_v43  ;;  %v3590_v36 = vld [vmem:[#allocation11] ss:$0 sm:$0xff] }
0x1b46   :  { %p4430_p10 = por %p4429_p9, %p4428_p8 }
0x1b47   :  { %v2928_v13 = vpack.c.bf16 %v2926_v42, %v2924_v41 }
0x1b48   :  { %p4431_p11 = pnand %p4430_p10, %p4424_p7 }
0x1b49   :  { %3098 = vmatprep.mubr.bf16.mxu1 %v2928_v13 }
0x1b4a   :  { %3099 = vmatmul.mubr.bf16.vlgmr.msra.gmra.mxu1 %v2927_v48  ;;  %v3599_v48 = vld [vmem:[#allocation13] ss:$0 sm:$0xff] }
0x1b4b   :  { %3980 = vmatprep.mubr.msk.bf16.mxu1 %vm4468_vm0, %v4466_v4  ;;  %3965 = vmatpush3.bf16.msra.mxu1 %v4171_v28 }
0x1b4c   :  { %3966 = vmatprep.subr.bf16.mxu1 %v4466_v4 }
0x1b4f   :  { %3967 = vmatpush3.bf16.msra.mxu1 %v4172_v8 }
0x1b50   :  { %3968 = vmatprep.subr.bf16.mxu1 %v4466_v4 }
0x1b53   :  { %3969 = vmatpush3.bf16.msra.mxu1 %v4173_v9 }
0x1b54   :  { %3970 = vmatprep.subr.bf16.mxu1 %v4466_v4 }
0x1b57   :  { %3971 = vmatpush3.bf16.msra.mxu1 %v4174_v31 }
0x1b58   :  { %3972 = vmatprep.subr.bf16.mxu1 %v4466_v4 }
0x1b5b   :  { %3973 = vmatpush3.bf16.msra.mxu1 %v4175_v32 }
0x1b5c   :  { %3974 = vmatprep.subr.bf16.mxu1 %v4466_v4 }
0x1b5f   :  { %3975 = vmatpush3.bf16.msra.mxu1 %v4176_v33 }
0x1b60   :  { %3976 = vmatprep.subr.bf16.mxu1 %v4466_v4 }
0x1b63   :  { %3977 = vmatpush3.bf16.msra.mxu1 %v4177_v34 }
0x1b64   :  { %3978 = vmatprep.subr.bf16.mxu1 %v4466_v4 }
0x1b67   :  { %3979 = vmatpush3.bf16.msra.mxu1 %v4178_v35 }
0x1c0a   :  { %v3720_v52 = vpop.f32.mrf.mxu1 }
0x1c0c   :  { %v3721_v45 = vpop.f32.mrf.mxu1 }
0x1c0d   :  { %v3722_v44 = vadd.f32 %v3721_v45, %v3720_v52 }
0x1c0e   :  { %v3723_v18 = vpop.f32.mrf.mxu1 }
0x1c0f   :  { %v3101_v54 = vadd.f32 %v3722_v44, %v3570_v19 }
0x1c10   :  { %v3724_v56 = vpop.f32.mrf.mxu1 }
0x1c11   :  { %v3725_v47 = vadd.f32 %v3724_v56, %v3723_v18  ;;  %v3107_v27 = vadd.f32 %v3101_v54, %v5088_v50  ;;  %v4164_v50 = vld [vmem:[%s5193_s16 + $0x30] sm:$0xff]  }
0x1c12   :  { %3947 = vmatpush3.bf16.msra.mxu0 %v4164_v50 }
0x1c13   :  { %v3104_v49 = vadd.f32 %v3725_v47, %v3570_v19  ;;  %3113 = vadd.xlane.f32.xlu0 %v3107_v27  ;;  %3948 = vmatprep.subr.bf16.mxu0 %v4466_v4 }
0x1c15   :  { %v3108_v53 = vadd.f32 %v3104_v49, %v5090_v40  ;;  %v4165_v40 = vld [vmem:[%s5193_s16 + $0x28] sm:$0xff]  }
0x1c16   :  { %3949 = vmatpush3.bf16.msra.mxu0 %v4165_v40 }
0x1c17   :  { %3115 = vadd.xlane.f32.xlu1 %v3108_v53  ;;  %3950 = vmatprep.subr.bf16.mxu0 %v4466_v4 }
0x1c1a   :  { %3951 = vmatpush3.bf16.msra.mxu0 %v4166_v3 }
0x1c1b   :  { %3952 = vmatprep.subr.bf16.mxu0 %v4466_v4 }
0x1c1e   :  { %3953 = vmatpush3.bf16.msra.mxu0 %v4167_v25 }
0x1c1f   :  { %3954 = vmatprep.subr.bf16.mxu0 %v4466_v4 }
0x1c22   :  { %3955 = vmatpush3.bf16.msra.mxu0 %v4168_v5 }
0x1c23   :  { %3956 = vmatprep.subr.bf16.mxu0 %v4466_v4 }
0x1c26   :  { %3957 = vmatpush3.bf16.msra.mxu0 %v4169_v6 }
0x1c27   :  { %3958 = vmatprep.subr.bf16.mxu0 %v4466_v4 }
0x1c2a   :  { %3959 = vmatpush3.bf16.msra.mxu0 %v4170_v7 }
0x1c9c   :  { %v3114_v57 = vpop.xlane.xlu0 %3113 }
0x1c9d   :  { %v3117_v60 = vmul.f32 0.0078125, %v3114_v57 }
0x1c9f   :  { %v3119_v63 = vsub.f32 %v3107_v27, %v3117_v60 }
0x1ca0   :  { %v3116_v59 = vpop.xlane.xlu1 %3115 }
0x1ca1   :  { %v3118_v62 = vmul.f32 0.0078125, %v3116_v59  ;;  %v3121_v1 = vmul.f32 %v3119_v63, %v3119_v63 }
0x1ca3   :  { %v3120_v21 = vsub.f32 %v3108_v53, %v3118_v62 }
0x1ca5   :  { %v3122_v0 = vmul.f32 %v3120_v21, %v3120_v21 }
0x1ca7   :  { %3125 = vadd.xlane.f32.xlu0 %v3122_v0 }
0x1cab   :  { %3123 = vadd.xlane.f32.xlu0 %v3121_v1 }
0x1d30   :  { %v3126_v10 = vpop.xlane.xlu0 %3125 }
0x1d31   :  { %v3128_v11 = vmul.f32 0.0078125, %v3126_v10 }
0x1d33   :  { %v3130_v14 = vadd.f32 1e-12, %v3128_v11 }
0x1d34   :  { %v3124_v16 = vpop.xlane.xlu0 %3123 }
0x1d35   :  { %4275 = vrsqrt.f32 %v3130_v14  ;;  %v3127_v55 = vmul.f32 0.0078125, %v3124_v16 }
0x1d37   :  { %v3129_v17 = vadd.f32 1e-12, %v3127_v55 }
0x1d39   :  { %4277 = vrsqrt.f32 %v3129_v17 }
0x1d42   :  { %v4276_v58 = vpop.eup %4275 }
0x1d43   :  { %v3134_v12 = vmul.f32 %v4276_v58, %v3120_v21 }
0x1d45   :  { %v3142_v22 = vmul.f32 %v3588_v46, %v3134_v12 }
0x1d46   :  { %v4278_v23 = vpop.eup %4277 }
0x1d47   :  { %v3133_v61 = vmul.f32 %v4278_v23, %v3119_v63  ;;  %v3150_v24 = vadd.f32 %v3589_v20, %v3142_v22 }
0x1d49   :  { %v3141_v29 = vmul.f32 %v3588_v46, %v3133_v61  ;;  %v3152_v26 = vrot.slane %v3150_v24, 7 }
0x1d4b   :  { %v3149_v15 = vadd.f32 %v3589_v20, %v3141_v29 }
0x1d4d   :  { %v3155_v30 = vsel %vm3154_vm3, %v3149_v15, %v3152_v26 }
0x1d4e   :  { %v3156_v51 = vpack.c.bf16 %v3155_v30, %v3155_v30 }
0x1d50   :  { %3961 = vmatmul.mubr.bf16.vlgmr.msra.gmra.mxu0 %v3156_v51 }
0x1e10   :  { %v3262_v37 = vpop.f32.mrf.mxu0 }
0x1e11   :  { %v3263_v38 = vadd.f32 %v3590_v36, %v3262_v37 }
0x1e12   :  { %v3962_v39 = vpop.f32.mrf.mxu0 }
0x1e13   :  { %4279 = vtanh.f32 %v3263_v38 }
0x1e14   :  { %v3265_v41 = vpop.f32.mrf.mxu0 }
0x1e16   :  { %v3963_v42 = vpop.f32.mrf.mxu0 }
0x1e20   :  { %v4280_v43 = vpop.eup %4279 }
0x1e21   :  { %v3269_v13 = vpack.c.bf16 %v4280_v43, %v4280_v43 }
0x1e23   :  { %3981 = vmatmul.mubr.bf16.vlgmr.msra.gmra.mxu1 %v3269_v13 }
0x1ee3   :  { %v3375_v52 = vpop.f32.mrf.mxu1 }
0x1ee4   :  { %v3376_v4 = vadd.f32 %v3599_v48, %v3375_v52 }
0x1ee5   :  { %v3982_v19 = vpop.f32.mrf.mxu1 }
0x1ee6   :  { %3382 = vst.msk [vmem:[#allocation14] sm:$0x3] %vm3381_vm4, %v3376_v4 }
0x1ee7   :  { %v3378_v45 = vpop.f32.mrf.mxu1 }
0x1ee8   :  { %4434 = shalt.err (!%p4431_p11)
}
0x1ee9   :  { %3392 = dma.vmem_to_hbm [thread:$0]  %s3390_s4, 32, %s5197_s20, [#allocation4]   ;;  %v3983_v44 = vpop.f32.mrf.mxu1 }
0x1eea   :  { %4451 = dma.done.wait [#allocation4], 32  }
0x1eeb   :  { %4452 = vsyncadd [#allocation4], 4294967264 }
0x1eec   :  { %3396 = vsyncpa [#allocation3], 1 }
0x1eed   :  { %3397 = vsyncpa [#allocation6], 1 }
0x1eee   :  { %3398 = vsyncpa [#allocation9], 1 }
0x1eef   :  { %3399 = vsyncpa [#allocation12], 1 }
0x1ef0   :  { %3400 = vsyncpa [#allocation4], 1 }

</bundles_post_ra>
